<compile_context>
chip_gen: v6e
topology: v6e:2x2x1
jax: 0.10.0
libtpu: 0.0.40
codegen_flags: <defaults>
</compile_context>

<pallas_src>
import functools

import jax
import jax.numpy as jnp
from jax.experimental import pallas as pl
from jax.experimental.pallas import tpu as pltpu

HIDDEN_SIZE = 32
EMBEDDING_DIM = 64
VOCAB_SIZE = 100          # synthetic vocab (real one comes from vocab_to_int.pkl)
CLF_HIDDEN = 128
NUM_CLASSES = 3


def _round_up(x, m):
    return ((x + m - 1) // m) * m


def _choose_block_b(B, T):
    """Pick a batch tile that fills the MXU but stays well under scoped VMEM."""
    # per-batch-row f32 footprint: double-buffered emb tile + xproj + lstm outputs + slack
    per_row_bytes = 4 * (2 * T * EMBEDDING_DIM
                         + T * 4 * HIDDEN_SIZE
                         + T * HIDDEN_SIZE
                         + 16 * HIDDEN_SIZE)
    budget = 8 * 1024 * 1024          # conservative: fits v7x's 64 MiB / default 32 MiB scoped VMEM
    bb_max = max(8, min(256, (budget // max(per_row_bytes, 1)) // 8 * 8))
    n_tiles = -(-B // bb_max)         # cdiv
    bb = -(-B // n_tiles)             # balance tiles so padding waste stays small
    return _round_up(bb, 8)


def _resident_spec(a):
    """Full-array block with a constant index map: stays VMEM-resident across grid steps."""
    nd = a.ndim

    def idx(i):
        return (0,) * nd

    return pl.BlockSpec(a.shape, idx)


def _lstm_attn_kernel(emb_ref, w_ih_ref, w_hh_ref, b_ref,
                      lin_w_ref, lin_b_ref, align_w_ref, align_b_ref,
                      w1_ref, b1_ref, w2_ref, b2_ref,
                      out_ref, attw_ref,
                      outs_ref):
    Bt, T, E = emb_ref.shape
    H = w_hh_ref.shape[0]

    # --- input projection for every timestep at once (off the recurrence critical path) ---
    emb = emb_ref[...]
    xw = jnp.dot(emb.reshape(Bt * T, E), w_ih_ref[...],
                 preferred_element_type=jnp.float32) + b_ref[...]
    xw = xw.reshape(Bt, T, 4 * H)

    w_hh = w_hh_ref[...]
    h = jnp.zeros((Bt, H), jnp.float32)
    c = jnp.zeros((Bt, H), jnp.float32)

    # --- LSTM recurrence, fully unrolled over the compile-time T (PyTorch gate order i,f,g,o) ---
    # TODO(synk): for very long sequences switch to lax.fori_loop(unroll=k) with
    #             ref-based dynamic slicing to bound compile time.
    for t in range(T):
        g = xw[:, t, :] + jnp.dot(h, w_hh, preferred_element_type=jnp.float32)
        sg = jax.nn.sigmoid(g)          # whole 4H = 128-lane register on the EUP
        tg = jnp.tanh(g)
        i_g = sg[:, 0 * H:1 * H]
        f_g = sg[:, 1 * H:2 * H]
        g_g = tg[:, 2 * H:3 * H]
        o_g = sg[:, 3 * H:4 * H]
        c = f_g * c + i_g * g_g
        h = o_g * jnp.tanh(c)
        outs_ref[:, t, :] = h

    h_n = h                              # (Bt, H) final hidden state
    outs = outs_ref[...]                 # (Bt, T, H) batch-major lstm outputs

    # --- ConcatAttention (all batch-major, lane-dense outputs) ---
    att = (jnp.dot(outs.reshape(Bt * T, H), lin_w_ref[...],
                   preferred_element_type=jnp.float32)
           + lin_b_ref[...]).reshape(Bt, T, H)
    scores = jnp.sum(att * h_n[:, None, :], axis=-1)                 # (Bt, T)
    m = jnp.max(scores, axis=-1, keepdims=True)
    e = jnp.exp(scores - m)
    inv = pl.reciprocal(jnp.sum(e, axis=-1, keepdims=True), approx=True)
    wgt = e * inv                                                    # softmax over T
    cntxt = jnp.sum(outs * wgt[:, :, None], axis=1)                  # (Bt, H)
    concat = jnp.concatenate([cntxt, h_n], axis=-1)                  # (Bt, 2H)
    att_hidden = jnp.tanh(jnp.dot(concat, align_w_ref[...],
                                  preferred_element_type=jnp.float32)
                          + align_b_ref[...])                        # (Bt, H)

    # --- classifier head (Dropout is identity in eval mode) ---
    z = jnp.tanh(jnp.dot(att_hidden, w1_ref[...],
                         preferred_element_type=jnp.float32) + b1_ref[...])
    logits = jnp.dot(z, w2_ref[...],
                     preferred_element_type=jnp.float32) + b2_ref[...]

    out_ref[...] = logits
    attw_ref[...] = wgt


def lstm_concat_attention(tokens, params):
    """tokens: (B, T) int32 token ids. Returns (logits (B,3), att_weights (B,T,1))."""
    B, T = tokens.shape
    H, E = HIDDEN_SIZE, EMBEDDING_DIM

    # Embedding gather stays in XLA (single fused gather); the transpose is gone —
    # the kernel consumes batch-major (B, T, E) directly.
    # TODO(synk): fuse the gather into the kernel (scalar-prefetched token ids +
    #             per-row DMA) to kill the materialized (B, T, E) HBM round trip.
    emb = params["embedding"][tokens].astype(jnp.float32)            # (B, T, E)

    block_b = _choose_block_b(B, T)
    Bp = _round_up(B, block_b)
    if Bp != B:
        emb = jnp.pad(emb, ((0, Bp - B), (0, 0), (0, 0)))            # zero rows are harmless
    grid = (Bp // block_b,)

    weights = (
        params["w_ih"].T,                                            # (E, 4H)
        params["w_hh"].T,                                            # (H, 4H)
        (params["b_ih"] + params["b_hh"]).reshape(1, 4 * H),
        params["attn_lin_w"].T, params["attn_lin_b"].reshape(1, H),
        params["attn_align_w"].T, params["attn_align_b"].reshape(1, H),
        params["clf_w1"].T, params["clf_b1"].reshape(1, CLF_HIDDEN),
        params["clf_w2"].T, params["clf_b2"].reshape(1, NUM_CLASSES),
    )

    in_specs = [pl.BlockSpec((block_b, T, E), lambda i: (i, 0, 0))]
    in_specs += [_resident_spec(w) for w in weights]

    logits, attw = pl.pallas_call(
        _lstm_attn_kernel,
        grid=grid,
        in_specs=in_specs,
        out_specs=(pl.BlockSpec((block_b, NUM_CLASSES), lambda i: (i, 0)),
                   pl.BlockSpec((block_b, T), lambda i: (i, 0))),
        out_shape=(jax.ShapeDtypeStruct((Bp, NUM_CLASSES), jnp.float32),
                   jax.ShapeDtypeStruct((Bp, T), jnp.float32)),
        scratch_shapes=[
            pltpu.VMEM((block_b, T, H), jnp.float32),   # lstm outputs (batch-major)
        ],
        compiler_params=pltpu.CompilerParams(
            dimension_semantics=("parallel",)),          # shards batch tiles across TCs on v7x
    )(emb, *weights)

    return logits[:B], attw[:B, :, None]                 # match torch (B, 3), (B, T, 1)


def reference_forward(tokens, params):
    """Pure-JAX reference mirroring the PyTorch module (eval mode), exact f32 matmuls."""
    H = HIDDEN_SIZE
    with jax.default_matmul_precision("highest"):
        emb = params["embedding"][tokens]                          # (B, T, E)
        B = emb.shape[0]
        w_ih, w_hh = params["w_ih"], params["w_hh"]
        b = params["b_ih"] + params["b_hh"]

        def cell(carry, x_t):
            h, c = carry
            g = x_t @ w_ih.T + h @ w_hh.T + b
            i_g = jax.nn.sigmoid(g[:, :H])
            f_g = jax.nn.sigmoid(g[:, H:2 * H])
            g_g = jnp.tanh(g[:, 2 * H:3 * H])
            o_g = jax.nn.sigmoid(g[:, 3 * H:])
            c = f_g * c + i_g * g_g
            h = o_g * jnp.tanh(c)
            return (h, c), h

        init = (jnp.zeros((B, H), jnp.float32), jnp.zeros((B, H), jnp.float32))
        (h_n, _), outs = jax.lax.scan(cell, init, jnp.transpose(emb, (1, 0, 2)))
        outs = jnp.transpose(outs, (1, 0, 2))                      # (B, T, H)

        att = outs @ params["attn_lin_w"].T + params["attn_lin_b"]
        scores = jnp.einsum("bth,bh->bt", att, h_n)
        wgt = jax.nn.softmax(scores, axis=1)
        cntxt = jnp.einsum("bth,bt->bh", outs, wgt)
        concat = jnp.concatenate([cntxt, h_n], axis=-1)
        att_hidden = jnp.tanh(concat @ params["attn_align_w"].T + params["attn_align_b"])
        z = jnp.tanh(att_hidden @ params["clf_w1"].T + params["clf_b1"])
        logits = z @ params["clf_w2"].T + params["clf_b2"]
    return logits, wgt[:, :, None]


def make_params(key):
    ks = jax.random.split(key, 12)
    r = lambda k, shape: (0.1 * jax.random.normal(k, shape, jnp.float32))
    H, E = HIDDEN_SIZE, EMBEDDING_DIM
    return {
        "embedding":    r(ks[0], (VOCAB_SIZE, E)),
        "w_ih":         r(ks[1], (4 * H, E)),
        "w_hh":         r(ks[2], (4 * H, H)),
        "b_ih":         r(ks[3], (4 * H,)),
        "b_hh":         r(ks[4], (4 * H,)),
        "attn_lin_w":   r(ks[5], (H, H)),
        "attn_lin_b":   r(ks[6], (H,)),
        "attn_align_w": r(ks[7], (H, 2 * H)),
        "attn_align_b": r(ks[8], (H,)),
        "clf_w1":       r(ks[9], (CLF_HIDDEN, H)),
        "clf_b1":       r(ks[10], (CLF_HIDDEN,)),
        "clf_w2":       r(ks[11], (NUM_CLASSES, CLF_HIDDEN)),
        "clf_b2":       0.1 * jax.random.normal(jax.random.fold_in(key, 99),
                                                (NUM_CLASSES,), jnp.float32),
    }


if __name__ == "__main__":
    key = jax.random.PRNGKey(0)
    pkey, tkey = jax.random.split(key)
    params = make_params(pkey)

    B, T = 2, 8
    tokens = jax.random.randint(tkey, (B, T), 0, VOCAB_SIZE, dtype=jnp.int32)

    out, att_w = lstm_concat_attention(tokens, params)
    out, att_w = jax.block_until_ready((out, att_w))

    ref_out, ref_att_w = reference_forward(tokens, params)
    assert out.shape == (B, NUM_CLASSES) and att_w.shape == (B, T, 1)
    # Tolerance covers single-pass MXU (bf16-operand) matmuls in the kernel vs the
    # highest-precision f32 reference.
    assert jnp.allclose(out, ref_out, rtol=1e-2, atol=1e-2)
    assert jnp.allclose(att_w, ref_att_w, rtol=1e-2, atol=1e-2)

    print("KERNEL_OK")
</pallas_src>

<mosaic_0001>
module attributes {stable_mosaic.version = 11 : i64} {
  func.func @_lstm_attn_kernel(%arg0: i32, %arg1: memref<8x8x64xf32, #tpu.memory_space<vmem>>, %arg2: memref<64x128xf32, #tpu.memory_space<vmem>>, %arg3: memref<32x128xf32, #tpu.memory_space<vmem>>, %arg4: memref<1x128xf32, #tpu.memory_space<vmem>>, %arg5: memref<32x32xf32, #tpu.memory_space<vmem>>, %arg6: memref<1x32xf32, #tpu.memory_space<vmem>>, %arg7: memref<64x32xf32, #tpu.memory_space<vmem>>, %arg8: memref<1x32xf32, #tpu.memory_space<vmem>>, %arg9: memref<32x128xf32, #tpu.memory_space<vmem>>, %arg10: memref<1x128xf32, #tpu.memory_space<vmem>>, %arg11: memref<128x3xf32, #tpu.memory_space<vmem>>, %arg12: memref<1x3xf32, #tpu.memory_space<vmem>>, %arg13: memref<8x3xf32, #tpu.memory_space<vmem>>, %arg14: memref<8x8xf32, #tpu.memory_space<vmem>>, %arg15: memref<8x8x32xf32, #tpu.memory_space<vmem>>) attributes {dimension_semantics = [#tpu.dimension_semantics<parallel>], iteration_bounds = array<i64: 1>, scalar_prefetch = 0 : i64, scratch_operands = 1 : i64, tpu.core_type = #tpu.core_type<tc>, window_params = [{transform_indices = @transform_0, window_bounds = array<i64: 8, 8, 64>}, {pipeline_mode = #tpu.pipeline_mode<synchronous>, transform_indices = @transform_1, window_bounds = array<i64: 64, 128>}, {pipeline_mode = #tpu.pipeline_mode<synchronous>, transform_indices = @transform_2, window_bounds = array<i64: 32, 128>}, {pipeline_mode = #tpu.pipeline_mode<synchronous>, transform_indices = @transform_3, window_bounds = array<i64: 1, 128>}, {pipeline_mode = #tpu.pipeline_mode<synchronous>, transform_indices = @transform_4, window_bounds = array<i64: 32, 32>}, {pipeline_mode = #tpu.pipeline_mode<synchronous>, transform_indices = @transform_5, window_bounds = array<i64: 1, 32>}, {pipeline_mode = #tpu.pipeline_mode<synchronous>, transform_indices = @transform_6, window_bounds = array<i64: 64, 32>}, {pipeline_mode = #tpu.pipeline_mode<synchronous>, transform_indices = @transform_7, window_bounds = array<i64: 1, 32>}, {pipeline_mode = #tpu.pipeline_mode<synchronous>, transform_indices = @transform_8, window_bounds = array<i64: 32, 128>}, {pipeline_mode = #tpu.pipeline_mode<synchronous>, transform_indices = @transform_9, window_bounds = array<i64: 1, 128>}, {pipeline_mode = #tpu.pipeline_mode<synchronous>, transform_indices = @transform_10, window_bounds = array<i64: 128, 3>}, {pipeline_mode = #tpu.pipeline_mode<synchronous>, transform_indices = @transform_11, window_bounds = array<i64: 1, 3>}, {transform_indices = @transform_12, window_bounds = array<i64: 8, 3>}, {transform_indices = @transform_13, window_bounds = array<i64: 8, 8>}]} {
    %c0 = arith.constant 0 : index
    %c0_0 = arith.constant 0 : index
    %c0_1 = arith.constant 0 : index
    %0 = vector.load %arg1[%c0, %c0_0, %c0_1] : memref<8x8x64xf32, #tpu.memory_space<vmem>>, vector<8x8x64xf32>
    %1 = vector.shape_cast %0 : vector<8x8x64xf32> to vector<64x64xf32>
    %c0_2 = arith.constant 0 : index
    %c0_3 = arith.constant 0 : index
    %2 = vector.load %arg2[%c0_2, %c0_3] : memref<64x128xf32, #tpu.memory_space<vmem>>, vector<64x128xf32>
    %cst = arith.constant dense<0.000000e+00> : vector<64x128xf32>
    %3 = tpu.matmul %1, %2, %cst {dimension_numbers = #tpu.dot_dimension_numbers<[1], [0], [0], [1], [0, 0, 1, 1], [], []>} : vector<64x64xf32>, vector<64x128xf32>, vector<64x128xf32> -> vector<64x128xf32>
    %c0_4 = arith.constant 0 : index
    %c0_5 = arith.constant 0 : index
    %4 = vector.load %arg4[%c0_4, %c0_5] : memref<1x128xf32, #tpu.memory_space<vmem>>, vector<1x128xf32>
    %5 = vector.broadcast %4 : vector<1x128xf32> to vector<64x128xf32>
    %6 = arith.addf %3, %5 : vector<64x128xf32>
    %7 = vector.shape_cast %6 : vector<64x128xf32> to vector<8x8x128xf32>
    %c0_6 = arith.constant 0 : index
    %c0_7 = arith.constant 0 : index
    %8 = vector.load %arg3[%c0_6, %c0_7] : memref<32x128xf32, #tpu.memory_space<vmem>>, vector<32x128xf32>
    %cst_8 = arith.constant 0.000000e+00 : f32
    %9 = vector.broadcast %cst_8 : f32 to vector<8x32xf32>
    %cst_9 = arith.constant 0.000000e+00 : f32
    %10 = vector.broadcast %cst_9 : f32 to vector<8x32xf32>
    %11 = vector.extract_strided_slice %7 {offsets = [0, 0, 0], sizes = [8, 1, 128], strides = [1, 1, 1]} : vector<8x8x128xf32> to vector<8x1x128xf32>
    %12 = vector.shape_cast %11 : vector<8x1x128xf32> to vector<8x128xf32>
    %cst_10 = arith.constant dense<0.000000e+00> : vector<8x128xf32>
    %13 = tpu.matmul %9, %8, %cst_10 {dimension_numbers = #tpu.dot_dimension_numbers<[1], [0], [0], [1], [0, 0, 1, 1], [], []>} : vector<8x32xf32>, vector<32x128xf32>, vector<8x128xf32> -> vector<8x128xf32>
    %14 = arith.addf %12, %13 : vector<8x128xf32>
    %15 = arith.negf %14 : vector<8x128xf32>
    %16 = math.exp %15 : vector<8x128xf32>
    %cst_11 = arith.constant 1.000000e+00 : f32
    %17 = vector.broadcast %cst_11 : f32 to vector<8x128xf32>
    %18 = arith.addf %17, %16 : vector<8x128xf32>
    %19 = arith.divf %17, %18 : vector<8x128xf32>
    %20 = math.tanh %14 : vector<8x128xf32>
    %21 = vector.extract_strided_slice %19 {offsets = [0, 0], sizes = [8, 32], strides = [1, 1]} : vector<8x128xf32> to vector<8x32xf32>
    %22 = vector.extract_strided_slice %19 {offsets = [0, 32], sizes = [8, 32], strides = [1, 1]} : vector<8x128xf32> to vector<8x32xf32>
    %23 = vector.extract_strided_slice %20 {offsets = [0, 64], sizes = [8, 32], strides = [1, 1]} : vector<8x128xf32> to vector<8x32xf32>
    %24 = vector.extract_strided_slice %19 {offsets = [0, 96], sizes = [8, 32], strides = [1, 1]} : vector<8x128xf32> to vector<8x32xf32>
    %25 = arith.mulf %22, %10 : vector<8x32xf32>
    %26 = arith.mulf %21, %23 : vector<8x32xf32>
    %27 = arith.addf %25, %26 : vector<8x32xf32>
    %28 = math.tanh %27 : vector<8x32xf32>
    %29 = arith.mulf %24, %28 : vector<8x32xf32>
    %c0_12 = arith.constant 0 : index
    %c0_13 = arith.constant 0 : index
    %c0_14 = arith.constant 0 : index
    %30 = vector.load %arg15[%c0_12, %c0_13, %c0_14] : memref<8x8x32xf32, #tpu.memory_space<vmem>>, vector<8x1x32xf32>
    %31 = vector.shape_cast %30 : vector<8x1x32xf32> to vector<8x32xf32>
    %32 = vector.shape_cast %29 : vector<8x32xf32> to vector<8x1x32xf32>
    tpu.vector_store %arg15[%c0_12, %c0_13, %c0_14], %32 {strides = array<i32>} : memref<8x8x32xf32, #tpu.memory_space<vmem>>, vector<8x1x32xf32>,
    %33 = vector.extract_strided_slice %7 {offsets = [0, 1, 0], sizes = [8, 1, 128], strides = [1, 1, 1]} : vector<8x8x128xf32> to vector<8x1x128xf32>
    %34 = vector.shape_cast %33 : vector<8x1x128xf32> to vector<8x128xf32>
    %cst_15 = arith.constant dense<0.000000e+00> : vector<8x128xf32>
    %35 = tpu.matmul %29, %8, %cst_15 {dimension_numbers = #tpu.dot_dimension_numbers<[1], [0], [0], [1], [0, 0, 1, 1], [], []>} : vector<8x32xf32>, vector<32x128xf32>, vector<8x128xf32> -> vector<8x128xf32>
    %36 = arith.addf %34, %35 : vector<8x128xf32>
    %37 = arith.negf %36 : vector<8x128xf32>
    %38 = math.exp %37 : vector<8x128xf32>
    %cst_16 = arith.constant 1.000000e+00 : f32
    %39 = vector.broadcast %cst_16 : f32 to vector<8x128xf32>
    %40 = arith.addf %39, %38 : vector<8x128xf32>
    %41 = arith.divf %39, %40 : vector<8x128xf32>
    %42 = math.tanh %36 : vector<8x128xf32>
    %43 = vector.extract_strided_slice %41 {offsets = [0, 0], sizes = [8, 32], strides = [1, 1]} : vector<8x128xf32> to vector<8x32xf32>
    %44 = vector.extract_strided_slice %41 {offsets = [0, 32], sizes = [8, 32], strides = [1, 1]} : vector<8x128xf32> to vector<8x32xf32>
    %45 = vector.extract_strided_slice %42 {offsets = [0, 64], sizes = [8, 32], strides = [1, 1]} : vector<8x128xf32> to vector<8x32xf32>
    %46 = vector.extract_strided_slice %41 {offsets = [0, 96], sizes = [8, 32], strides = [1, 1]} : vector<8x128xf32> to vector<8x32xf32>
    %47 = arith.mulf %44, %27 : vector<8x32xf32>
    %48 = arith.mulf %43, %45 : vector<8x32xf32>
    %49 = arith.addf %47, %48 : vector<8x32xf32>
    %50 = math.tanh %49 : vector<8x32xf32>
    %51 = arith.mulf %46, %50 : vector<8x32xf32>
    %c0_17 = arith.constant 0 : index
    %c1 = arith.constant 1 : index
    %c0_18 = arith.constant 0 : index
    %52 = vector.load %arg15[%c0_17, %c1, %c0_18] : memref<8x8x32xf32, #tpu.memory_space<vmem>>, vector<8x1x32xf32>
    %53 = vector.shape_cast %52 : vector<8x1x32xf32> to vector<8x32xf32>
    %54 = vector.shape_cast %51 : vector<8x32xf32> to vector<8x1x32xf32>
    tpu.vector_store %arg15[%c0_17, %c1, %c0_18], %54 {strides = array<i32>} : memref<8x8x32xf32, #tpu.memory_space<vmem>>, vector<8x1x32xf32>,
    %55 = vector.extract_strided_slice %7 {offsets = [0, 2, 0], sizes = [8, 1, 128], strides = [1, 1, 1]} : vector<8x8x128xf32> to vector<8x1x128xf32>
    %56 = vector.shape_cast %55 : vector<8x1x128xf32> to vector<8x128xf32>
    %cst_19 = arith.constant dense<0.000000e+00> : vector<8x128xf32>
    %57 = tpu.matmul %51, %8, %cst_19 {dimension_numbers = #tpu.dot_dimension_numbers<[1], [0], [0], [1], [0, 0, 1, 1], [], []>} : vector<8x32xf32>, vector<32x128xf32>, vector<8x128xf32> -> vector<8x128xf32>
    %58 = arith.addf %56, %57 : vector<8x128xf32>
    %59 = arith.negf %58 : vector<8x128xf32>
    %60 = math.exp %59 : vector<8x128xf32>
    %cst_20 = arith.constant 1.000000e+00 : f32
    %61 = vector.broadcast %cst_20 : f32 to vector<8x128xf32>
    %62 = arith.addf %61, %60 : vector<8x128xf32>
    %63 = arith.divf %61, %62 : vector<8x128xf32>
    %64 = math.tanh %58 : vector<8x128xf32>
    %65 = vector.extract_strided_slice %63 {offsets = [0, 0], sizes = [8, 32], strides = [1, 1]} : vector<8x128xf32> to vector<8x32xf32>
    %66 = vector.extract_strided_slice %63 {offsets = [0, 32], sizes = [8, 32], strides = [1, 1]} : vector<8x128xf32> to vector<8x32xf32>
    %67 = vector.extract_strided_slice %64 {offsets = [0, 64], sizes = [8, 32], strides = [1, 1]} : vector<8x128xf32> to vector<8x32xf32>
    %68 = vector.extract_strided_slice %63 {offsets = [0, 96], sizes = [8, 32], strides = [1, 1]} : vector<8x128xf32> to vector<8x32xf32>
    %69 = arith.mulf %66, %49 : vector<8x32xf32>
    %70 = arith.mulf %65, %67 : vector<8x32xf32>
    %71 = arith.addf %69, %70 : vector<8x32xf32>
    %72 = math.tanh %71 : vector<8x32xf32>
    %73 = arith.mulf %68, %72 : vector<8x32xf32>
    %c0_21 = arith.constant 0 : index
    %c2 = arith.constant 2 : index
    %c0_22 = arith.constant 0 : index
    %74 = vector.load %arg15[%c0_21, %c2, %c0_22] : memref<8x8x32xf32, #tpu.memory_space<vmem>>, vector<8x1x32xf32>
    %75 = vector.shape_cast %74 : vector<8x1x32xf32> to vector<8x32xf32>
    %76 = vector.shape_cast %73 : vector<8x32xf32> to vector<8x1x32xf32>
    tpu.vector_store %arg15[%c0_21, %c2, %c0_22], %76 {strides = array<i32>} : memref<8x8x32xf32, #tpu.memory_space<vmem>>, vector<8x1x32xf32>,
    %77 = vector.extract_strided_slice %7 {offsets = [0, 3, 0], sizes = [8, 1, 128], strides = [1, 1, 1]} : vector<8x8x128xf32> to vector<8x1x128xf32>
    %78 = vector.shape_cast %77 : vector<8x1x128xf32> to vector<8x128xf32>
    %cst_23 = arith.constant dense<0.000000e+00> : vector<8x128xf32>
    %79 = tpu.matmul %73, %8, %cst_23 {dimension_numbers = #tpu.dot_dimension_numbers<[1], [0], [0], [1], [0, 0, 1, 1], [], []>} : vector<8x32xf32>, vector<32x128xf32>, vector<8x128xf32> -> vector<8x128xf32>
    %80 = arith.addf %78, %79 : vector<8x128xf32>
    %81 = arith.negf %80 : vector<8x128xf32>
    %82 = math.exp %81 : vector<8x128xf32>
    %cst_24 = arith.constant 1.000000e+00 : f32
    %83 = vector.broadcast %cst_24 : f32 to vector<8x128xf32>
    %84 = arith.addf %83, %82 : vector<8x128xf32>
    %85 = arith.divf %83, %84 : vector<8x128xf32>
    %86 = math.tanh %80 : vector<8x128xf32>
    %87 = vector.extract_strided_slice %85 {offsets = [0, 0], sizes = [8, 32], strides = [1, 1]} : vector<8x128xf32> to vector<8x32xf32>
    %88 = vector.extract_strided_slice %85 {offsets = [0, 32], sizes = [8, 32], strides = [1, 1]} : vector<8x128xf32> to vector<8x32xf32>
    %89 = vector.extract_strided_slice %86 {offsets = [0, 64], sizes = [8, 32], strides = [1, 1]} : vector<8x128xf32> to vector<8x32xf32>
    %90 = vector.extract_strided_slice %85 {offsets = [0, 96], sizes = [8, 32], strides = [1, 1]} : vector<8x128xf32> to vector<8x32xf32>
    %91 = arith.mulf %88, %71 : vector<8x32xf32>
    %92 = arith.mulf %87, %89 : vector<8x32xf32>
    %93 = arith.addf %91, %92 : vector<8x32xf32>
    %94 = math.tanh %93 : vector<8x32xf32>
    %95 = arith.mulf %90, %94 : vector<8x32xf32>
    %c0_25 = arith.constant 0 : index
    %c3 = arith.constant 3 : index
    %c0_26 = arith.constant 0 : index
    %96 = vector.load %arg15[%c0_25, %c3, %c0_26] : memref<8x8x32xf32, #tpu.memory_space<vmem>>, vector<8x1x32xf32>
    %97 = vector.shape_cast %96 : vector<8x1x32xf32> to vector<8x32xf32>
    %98 = vector.shape_cast %95 : vector<8x32xf32> to vector<8x1x32xf32>
    tpu.vector_store %arg15[%c0_25, %c3, %c0_26], %98 {strides = array<i32>} : memref<8x8x32xf32, #tpu.memory_space<vmem>>, vector<8x1x32xf32>,
    %99 = vector.extract_strided_slice %7 {offsets = [0, 4, 0], sizes = [8, 1, 128], strides = [1, 1, 1]} : vector<8x8x128xf32> to vector<8x1x128xf32>
    %100 = vector.shape_cast %99 : vector<8x1x128xf32> to vector<8x128xf32>
    %cst_27 = arith.constant dense<0.000000e+00> : vector<8x128xf32>
    %101 = tpu.matmul %95, %8, %cst_27 {dimension_numbers = #tpu.dot_dimension_numbers<[1], [0], [0], [1], [0, 0, 1, 1], [], []>} : vector<8x32xf32>, vector<32x128xf32>, vector<8x128xf32> -> vector<8x128xf32>
    %102 = arith.addf %100, %101 : vector<8x128xf32>
    %103 = arith.negf %102 : vector<8x128xf32>
    %104 = math.exp %103 : vector<8x128xf32>
    %cst_28 = arith.constant 1.000000e+00 : f32
    %105 = vector.broadcast %cst_28 : f32 to vector<8x128xf32>
    %106 = arith.addf %105, %104 : vector<8x128xf32>
    %107 = arith.divf %105, %106 : vector<8x128xf32>
    %108 = math.tanh %102 : vector<8x128xf32>
    %109 = vector.extract_strided_slice %107 {offsets = [0, 0], sizes = [8, 32], strides = [1, 1]} : vector<8x128xf32> to vector<8x32xf32>
    %110 = vector.extract_strided_slice %107 {offsets = [0, 32], sizes = [8, 32], strides = [1, 1]} : vector<8x128xf32> to vector<8x32xf32>
    %111 = vector.extract_strided_slice %108 {offsets = [0, 64], sizes = [8, 32], strides = [1, 1]} : vector<8x128xf32> to vector<8x32xf32>
    %112 = vector.extract_strided_slice %107 {offsets = [0, 96], sizes = [8, 32], strides = [1, 1]} : vector<8x128xf32> to vector<8x32xf32>
    %113 = arith.mulf %110, %93 : vector<8x32xf32>
    %114 = arith.mulf %109, %111 : vector<8x32xf32>
    %115 = arith.addf %113, %114 : vector<8x32xf32>
    %116 = math.tanh %115 : vector<8x32xf32>
    %117 = arith.mulf %112, %116 : vector<8x32xf32>
    %c0_29 = arith.constant 0 : index
    %c4 = arith.constant 4 : index
    %c0_30 = arith.constant 0 : index
    %118 = vector.load %arg15[%c0_29, %c4, %c0_30] : memref<8x8x32xf32, #tpu.memory_space<vmem>>, vector<8x1x32xf32>
    %119 = vector.shape_cast %118 : vector<8x1x32xf32> to vector<8x32xf32>
    %120 = vector.shape_cast %117 : vector<8x32xf32> to vector<8x1x32xf32>
    tpu.vector_store %arg15[%c0_29, %c4, %c0_30], %120 {strides = array<i32>} : memref<8x8x32xf32, #tpu.memory_space<vmem>>, vector<8x1x32xf32>,
    %121 = vector.extract_strided_slice %7 {offsets = [0, 5, 0], sizes = [8, 1, 128], strides = [1, 1, 1]} : vector<8x8x128xf32> to vector<8x1x128xf32>
    %122 = vector.shape_cast %121 : vector<8x1x128xf32> to vector<8x128xf32>
    %cst_31 = arith.constant dense<0.000000e+00> : vector<8x128xf32>
    %123 = tpu.matmul %117, %8, %cst_31 {dimension_numbers = #tpu.dot_dimension_numbers<[1], [0], [0], [1], [0, 0, 1, 1], [], []>} : vector<8x32xf32>, vector<32x128xf32>, vector<8x128xf32> -> vector<8x128xf32>
    %124 = arith.addf %122, %123 : vector<8x128xf32>
    %125 = arith.negf %124 : vector<8x128xf32>
    %126 = math.exp %125 : vector<8x128xf32>
    %cst_32 = arith.constant 1.000000e+00 : f32
    %127 = vector.broadcast %cst_32 : f32 to vector<8x128xf32>
    %128 = arith.addf %127, %126 : vector<8x128xf32>
    %129 = arith.divf %127, %128 : vector<8x128xf32>
    %130 = math.tanh %124 : vector<8x128xf32>
    %131 = vector.extract_strided_slice %129 {offsets = [0, 0], sizes = [8, 32], strides = [1, 1]} : vector<8x128xf32> to vector<8x32xf32>
    %132 = vector.extract_strided_slice %129 {offsets = [0, 32], sizes = [8, 32], strides = [1, 1]} : vector<8x128xf32> to vector<8x32xf32>
    %133 = vector.extract_strided_slice %130 {offsets = [0, 64], sizes = [8, 32], strides = [1, 1]} : vector<8x128xf32> to vector<8x32xf32>
    %134 = vector.extract_strided_slice %129 {offsets = [0, 96], sizes = [8, 32], strides = [1, 1]} : vector<8x128xf32> to vector<8x32xf32>
    %135 = arith.mulf %132, %115 : vector<8x32xf32>
    %136 = arith.mulf %131, %133 : vector<8x32xf32>
    %137 = arith.addf %135, %136 : vector<8x32xf32>
    %138 = math.tanh %137 : vector<8x32xf32>
    %139 = arith.mulf %134, %138 : vector<8x32xf32>
    %c0_33 = arith.constant 0 : index
    %c5 = arith.constant 5 : index
    %c0_34 = arith.constant 0 : index
    %140 = vector.load %arg15[%c0_33, %c5, %c0_34] : memref<8x8x32xf32, #tpu.memory_space<vmem>>, vector<8x1x32xf32>
    %141 = vector.shape_cast %140 : vector<8x1x32xf32> to vector<8x32xf32>
    %142 = vector.shape_cast %139 : vector<8x32xf32> to vector<8x1x32xf32>
    tpu.vector_store %arg15[%c0_33, %c5, %c0_34], %142 {strides = array<i32>} : memref<8x8x32xf32, #tpu.memory_space<vmem>>, vector<8x1x32xf32>,
    %143 = vector.extract_strided_slice %7 {offsets = [0, 6, 0], sizes = [8, 1, 128], strides = [1, 1, 1]} : vector<8x8x128xf32> to vector<8x1x128xf32>
    %144 = vector.shape_cast %143 : vector<8x1x128xf32> to vector<8x128xf32>
    %cst_35 = arith.constant dense<0.000000e+00> : vector<8x128xf32>
    %145 = tpu.matmul %139, %8, %cst_35 {dimension_numbers = #tpu.dot_dimension_numbers<[1], [0], [0], [1], [0, 0, 1, 1], [], []>} : vector<8x32xf32>, vector<32x128xf32>, vector<8x128xf32> -> vector<8x128xf32>
    %146 = arith.addf %144, %145 : vector<8x128xf32>
    %147 = arith.negf %146 : vector<8x128xf32>
    %148 = math.exp %147 : vector<8x128xf32>
    %cst_36 = arith.constant 1.000000e+00 : f32
    %149 = vector.broadcast %cst_36 : f32 to vector<8x128xf32>
    %150 = arith.addf %149, %148 : vector<8x128xf32>
    %151 = arith.divf %149, %150 : vector<8x128xf32>
    %152 = math.tanh %146 : vector<8x128xf32>
    %153 = vector.extract_strided_slice %151 {offsets = [0, 0], sizes = [8, 32], strides = [1, 1]} : vector<8x128xf32> to vector<8x32xf32>
    %154 = vector.extract_strided_slice %151 {offsets = [0, 32], sizes = [8, 32], strides = [1, 1]} : vector<8x128xf32> to vector<8x32xf32>
    %155 = vector.extract_strided_slice %152 {offsets = [0, 64], sizes = [8, 32], strides = [1, 1]} : vector<8x128xf32> to vector<8x32xf32>
    %156 = vector.extract_strided_slice %151 {offsets = [0, 96], sizes = [8, 32], strides = [1, 1]} : vector<8x128xf32> to vector<8x32xf32>
    %157 = arith.mulf %154, %137 : vector<8x32xf32>
    %158 = arith.mulf %153, %155 : vector<8x32xf32>
    %159 = arith.addf %157, %158 : vector<8x32xf32>
    %160 = math.tanh %159 : vector<8x32xf32>
    %161 = arith.mulf %156, %160 : vector<8x32xf32>
    %c0_37 = arith.constant 0 : index
    %c6 = arith.constant 6 : index
    %c0_38 = arith.constant 0 : index
    %162 = vector.load %arg15[%c0_37, %c6, %c0_38] : memref<8x8x32xf32, #tpu.memory_space<vmem>>, vector<8x1x32xf32>
    %163 = vector.shape_cast %162 : vector<8x1x32xf32> to vector<8x32xf32>
    %164 = vector.shape_cast %161 : vector<8x32xf32> to vector<8x1x32xf32>
    tpu.vector_store %arg15[%c0_37, %c6, %c0_38], %164 {strides = array<i32>} : memref<8x8x32xf32, #tpu.memory_space<vmem>>, vector<8x1x32xf32>,
    %165 = vector.extract_strided_slice %7 {offsets = [0, 7, 0], sizes = [8, 1, 128], strides = [1, 1, 1]} : vector<8x8x128xf32> to vector<8x1x128xf32>
    %166 = vector.shape_cast %165 : vector<8x1x128xf32> to vector<8x128xf32>
    %cst_39 = arith.constant dense<0.000000e+00> : vector<8x128xf32>
    %167 = tpu.matmul %161, %8, %cst_39 {dimension_numbers = #tpu.dot_dimension_numbers<[1], [0], [0], [1], [0, 0, 1, 1], [], []>} : vector<8x32xf32>, vector<32x128xf32>, vector<8x128xf32> -> vector<8x128xf32>
    %168 = arith.addf %166, %167 : vector<8x128xf32>
    %169 = arith.negf %168 : vector<8x128xf32>
    %170 = math.exp %169 : vector<8x128xf32>
    %cst_40 = arith.constant 1.000000e+00 : f32
    %171 = vector.broadcast %cst_40 : f32 to vector<8x128xf32>
    %172 = arith.addf %171, %170 : vector<8x128xf32>
    %173 = arith.divf %171, %172 : vector<8x128xf32>
    %174 = math.tanh %168 : vector<8x128xf32>
    %175 = vector.extract_strided_slice %173 {offsets = [0, 0], sizes = [8, 32], strides = [1, 1]} : vector<8x128xf32> to vector<8x32xf32>
    %176 = vector.extract_strided_slice %173 {offsets = [0, 32], sizes = [8, 32], strides = [1, 1]} : vector<8x128xf32> to vector<8x32xf32>
    %177 = vector.extract_strided_slice %174 {offsets = [0, 64], sizes = [8, 32], strides = [1, 1]} : vector<8x128xf32> to vector<8x32xf32>
    %178 = vector.extract_strided_slice %173 {offsets = [0, 96], sizes = [8, 32], strides = [1, 1]} : vector<8x128xf32> to vector<8x32xf32>
    %179 = arith.mulf %176, %159 : vector<8x32xf32>
    %180 = arith.mulf %175, %177 : vector<8x32xf32>
    %181 = arith.addf %179, %180 : vector<8x32xf32>
    %182 = math.tanh %181 : vector<8x32xf32>
    %183 = arith.mulf %178, %182 : vector<8x32xf32>
    %c0_41 = arith.constant 0 : index
    %c7 = arith.constant 7 : index
    %c0_42 = arith.constant 0 : index
    %184 = vector.load %arg15[%c0_41, %c7, %c0_42] : memref<8x8x32xf32, #tpu.memory_space<vmem>>, vector<8x1x32xf32>
    %185 = vector.shape_cast %184 : vector<8x1x32xf32> to vector<8x32xf32>
    %186 = vector.shape_cast %183 : vector<8x32xf32> to vector<8x1x32xf32>
    tpu.vector_store %arg15[%c0_41, %c7, %c0_42], %186 {strides = array<i32>} : memref<8x8x32xf32, #tpu.memory_space<vmem>>, vector<8x1x32xf32>,
    %c0_43 = arith.constant 0 : index
    %c0_44 = arith.constant 0 : index
    %c0_45 = arith.constant 0 : index
    %187 = vector.load %arg15[%c0_43, %c0_44, %c0_45] : memref<8x8x32xf32, #tpu.memory_space<vmem>>, vector<8x8x32xf32>
    %188 = vector.shape_cast %187 : vector<8x8x32xf32> to vector<64x32xf32>
    %c0_46 = arith.constant 0 : index
    %c0_47 = arith.constant 0 : index
    %189 = vector.load %arg5[%c0_46, %c0_47] : memref<32x32xf32, #tpu.memory_space<vmem>>, vector<32x32xf32>
    %cst_48 = arith.constant dense<0.000000e+00> : vector<64x32xf32>
    %190 = tpu.matmul %188, %189, %cst_48 {dimension_numbers = #tpu.dot_dimension_numbers<[1], [0], [0], [1], [0, 0, 1, 1], [], []>} : vector<64x32xf32>, vector<32x32xf32>, vector<64x32xf32> -> vector<64x32xf32>
    %c0_49 = arith.constant 0 : index
    %c0_50 = arith.constant 0 : index
    %191 = vector.load %arg6[%c0_49, %c0_50] : memref<1x32xf32, #tpu.memory_space<vmem>>, vector<1x32xf32>
    %192 = vector.broadcast %191 : vector<1x32xf32> to vector<64x32xf32>
    %193 = arith.addf %190, %192 : vector<64x32xf32>
    %194 = vector.shape_cast %193 : vector<64x32xf32> to vector<8x8x32xf32>
    %195 = vector.shape_cast %183 : vector<8x32xf32> to vector<8x1x32xf32>
    %196 = vector.broadcast %195 : vector<8x1x32xf32> to vector<8x8x32xf32>
    %197 = arith.mulf %194, %196 : vector<8x8x32xf32>
    %cst_51 = arith.constant dense<0.000000e+00> : vector<8x8xf32>
    %198 = vector.multi_reduction <add>, %197, %cst_51 [2] : vector<8x8x32xf32> to vector<8x8xf32>
    %cst_52 = arith.constant dense<0xFF800000> : vector<8xf32>
    %199 = vector.multi_reduction <maximumf>, %198, %cst_52 [1] : vector<8x8xf32> to vector<8xf32>
    %200 = vector.shape_cast %199 : vector<8xf32> to vector<8x1xf32>
    %201 = vector.broadcast %200 : vector<8x1xf32> to vector<8x8xf32>
    %202 = arith.subf %198, %201 : vector<8x8xf32>
    %203 = math.exp %202 : vector<8x8xf32>
    %cst_53 = arith.constant dense<0.000000e+00> : vector<8xf32>
    %204 = vector.multi_reduction <add>, %203, %cst_53 [1] : vector<8x8xf32> to vector<8xf32>
    %205 = vector.shape_cast %204 : vector<8xf32> to vector<8x1xf32>
    %206 = tpu.reciprocal %205 {approx = true} : vector<8x1xf32> -> vector<8x1xf32>
    %207 = vector.broadcast %206 : vector<8x1xf32> to vector<8x8xf32>
    %208 = arith.mulf %203, %207 : vector<8x8xf32>
    %209 = vector.shape_cast %208 : vector<8x8xf32> to vector<8x8x1xf32>
    %210 = vector.broadcast %209 : vector<8x8x1xf32> to vector<8x8x32xf32>
    %211 = arith.mulf %187, %210 : vector<8x8x32xf32>
    %cst_54 = arith.constant dense<0.000000e+00> : vector<8x32xf32>
    %212 = vector.multi_reduction <add>, %211, %cst_54 [1] : vector<8x8x32xf32> to vector<8x32xf32>
    %213 = tpu.concatenate %212, %183 in 1 : vector<8x32xf32>, vector<8x32xf32> -> vector<8x64xf32>
    %c0_55 = arith.constant 0 : index
    %c0_56 = arith.constant 0 : index
    %214 = vector.load %arg7[%c0_55, %c0_56] : memref<64x32xf32, #tpu.memory_space<vmem>>, vector<64x32xf32>
    %cst_57 = arith.constant dense<0.000000e+00> : vector<8x32xf32>
    %215 = tpu.matmul %213, %214, %cst_57 {dimension_numbers = #tpu.dot_dimension_numbers<[1], [0], [0], [1], [0, 0, 1, 1], [], []>} : vector<8x64xf32>, vector<64x32xf32>, vector<8x32xf32> -> vector<8x32xf32>
    %c0_58 = arith.constant 0 : index
    %c0_59 = arith.constant 0 : index
    %216 = vector.load %arg8[%c0_58, %c0_59] : memref<1x32xf32, #tpu.memory_space<vmem>>, vector<1x32xf32>
    %217 = vector.broadcast %216 : vector<1x32xf32> to vector<8x32xf32>
    %218 = arith.addf %215, %217 : vector<8x32xf32>
    %219 = math.tanh %218 : vector<8x32xf32>
    %c0_60 = arith.constant 0 : index
    %c0_61 = arith.constant 0 : index
    %220 = vector.load %arg9[%c0_60, %c0_61] : memref<32x128xf32, #tpu.memory_space<vmem>>, vector<32x128xf32>
    %cst_62 = arith.constant dense<0.000000e+00> : vector<8x128xf32>
    %221 = tpu.matmul %219, %220, %cst_62 {dimension_numbers = #tpu.dot_dimension_numbers<[1], [0], [0], [1], [0, 0, 1, 1], [], []>} : vector<8x32xf32>, vector<32x128xf32>, vector<8x128xf32> -> vector<8x128xf32>
    %c0_63 = arith.constant 0 : index
    %c0_64 = arith.constant 0 : index
    %222 = vector.load %arg10[%c0_63, %c0_64] : memref<1x128xf32, #tpu.memory_space<vmem>>, vector<1x128xf32>
    %223 = vector.broadcast %222 : vector<1x128xf32> to vector<8x128xf32>
    %224 = arith.addf %221, %223 : vector<8x128xf32>
    %225 = math.tanh %224 : vector<8x128xf32>
    %c0_65 = arith.constant 0 : index
    %c0_66 = arith.constant 0 : index
    %226 = vector.load %arg11[%c0_65, %c0_66] : memref<128x3xf32, #tpu.memory_space<vmem>>, vector<128x3xf32>
    %cst_67 = arith.constant dense<0.000000e+00> : vector<8x3xf32>
    %227 = tpu.matmul %225, %226, %cst_67 {dimension_numbers = #tpu.dot_dimension_numbers<[1], [0], [0], [1], [0, 0, 1, 1], [], []>} : vector<8x128xf32>, vector<128x3xf32>, vector<8x3xf32> -> vector<8x3xf32>
    %c0_68 = arith.constant 0 : index
    %c0_69 = arith.constant 0 : index
    %228 = vector.load %arg12[%c0_68, %c0_69] : memref<1x3xf32, #tpu.memory_space<vmem>>, vector<1x3xf32>
    %229 = vector.broadcast %228 : vector<1x3xf32> to vector<8x3xf32>
    %230 = arith.addf %227, %229 : vector<8x3xf32>
    %c0_70 = arith.constant 0 : index
    %c0_71 = arith.constant 0 : index
    %231 = vector.load %arg13[%c0_70, %c0_71] : memref<8x3xf32, #tpu.memory_space<vmem>>, vector<8x3xf32>
    tpu.vector_store %arg13[%c0_70, %c0_71], %230 {strides = array<i32>} : memref<8x3xf32, #tpu.memory_space<vmem>>, vector<8x3xf32>,
    %c0_72 = arith.constant 0 : index
    %c0_73 = arith.constant 0 : index
    %232 = vector.load %arg14[%c0_72, %c0_73] : memref<8x8xf32, #tpu.memory_space<vmem>>, vector<8x8xf32>
    tpu.vector_store %arg14[%c0_72, %c0_73], %208 {strides = array<i32>} : memref<8x8xf32, #tpu.memory_space<vmem>>, vector<8x8xf32>,
    return
  }
  func.func @transform_0(%arg0: i32) -> (i32, i32, i32) {
    %c0_i32 = arith.constant 0 : i32
    %c0_i32_0 = arith.constant 0 : i32
    %c0_i32_1 = arith.constant 0 : i32
    return %arg0, %c0_i32, %c0_i32_0 : i32, i32, i32
  }
  func.func @transform_1(%arg0: i32) -> (i32, i32) {
    %c0_i32 = arith.constant 0 : i32
    %c0_i32_0 = arith.constant 0 : i32
    %c0_i32_1 = arith.constant 0 : i32
    return %c0_i32, %c0_i32_0 : i32, i32
  }
  func.func @transform_2(%arg0: i32) -> (i32, i32) {
    %c0_i32 = arith.constant 0 : i32
    %c0_i32_0 = arith.constant 0 : i32
    %c0_i32_1 = arith.constant 0 : i32
    return %c0_i32, %c0_i32_0 : i32, i32
  }
  func.func @transform_3(%arg0: i32) -> (i32, i32) {
    %c0_i32 = arith.constant 0 : i32
    %c0_i32_0 = arith.constant 0 : i32
    %c0_i32_1 = arith.constant 0 : i32
    return %c0_i32, %c0_i32_0 : i32, i32
  }
  func.func @transform_4(%arg0: i32) -> (i32, i32) {
    %c0_i32 = arith.constant 0 : i32
    %c0_i32_0 = arith.constant 0 : i32
    %c0_i32_1 = arith.constant 0 : i32
    return %c0_i32, %c0_i32_0 : i32, i32
  }
  func.func @transform_5(%arg0: i32) -> (i32, i32) {
    %c0_i32 = arith.constant 0 : i32
    %c0_i32_0 = arith.constant 0 : i32
    %c0_i32_1 = arith.constant 0 : i32
    return %c0_i32, %c0_i32_0 : i32, i32
  }
  func.func @transform_6(%arg0: i32) -> (i32, i32) {
    %c0_i32 = arith.constant 0 : i32
    %c0_i32_0 = arith.constant 0 : i32
    %c0_i32_1 = arith.constant 0 : i32
    return %c0_i32, %c0_i32_0 : i32, i32
  }
  func.func @transform_7(%arg0: i32) -> (i32, i32) {
    %c0_i32 = arith.constant 0 : i32
    %c0_i32_0 = arith.constant 0 : i32
    %c0_i32_1 = arith.constant 0 : i32
    return %c0_i32, %c0_i32_0 : i32, i32
  }
  func.func @transform_8(%arg0: i32) -> (i32, i32) {
    %c0_i32 = arith.constant 0 : i32
    %c0_i32_0 = arith.constant 0 : i32
    %c0_i32_1 = arith.constant 0 : i32
    return %c0_i32, %c0_i32_0 : i32, i32
  }
  func.func @transform_9(%arg0: i32) -> (i32, i32) {
    %c0_i32 = arith.constant 0 : i32
    %c0_i32_0 = arith.constant 0 : i32
    %c0_i32_1 = arith.constant 0 : i32
    return %c0_i32, %c0_i32_0 : i32, i32
  }
  func.func @transform_10(%arg0: i32) -> (i32, i32) {
    %c0_i32 = arith.constant 0 : i32
    %c0_i32_0 = arith.constant 0 : i32
    %c0_i32_1 = arith.constant 0 : i32
    return %c0_i32, %c0_i32_0 : i32, i32
  }
  func.func @transform_11(%arg0: i32) -> (i32, i32) {
    %c0_i32 = arith.constant 0 : i32
    %c0_i32_0 = arith.constant 0 : i32
    %c0_i32_1 = arith.constant 0 : i32
    return %c0_i32, %c0_i32_0 : i32, i32
  }
  func.func @transform_12(%arg0: i32) -> (i32, i32) {
    %c0_i32 = arith.constant 0 : i32
    %c0_i32_0 = arith.constant 0 : i32
    return %arg0, %c0_i32 : i32, i32
  }
  func.func @transform_13(%arg0: i32) -> (i32, i32) {
    %c0_i32 = arith.constant 0 : i32
    %c0_i32_0 = arith.constant 0 : i32
    return %arg0, %c0_i32 : i32, i32
  }
}

</mosaic_0001>

<bundles_post_ra>
// kernel: tpu_custom_call.1
= control target key start
LH: loop header
LB: loop body
LE: loop exit
PB: predicated region body
PF: predicated region fallthrough
CT: control target
= control target key end

     0   :  { %v6875_v2 = vmov 0.0   ;;  %vm6900_vm0 = vcmask 523264   ;;  %s6861_s0 = inlined_call_operand.vmem [shape: f32[8,8,64], index: 0, kind: input, shape index: {}]   ;;  %s6862_s1 = inlined_call_operand.vmem [shape: f32[64,128], index: 1, kind: input, shape index: {}]   ;;  %s6863_s2 = inlined_call_operand.vmem [shape: f32[32,128], index: 2, kind: input, shape index: {}]   ;;  %s6864_s3 = inlined_call_operand.vmem [shape: f32[1,128], index: 3, kind: input, shape index: {}]   ;;  %s6865_s4 = inlined_call_operand.vmem [shape: f32[32,32], index: 4, kind: input, shape index: {}]   ;;  %s6866_s5 = inlined_call_operand.vmem [shape: f32[1,32], index: 5, kind: input, shape index: {}]   ;;  %s6867_s6 = inlined_call_operand.vmem [shape: f32[64,32], index: 6, kind: input, shape index: {}]   ;;  %s6868_s7 = inlined_call_operand.vmem [shape: f32[1,32], index: 7, kind: input, shape index: {}]   ;;  %s6869_s8 = inlined_call_operand.vmem [shape: f32[32,128], index: 8, kind: input, shape index: {}]   ;;  %s6870_s9 = inlined_call_operand.vmem [shape: f32[1,128], index: 9, kind: input, shape index: {}]   ;;  %s6871_s10 = inlined_call_operand.vmem [shape: f32[128,3], index: 10, kind: input, shape index: {}]   ;;  %s6872_s11 = inlined_call_operand.vmem [shape: f32[1,3], index: 11, kind: input, shape index: {}]   ;;  %s6873_s12 = inlined_call_operand.vmem [shape: f32[8,3], index: 12, kind: output, shape index: {0}]   ;;  %s6874_s13 = inlined_call_operand.hbm [shape: f32[8,8], index: 13, kind: output, shape index: {1}]  }
   0x1   :  { %v59_v0 = vld [vmem:[%s6862_s1 + $0x38] sm:$0xff]  ;;  %v58_v1 = vld [vmem:[%s6862_s1 + $0x30] sm:$0xff]  ;;  %4297 = vmatprep.subr.mxu1 %v6875_v2  ;;  %v57_v4 = vld [vmem:[%s6862_s1 + $0x28] sm:$0xff] }
   0x2   :  { %4269 = vmatprep.subr.mxu0 %v59_v0  ;;  %v5124_v3 = vld [vmem:[%s6863_s2 + $0x18] sm:$0xff]  ;;  %v5133_v5 = vld [vmem:[%s6863_s2 + $0x10] sm:$0xff]  ;;  %v5139_v6 = vld [vmem:[%s6863_s2 + $0x8] sm:$0xff] }
   0x3   :  { %4270 = vmatpush3.msra.mxu0 %v59_v0  ;;  %4298 = vmatpush3.msra.mxu1 %v5124_v3  ;;  %v56_v7 = vld [vmem:[%s6862_s1 + $0x20] sm:$0xff]  ;;  %v55_v9 = vld [vmem:[%s6862_s1 + $0x18] sm:$0xff] }
   0x4   :  { %4271 = vmatprep.subr.mxu0 %v58_v1  ;;  %4299 = vmatprep.subr.mxu1 %v6875_v2  ;;  %v44_v8 = vld [vmem:[%s6861_s0] sm:$0xff] }
   0x5   :  { %4272 = vmatpush3.msra.mxu0 %v58_v1  ;;  %4300 = vmatpush3.msra.mxu1 %v5133_v5  ;;  %v5156_v10 = vld [vmem:[%s6863_s2] sm:$0xff] }
   0x6   :  { %4273 = vmatprep.subr.mxu0 %v57_v4  ;;  %4301 = vmatprep.subr.mxu1 %v6875_v2 }
   0x7   :  { %4274 = vmatpush3.msra.mxu0 %v57_v4  ;;  %4302 = vmatpush3.msra.mxu1 %v5139_v6 }
   0x8   :  { %19 = vsyncpa [#allocation4], 0  ;;  %4275 = vmatprep.subr.mxu0 %v56_v7  ;;  %4303 = vmatprep.subr.mxu1 %v6875_v2  ;;  %v54_v11 = vld [vmem:[%s6862_s1 + $0x10] sm:$0xff]  ;;  %v53_v12 = vld [vmem:[%s6862_s1 + $0x8] sm:$0xff]  ;;  %vm5039_vm1 = vmmov 0   ;;  %vm533_vm2 = vcmask 1041409  }
   0x9   :  { %4276 = vmatpush3.msra.mxu0 %v56_v7  ;;  %4285 = vmatprep.mubr.msk.f32.mxu0 %vm6900_vm0, %v44_v8  ;;  %v52_v13 = vld [vmem:[%s6862_s1] sm:$0xff]  ;;  %v45_v14 = vld [vmem:[%s6861_s0 + $0x8] sm:$0xff]  ;;  %v46_v15 = vld [vmem:[%s6861_s0 + $0x10] sm:$0xff]  ;;  %vm536_vm3 = vcmask 1042434   ;;  %vm539_vm4 = vcmask 1043459   ;;  %vm542_vm5 = vcmask 1044484  }
   0xa   :  { %4277 = vmatprep.subr.mxu0 %v55_v9  ;;  %4304 = vmatpush3.msra.mxu1 %v5156_v10  ;;  %v47_v16 = vld [vmem:[%s6861_s0 + $0x18] sm:$0xff]  ;;  %v48_v17 = vld [vmem:[%s6861_s0 + $0x20] sm:$0xff]  ;;  %v49_v18 = vld [vmem:[%s6861_s0 + $0x28] sm:$0xff]  ;;  %vm545_vm6 = vcmask 1045509   ;;  %vm548_vm7 = vcmask 1046534   ;;  %vm6901_vm8 = vcmask 1047559  }
   0xb   :  { %4278 = vmatpush3.msra.mxu0 %v55_v9  ;;  %4305 = vmatprep.mubr.msk.f32.mxu1 %vm5039_vm1, %v6875_v2  ;;  %v50_v19 = vld [vmem:[%s6861_s0 + $0x30] sm:$0xff]  ;;  %v51_v20 = vld [vmem:[%s6861_s0 + $0x38] sm:$0xff]  ;;  %v4076_v23 = vld [vmem:[%s6864_s3] ss:$0 sm:$0xff]  ;;  %s5040_s0 = smov 64   ;;  %s5041_s3 = smov 32  }
   0xc   :  { %4279 = vmatprep.subr.mxu0 %v54_v11  ;;  %4306 = vmatmul.mubr.f32.vlgmr.msra.gmra.mxu1 %v6875_v2  ;;  %vm201_vm9 = vcmask 261120   ;;  %vm523_vm10 = vcmask 253952   ;;  %vm899_vm11 = vcmask 254977   ;;  %vm1268_vm12 = vcmask 256002   ;;  %s5043_s19 = smov [#allocation3]  }
   0xd   :  { %4280 = vmatpush3.msra.mxu0 %v54_v11  ;;  %4308 = vmatprep.subr.mxu1 %v6875_v2  ;;  %vm2006_vm13 = vcmask 258052   ;;  %vm2744_vm14 = vcmask 260102   ;;  %vm1637_vm15 = vcmask 257027   ;;  %s4066_s20 = sshll.u32 %s5043_s19, 4  ;;  %s4067_s20 = int_to_ptr.vmem [resolvable:$true] %s4066_s20 }
   0xe   :  { %4281 = vmatprep.subr.mxu0 %v53_v12  ;;  %4309 = vmatpush3.msra.mxu1 %v5124_v3  ;;  %s5016_s1 = scalar_lea.vmem %s4067_s20, 128  ;;  %p5021_p1 = scmp.lt.s32.totalorder %s4067_s20, %s4067_s20 }
   0xf   :  { %4282 = vmatpush3.msra.mxu0 %v53_v12  ;;  %4310 = vmatprep.subr.mxu1 %v6875_v2  ;;  %p5017_p0 = scmp.ne.s32.totalorder %s4067_s20, %s5016_s1  ;;  %p5022_p2 = scmp.lt.s32.totalorder %s5016_s1, %s5016_s1 }
  0x10   :  { %4283 = vmatprep.subr.mxu0 %v52_v13  ;;  %4311 = vmatpush3.msra.mxu1 %v5133_v5 }
  0x11   :  { %4284 = vmatpush3.msra.mxu0 %v52_v13  ;;  %4312 = vmatprep.subr.mxu1 %v6875_v2  ;;  %p5023_p3 = por %p5022_p2, %p5021_p1 }
  0x12   :  { %4286 = vmatmul.mubr.msk.f32.vlgmr.msra.gmra.mxu0 %vm6900_vm0, %v45_v14  ;;  %4313 = vmatpush3.msra.mxu1 %v5139_v6 }
  0x13   :  { %4288 = vmatprep.mubr.msk.f32.mxu0 %vm6900_vm0, %v46_v15  ;;  %4314 = vmatprep.subr.mxu1 %v6875_v2  ;;  %p5024_p4 = pnand %p5023_p3, %p5017_p0 }
  0x14   :  { %4315 = vmatpush3.msra.mxu1 %v5156_v10  ;;  %4316 = vmatprep.mubr.msk.f32.mxu1 %vm5039_vm1, %v6875_v2 }
  0x15   :  { %4319 = vmatprep.subr.mxu1 %v6875_v2  ;;  %4330 = vmatprep.subr.mxu0 %v6875_v2 }
  0x16   :  { %4289 = vmatmul.mubr.msk.f32.gmra.mxu0 %vm6900_vm0, %v47_v16 }
  0x17   :  { %4291 = vmatprep.mubr.msk.f32.mxu0 %vm6900_vm0, %v48_v17  ;;  %4331 = vmatpush3.msra.mxu0 %v5124_v3 }
  0x18   :  { %4332 = vmatprep.subr.mxu0 %v6875_v2 }
  0x19   :  { %4333 = vmatpush3.msra.mxu0 %v5133_v5 }
  0x1a   :  { %4292 = vmatmul.mubr.msk.f32.gmra.mxu0 %vm6900_vm0, %v49_v18  ;;  %4334 = vmatprep.subr.mxu0 %v6875_v2 }
  0x1b   :  { %4294 = vmatprep.mubr.msk.f32.mxu0 %vm6900_vm0, %v50_v19  ;;  %4335 = vmatpush3.msra.mxu0 %v5139_v6 }
  0x1c   :  { %4336 = vmatprep.subr.mxu0 %v6875_v2 }
  0x1d   :  { %4337 = vmatpush3.msra.mxu0 %v5156_v10 }
  0x1e   :  { %4295 = vmatmul.mubr.msk.f32.gmra.mxu0 %vm6900_vm0, %v51_v20  ;;  %4352 = vmatprep.subr.mxu0 %v6875_v2  ;;  %vm2375_vm0 = vcmask 259077  }
  0x1f   :  { %4338 = vmatprep.mubr.msk.f32.mxu0 %vm5039_vm1, %v6875_v2 }
  0xcc   :  { %v271_v21 = vpop.f32.mrf.mxu1 }
  0xcd   :  { %v276_v24 = vrot.slane %v271_v21, 1  ;;  %v278_v28 = vrot.slane %v271_v21, 3  ;;  %v277_v35 = vrot.slane %v271_v21, 2  ;;  %v280_v39 = vrot.slane %v271_v21, 5 }
  0xce   :  { %v4307_v22 = vpop.f32.mrf.mxu1  ;;  %v279_v43 = vrot.slane %v271_v21, 4  ;;  %v282_v47 = vrot.slane %v271_v21, 7  ;;  %v281_v51 = vrot.slane %v271_v21, 6 }
  0xd2   :  { %v4287_v25 = vpop.f32.mrf.mxu0 }
  0xd3   :  { %v5226_v26 = vadd.f32 %v4287_v25, %v4076_v23 }
  0xd4   :  { %v158_v27 = vpop.f32.mrf.mxu0 }
  0xd5   :  { %v5228_v29 = vadd.f32 %v4076_v23, %v158_v27  ;;  %v292_v30 = vadd.f32 %v276_v24, %v5226_v26 }
  0xd6   :  { %v4290_v31 = vpop.f32.mrf.mxu0 }
  0xd7   :  { %v5231_v32 = vadd.f32 %v4290_v31, %v4076_v23  ;;  %4478 = vtanh.f32 %v292_v30  ;;  %v291_v33 = vadd.f32 %v271_v21, %v5228_v29  ;;  %v4086_v63 = vmul.f32 -1.442695, %v292_v30 }
  0xd8   :  { %v168_v34 = vpop.f32.mrf.mxu0 }
  0xd9   :  { %v294_v36 = vadd.f32 %v278_v28, %v5231_v32  ;;  %v5235_v37 = vadd.f32 %v4076_v23, %v168_v34  ;;  %4480 = vtanh.f32 %v291_v33  ;;  %v4085_v0 = vmul.f32 -1.442695, %v291_v33 }
  0xda   :  { %v4293_v38 = vpop.f32.mrf.mxu0 }
  0xdb   :  { %v293_v40 = vadd.f32 %v277_v35, %v5235_v37  ;;  %v5238_v41 = vadd.f32 %v4293_v38, %v4076_v23  ;;  %4482 = vtanh.f32 %v294_v36  ;;  %v4088_v1 = vmul.f32 -1.442695, %v294_v36 }
  0xdc   :  { %v178_v42 = vpop.f32.mrf.mxu0 }
  0xdd   :  { %v296_v44 = vadd.f32 %v280_v39, %v5238_v41  ;;  %v5241_v45 = vadd.f32 %v4076_v23, %v178_v42  ;;  %4484 = vtanh.f32 %v293_v40  ;;  %v4087_v4 = vmul.f32 -1.442695, %v293_v40 }
  0xde   :  { %v4296_v46 = vpop.f32.mrf.mxu0 }
  0xdf   :  { %v295_v48 = vadd.f32 %v279_v43, %v5241_v45  ;;  %v5244_v49 = vadd.f32 %v4296_v46, %v4076_v23  ;;  %4486 = vtanh.f32 %v296_v44  ;;  %v4090_v8 = vmul.f32 -1.442695, %v296_v44 }
  0xe0   :  { %v188_v50 = vpop.f32.mrf.mxu0 }
  0xe1   :  { %v298_v52 = vadd.f32 %v282_v47, %v5244_v49  ;;  %v5247_v53 = vadd.f32 %v4076_v23, %v188_v50  ;;  %4488 = vtanh.f32 %v295_v48  ;;  %v4089_v7 = vmul.f32 -1.442695, %v295_v48 }
  0xe3   :  { %v297_v54 = vadd.f32 %v281_v51, %v5247_v53  ;;  %4490 = vtanh.f32 %v298_v52  ;;  %v4092_v12 = vmul.f32 -1.442695, %v298_v52 }
  0xe4   :  { %v4479_v55 = vpop.eup %4478 }
  0xe5   :  { %373 = vrot.lane.b32.xlu0 %v4479_v55, %s5040_s0  ;;  %4492 = vtanh.f32 %v297_v54  ;;  %v4091_v9 = vmul.f32 -1.442695, %v297_v54 }
  0xe6   :  { %v4481_v56 = vpop.eup %4480  ;;  %4494 = vpow2.f32 %v4086_v63 }
  0xe7   :  { %371 = vrot.lane.b32.xlu1 %v4481_v56, %s5040_s0  ;;  %4496 = vpow2.f32 %v4085_v0 }
  0xe8   :  { %v4483_v57 = vpop.eup %4482  ;;  %4498 = vpow2.f32 %v4088_v1 }
  0xe9   :  { %4500 = vpow2.f32 %v4087_v4 }
  0xea   :  { %v4485_v58 = vpop.eup %4484  ;;  %4502 = vpow2.f32 %v4089_v7 }
  0xeb   :  { %375 = vrot.lane.b32.xlu0 %v4485_v58, %s5040_s0  ;;  %377 = vrot.lane.b32.xlu1 %v4483_v57, %s5040_s0  ;;  %4504 = vpow2.f32 %v4090_v8 }
  0xec   :  { %v4487_v59 = vpop.eup %4486  ;;  %4506 = vpow2.f32 %v4091_v9 }
  0xed   :  { %4508 = vpow2.f32 %v4092_v12 }
  0xee   :  { %v4489_v60 = vpop.eup %4488 }
  0xef   :  { %379 = vrot.lane.b32.xlu0 %v4489_v60, %s5040_s0  ;;  %381 = vrot.lane.b32.xlu1 %v4487_v59, %s5040_s0 }
  0xf0   :  { %v4491_v61 = vpop.eup %4490 }
  0xf2   :  { %v4493_v62 = vpop.eup %4492 }
  0xf3   :  { %383 = vrot.lane.b32.xlu0 %v4493_v62, %s5040_s0  ;;  %385 = vrot.lane.b32.xlu1 %v4491_v61, %s5040_s0  ;;  %v4495_v11 = vpop.eup %4494 }
  0xf4   :  { %v324_v13 = vadd.f32 1.0, %v4495_v11  ;;  %v4497_v14 = vpop.eup %4496 }
  0xf5   :  { %v4499_v15 = vpop.eup %4498  ;;  %v323_v16 = vadd.f32 1.0, %v4497_v14 }
  0xf6   :  { %4510 = vrcp.f32 %v324_v13  ;;  %v4501_v17 = vpop.eup %4500  ;;  %v326_v18 = vadd.f32 1.0, %v4499_v15 }
  0xf7   :  { %v4503_v19 = vpop.eup %4502  ;;  %4512 = vrcp.f32 %v323_v16  ;;  %v325_v20 = vadd.f32 1.0, %v4501_v17 }
  0xf8   :  { %v4505_v21 = vpop.eup %4504  ;;  %4514 = vrcp.f32 %v326_v18  ;;  %v327_v22 = vadd.f32 1.0, %v4503_v19 }
  0xf9   :  { %v4507_v23 = vpop.eup %4506  ;;  %4516 = vrcp.f32 %v325_v20  ;;  %v328_v24 = vadd.f32 1.0, %v4505_v21 }
  0xfa   :  { %4518 = vrcp.f32 %v327_v22  ;;  %v329_v25 = vadd.f32 1.0, %v4507_v23  ;;  %v4509_v27 = vpop.eup %4508 }
  0xfb   :  { %4520 = vrcp.f32 %v328_v24  ;;  %v330_v33 = vadd.f32 1.0, %v4509_v27 }
  0xfc   :  { %4522 = vrcp.f32 %v329_v25 }
  0xfd   :  { %4524 = vrcp.f32 %v330_v33 }
 0x103   :  { %v5258_v28 = vpop.eup %4510 }
 0x104   :  { %v5262_v35 = vpop.eup %4512  ;;  %v356_v60 = vmul.f32 0.0, %v5258_v28 }
 0x105   :  { %v5265_v38 = vpop.eup %4514  ;;  %v355_v63 = vmul.f32 0.0, %v5262_v35 }
 0x106   :  { %v5269_v43 = vpop.eup %4516  ;;  %v358_v4 = vmul.f32 0.0, %v5265_v38 }
 0x107   :  { %v5272_v44 = vpop.eup %4518  ;;  %v357_v9 = vmul.f32 0.0, %v5269_v43 }
 0x108   :  { %v5276_v51 = vpop.eup %4520  ;;  %v359_v11 = vmul.f32 0.0, %v5272_v44 }
 0x109   :  { %v5280_v52 = vpop.eup %4522  ;;  %v360_v16 = vmul.f32 0.0, %v5276_v51 }
 0x10a   :  { %v5286_v58 = vpop.eup %4524  ;;  %v361_v17 = vmul.f32 0.0, %v5280_v52 }
 0x10b   :  { %v362_v23 = vmul.f32 0.0, %v5286_v58 }
 0x157   :  { %v374_v30 = vpop.permute.xlu0 %373 }
 0x158   :  { %v396_v31 = vmul.f32 %v5258_v28, %v374_v30 }
 0x159   :  { %v372_v34 = vpop.permute.xlu1 %371 }
 0x15a   :  { %413 = vrot.lane.b32.xlu0 %v396_v31, %s5041_s3  ;;  %v395_v36 = vmul.f32 %v5262_v35, %v372_v34 }
 0x15d   :  { %v376_v39 = vpop.permute.xlu0 %375  ;;  %v378_v40 = vpop.permute.xlu1 %377 }
 0x15e   :  { %411 = vrot.lane.b32.xlu0 %v395_v36, %s5041_s3  ;;  %v398_v42 = vmul.f32 %v5265_v38, %v378_v40  ;;  %v397_v48 = vmul.f32 %v5269_v43, %v376_v39 }
 0x160   :  { %417 = vrot.lane.b32.xlu1 %v398_v42, %s5041_s3 }
 0x161   :  { %v380_v46 = vpop.permute.xlu0 %379  ;;  %v382_v47 = vpop.permute.xlu1 %381 }
 0x162   :  { %v399_v50 = vmul.f32 %v5272_v44, %v380_v46  ;;  %v400_v55 = vmul.f32 %v5276_v51, %v382_v47 }
 0x164   :  { %415 = vrot.lane.b32.xlu1 %v397_v48, %s5041_s3  ;;  %419 = vrot.lane.b32.xlu0 %v399_v50, %s5041_s3 }
 0x165   :  { %v384_v54 = vpop.permute.xlu0 %383  ;;  %v386_v57 = vpop.permute.xlu1 %385 }
 0x166   :  { %v401_v56 = vmul.f32 %v5280_v52, %v384_v54  ;;  %v402_v59 = vmul.f32 %v5286_v58, %v386_v57 }
 0x168   :  { %421 = vrot.lane.b32.xlu1 %v400_v55, %s5041_s3  ;;  %423 = vrot.lane.b32.xlu0 %v401_v56, %s5041_s3 }
 0x16c   :  { %425 = vrot.lane.b32.xlu1 %v402_v59, %s5041_s3 }
 0x1cc   :  { %v414_v61 = vpop.permute.xlu0 %413 }
 0x1cd   :  { %v5291_v62 = vadd.f32 %v414_v61, %v356_v60 }
 0x1cf   :  { %4526 = vtanh.f32 %v5291_v62 }
 0x1d0   :  { %v412_v0 = vpop.permute.xlu0 %411 }
 0x1d1   :  { %v5295_v1 = vadd.f32 %v412_v0, %v355_v63 }
 0x1d2   :  { %v418_v7 = vpop.permute.xlu1 %417 }
 0x1d3   :  { %4528 = vtanh.f32 %v5295_v1  ;;  %v5299_v8 = vadd.f32 %v418_v7, %v358_v4 }
 0x1d5   :  { %4530 = vtanh.f32 %v5299_v8 }
 0x1d6   :  { %v416_v12 = vpop.permute.xlu1 %415  ;;  %v420_v13 = vpop.permute.xlu0 %419 }
 0x1d7   :  { %v5304_v14 = vadd.f32 %v416_v12, %v357_v9  ;;  %v5306_v15 = vadd.f32 %v420_v13, %v359_v11 }
 0x1d9   :  { %4532 = vtanh.f32 %v5304_v14 }
 0x1da   :  { %4534 = vtanh.f32 %v5306_v15  ;;  %v422_v18 = vpop.permute.xlu1 %421  ;;  %v424_v19 = vpop.permute.xlu0 %423 }
 0x1db   :  { %v5312_v21 = vadd.f32 %v422_v18, %v360_v16  ;;  %v5314_v22 = vadd.f32 %v424_v19, %v361_v17 }
 0x1dc   :  { %v4527_v20 = vpop.eup %4526 }
 0x1dd   :  { %461 = vrot.lane.b32.xlu0 %v4527_v20, %s5040_s0  ;;  %4536 = vtanh.f32 %v5312_v21 }
 0x1de   :  { %4538 = vtanh.f32 %v5314_v22  ;;  %v426_v24 = vpop.permute.xlu1 %425 }
 0x1df   :  { %v5320_v27 = vadd.f32 %v426_v24, %v362_v23 }
 0x1e0   :  { %v4529_v25 = vpop.eup %4528 }
 0x1e1   :  { %459 = vrot.lane.b32.xlu0 %v4529_v25, %s5040_s0  ;;  %4540 = vtanh.f32 %v5320_v27 }
 0x1e2   :  { %v4531_v30 = vpop.eup %4530 }
 0x1e3   :  { %465 = vrot.lane.b32.xlu1 %v4531_v30, %s5040_s0 }
 0x1e6   :  { %v4533_v31 = vpop.eup %4532 }
 0x1e7   :  { %v4535_v33 = vpop.eup %4534  ;;  %463 = vrot.lane.b32.xlu1 %v4533_v31, %s5040_s0 }
 0x1e8   :  { %467 = vrot.lane.b32.xlu0 %v4535_v33, %s5040_s0 }
 0x1ea   :  { %v4537_v34 = vpop.eup %4536 }
 0x1eb   :  { %v4539_v36 = vpop.eup %4538  ;;  %469 = vrot.lane.b32.xlu1 %v4537_v34, %s5040_s0 }
 0x1ec   :  { %471 = vrot.lane.b32.xlu0 %v4539_v36, %s5040_s0 }
 0x1ee   :  { %v4541_v39 = vpop.eup %4540 }
 0x1ef   :  { %473 = vrot.lane.b32.xlu1 %v4541_v39, %s5040_s0 }
 0x24f   :  { %v462_v40 = vpop.permute.xlu0 %461 }
 0x250   :  { %v5331_v47 = vmul.f32 %v5258_v28, %v462_v40 }
 0x252   :  { %v532_v57 = vrot.slane %v5331_v47, 7 }
 0x253   :  { %v460_v46 = vpop.permute.xlu0 %459 }
 0x254   :  { %v5334_v48 = vmul.f32 %v5262_v35, %v460_v46 }
 0x255   :  { %v466_v42 = vpop.permute.xlu1 %465 }
 0x256   :  { %v5337_v50 = vmul.f32 %v5265_v38, %v466_v42  ;;  %v534_v35 = vsel %vm533_vm2, %v532_v57, %v5334_v48 }
 0x258   :  { %v538_v38 = vrot.slane %v5337_v50, 5 }
 0x259   :  { %v464_v54 = vpop.permute.xlu1 %463 }
 0x25a   :  { %v5340_v55 = vmul.f32 %v5269_v43, %v464_v54  ;;  %v468_v56 = vpop.permute.xlu0 %467 }
 0x25b   :  { %v5344_v59 = vmul.f32 %v5272_v44, %v468_v56 }
 0x25c   :  { %v535_v28 = vrot.slane %v5340_v55, 6 }
 0x25d   :  { %v470_v60 = vpop.permute.xlu1 %469  ;;  %v541_v61 = vrot.slane %v5344_v59, 4 }
 0x25e   :  { %v537_v43 = vsel %vm536_vm3, %v535_v28, %v534_v35  ;;  %v5353_v63 = vmul.f32 %v5276_v51, %v470_v60  ;;  %v472_v0 = vpop.permute.xlu0 %471 }
 0x25f   :  { %v540_v44 = vsel %vm539_vm4, %v538_v38, %v537_v43  ;;  %v5357_v4 = vmul.f32 %v5280_v52, %v472_v0 }
 0x260   :  { %6902 = vst [vmem:[#allocation6_spill] sm:$0xff] %v5353_v63  ;;  %v543_v7 = vsel %vm542_vm5, %v541_v61, %v540_v44  ;;  %v544_v9 = vrot.slane %v5353_v63, 3 }
 0x261   :  { %6903 = vst [vmem:[#allocation7_spill] sm:$0xff] %v5357_v4  ;;  %v547_v11 = vrot.slane %v5357_v4, 2  ;;  %v474_v12 = vpop.permute.xlu1 %473 }
 0x262   :  { %v5363_v13 = vmul.f32 %v5286_v58, %v474_v12  ;;  %v546_v51 = vsel %vm545_vm6, %v544_v9, %v543_v7 }
 0x263   :  { %v549_v52 = vsel %vm548_vm7, %v547_v11, %v546_v51 }
 0x264   :  { %6904 = vst [vmem:[#allocation8_spill] sm:$0xff] %v5363_v13  ;;  %v550_v16 = vrot.slane %v5363_v13, 1 }
 0x266   :  { %v552_v17 = vsel %vm6901_vm8, %v550_v16, %v549_v52 }
 0x267   :  { %553 = vrot.lane.b32.xlu0 %v552_v17, %s5041_s3 }
 0x2d9   :  { %v554_v18 = vpop.permute.xlu0 %553 }
 0x2da   :  { %4317 = vmatmul.mubr.msk.f32.vlgmr.msra.gmra.mxu1 %vm201_vm9, %v554_v18 }
 0x2db   :  { %4320 = vmatpush3.msra.mxu1 %v5124_v3  ;;  %4327 = vmatprep.mubr.msk.f32.mxu1 %vm5039_vm1, %v6875_v2 }
 0x2dc   :  { %4321 = vmatprep.subr.mxu1 %v6875_v2 }
 0x2dd   :  { %4322 = vmatpush3.msra.mxu1 %v5133_v5 }
 0x2de   :  { %4323 = vmatprep.subr.mxu1 %v6875_v2 }
 0x2df   :  { %4324 = vmatpush3.msra.mxu1 %v5139_v6 }
 0x2e0   :  { %4325 = vmatprep.subr.mxu1 %v6875_v2 }
 0x2e1   :  { %4326 = vmatpush3.msra.mxu1 %v5156_v10 }
 0x2e2   :  { %4341 = vmatprep.subr.mxu1 %v6875_v2 }
 0x39a   :  { %v623_v58 = vpop.f32.mrf.mxu1 }
 0x39b   :  { %v629_v20 = vrot.slane %v623_v58, 1  ;;  %v628_v23 = vrot.slane %v623_v58, 7  ;;  %v644_v24 = vadd.f32 %v623_v58, %v5226_v26  ;;  %v630_v25 = vrot.slane %v623_v58, 2 }
 0x39c   :  { %v4318_v19 = vpop.f32.mrf.mxu1  ;;  %v631_v31 = vrot.slane %v623_v58, 3  ;;  %v632_v34 = vrot.slane %v623_v58, 4  ;;  %v633_v39 = vrot.slane %v623_v58, 5  ;;  %v634_v42 = vrot.slane %v623_v58, 6 }
 0x39d   :  { %v645_v30 = vadd.f32 %v629_v20, %v5235_v37  ;;  %v643_v33 = vadd.f32 %v628_v23, %v5228_v29  ;;  %4542 = vtanh.f32 %v644_v24  ;;  %v646_v36 = vadd.f32 %v630_v25, %v5231_v32 }
 0x39e   :  { %v647_v40 = vadd.f32 %v631_v31, %v5241_v45  ;;  %v648_v46 = vadd.f32 %v632_v34, %v5238_v41  ;;  %v649_v54 = vadd.f32 %v633_v39, %v5247_v53  ;;  %v650_v56 = vadd.f32 %v634_v42, %v5244_v49 }
 0x39f   :  { %4544 = vtanh.f32 %v645_v30  ;;  %v4095_v44 = vmul.f32 -1.442695, %v644_v24  ;;  %v4096_v7 = vmul.f32 -1.442695, %v645_v30  ;;  %v4094_v9 = vmul.f32 -1.442695, %v643_v33 }
 0x3a0   :  { %4546 = vtanh.f32 %v643_v33  ;;  %v4097_v11 = vmul.f32 -1.442695, %v646_v36  ;;  %v4098_v12 = vmul.f32 -1.442695, %v647_v40  ;;  %v4099_v51 = vmul.f32 -1.442695, %v648_v46 }
 0x3a1   :  { %4548 = vtanh.f32 %v646_v36  ;;  %v4100_v16 = vmul.f32 -1.442695, %v649_v54  ;;  %v4101_v52 = vmul.f32 -1.442695, %v650_v56 }
 0x3a2   :  { %4550 = vtanh.f32 %v647_v40 }
 0x3a3   :  { %4552 = vtanh.f32 %v648_v46 }
 0x3a4   :  { %4554 = vtanh.f32 %v649_v54 }
 0x3a5   :  { %4556 = vtanh.f32 %v650_v56 }
 0x3a6   :  { %4558 = vpow2.f32 %v4095_v44 }
 0x3a7   :  { %4560 = vpow2.f32 %v4096_v7 }
 0x3a8   :  { %4562 = vpow2.f32 %v4094_v9 }
 0x3a9   :  { %4564 = vpow2.f32 %v4097_v11 }
 0x3aa   :  { %v4543_v57 = vpop.eup %4542  ;;  %4566 = vpow2.f32 %v4098_v12 }
 0x3ab   :  { %749 = vrot.lane.b32.xlu1 %v4543_v57, %s5040_s0  ;;  %4568 = vpow2.f32 %v4099_v51 }
 0x3ac   :  { %v4545_v28 = vpop.eup %4544  ;;  %4570 = vpow2.f32 %v4100_v16 }
 0x3ad   :  { %751 = vrot.lane.b32.xlu0 %v4545_v28, %s5040_s0  ;;  %v4547_v35 = vpop.eup %4546  ;;  %4572 = vpow2.f32 %v4101_v52 }
 0x3ae   :  { %v4549_v38 = vpop.eup %4548 }
 0x3af   :  { %747 = vrot.lane.b32.xlu1 %v4547_v35, %s5040_s0  ;;  %v4551_v60 = vpop.eup %4550 }
 0x3b0   :  { %v4553_v43 = vpop.eup %4552 }
 0x3b1   :  { %753 = vrot.lane.b32.xlu0 %v4549_v38, %s5040_s0  ;;  %v4555_v61 = vpop.eup %4554 }
 0x3b2   :  { %v4557_v0 = vpop.eup %4556 }
 0x3b3   :  { %755 = vrot.lane.b32.xlu1 %v4551_v60, %s5040_s0  ;;  %v4559_v17 = vpop.eup %4558 }
 0x3b4   :  { %v4561_v18 = vpop.eup %4560  ;;  %v676_v58 = vadd.f32 1.0, %v4559_v17 }
 0x3b5   :  { %757 = vrot.lane.b32.xlu0 %v4553_v43, %s5040_s0  ;;  %v4563_v19 = vpop.eup %4562  ;;  %v677_v20 = vadd.f32 1.0, %v4561_v18 }
 0x3b6   :  { %v4565_v23 = vpop.eup %4564  ;;  %v675_v24 = vadd.f32 1.0, %v4563_v19  ;;  %4574 = vrcp.f32 %v676_v58 }
 0x3b7   :  { %759 = vrot.lane.b32.xlu1 %v4555_v61, %s5040_s0  ;;  %v4567_v25 = vpop.eup %4566  ;;  %v678_v30 = vadd.f32 1.0, %v4565_v23  ;;  %4576 = vrcp.f32 %v677_v20  ;;  %v716_v23 = vrot.slane %v5291_v62, 7 }
 0x3b8   :  { %v4569_v31 = vpop.eup %4568  ;;  %v679_v33 = vadd.f32 1.0, %v4567_v25  ;;  %4578 = vrcp.f32 %v675_v24  ;;  %v717_v24 = vrot.slane %v5304_v14, 7 }
 0x3b9   :  { %761 = vrot.lane.b32.xlu0 %v4557_v0, %s5040_s0  ;;  %v4571_v34 = vpop.eup %4570  ;;  %v680_v36 = vadd.f32 1.0, %v4569_v31  ;;  %4580 = vrcp.f32 %v678_v30 }
 0x3ba   :  { %v4573_v39 = vpop.eup %4572  ;;  %v681_v40 = vadd.f32 1.0, %v4571_v34  ;;  %4582 = vrcp.f32 %v679_v33  ;;  %v715_v33 = vrot.slane %v5295_v1, 7 }
 0x3bb   :  { %v682_v42 = vadd.f32 1.0, %v4573_v39  ;;  %4584 = vrcp.f32 %v680_v36  ;;  %v718_v39 = vrot.slane %v5299_v8, 7 }
 0x3bc   :  { %4586 = vrcp.f32 %v681_v40 }
 0x3bd   :  { %4588 = vrcp.f32 %v682_v42 }
 0x3c3   :  { %v5397_v46 = vpop.eup %4574 }
 0x3c4   :  { %v5399_v56 = vpop.eup %4576  ;;  %v732_v25 = vmul.f32 %v5397_v46, %v716_v23 }
 0x3c5   :  { %v5404_v38 = vpop.eup %4578  ;;  %v733_v31 = vmul.f32 %v5399_v56, %v717_v24 }
 0x3c6   :  { %v5407_v43 = vpop.eup %4580  ;;  %v731_v62 = vmul.f32 %v5404_v38, %v715_v33 }
 0x3c7   :  { %v5412_v7 = vpop.eup %4582  ;;  %v734_v42 = vmul.f32 %v5407_v43, %v718_v39 }
 0x3c8   :  { %v5415_v11 = vpop.eup %4584 }
 0x3c9   :  { %v5420_v52 = vpop.eup %4586 }
 0x3ca   :  { %v5423_v18 = vpop.eup %4588 }
 0x41d   :  { %v750_v54 = vpop.permute.xlu1 %749 }
 0x41e   :  { %v772_v57 = vmul.f32 %v5397_v46, %v750_v54  ;;  %v719_v54 = vrot.slane %v5306_v15, 7 }
 0x41f   :  { %v752_v28 = vpop.permute.xlu0 %751 }
 0x420   :  { %v773_v35 = vmul.f32 %v5399_v56, %v752_v28  ;;  %789 = vrot.lane.b32.xlu1 %v772_v57, %s5041_s3  ;;  %v720_v28 = vrot.slane %v5312_v21, 7  ;;  %v735_v8 = vmul.f32 %v5412_v7, %v719_v54 }
 0x421   :  { %v748_v60 = vpop.permute.xlu1 %747 }
 0x422   :  { %791 = vrot.lane.b32.xlu0 %v773_v35, %s5041_s3  ;;  %v771_v61 = vmul.f32 %v5404_v38, %v748_v60 }
 0x423   :  { %v754_v0 = vpop.permute.xlu0 %753 }
 0x424   :  { %v774_v44 = vmul.f32 %v5407_v43, %v754_v0  ;;  %787 = vrot.lane.b32.xlu1 %v771_v61, %s5041_s3  ;;  %v736_v61 = vmul.f32 %v5415_v11, %v720_v28  ;;  %v721_v0 = vrot.slane %v5314_v22, 7 }
 0x425   :  { %v756_v9 = vpop.permute.xlu1 %755 }
 0x426   :  { %793 = vrot.lane.b32.xlu0 %v774_v44, %s5041_s3  ;;  %v775_v12 = vmul.f32 %v5412_v7, %v756_v9  ;;  %v722_v9 = vrot.slane %v5320_v27, 7  ;;  %v737_v21 = vmul.f32 %v5420_v52, %v721_v0 }
 0x427   :  { %v758_v51 = vpop.permute.xlu0 %757 }
 0x428   :  { %v776_v16 = vmul.f32 %v5415_v11, %v758_v51  ;;  %795 = vrot.lane.b32.xlu1 %v775_v12, %s5041_s3 }
 0x429   :  { %v760_v17 = vpop.permute.xlu1 %759 }
 0x42a   :  { %797 = vrot.lane.b32.xlu0 %v776_v16, %s5041_s3  ;;  %v777_v58 = vmul.f32 %v5420_v52, %v760_v17  ;;  %v738_v16 = vmul.f32 %v5423_v18, %v722_v9 }
 0x42b   :  { %v762_v19 = vpop.permute.xlu0 %761 }
 0x42c   :  { %v778_v20 = vmul.f32 %v5423_v18, %v762_v19  ;;  %799 = vrot.lane.b32.xlu1 %v777_v58, %s5041_s3 }
 0x42e   :  { %801 = vrot.lane.b32.xlu0 %v778_v20, %s5041_s3 }
 0x492   :  { %v790_v30 = vpop.permute.xlu1 %789 }
 0x493   :  { %v5434_v34 = vadd.f32 %v790_v30, %v732_v25 }
 0x494   :  { %v792_v36 = vpop.permute.xlu0 %791 }
 0x495   :  { %v5437_v40 = vadd.f32 %v792_v36, %v733_v31  ;;  %4590 = vtanh.f32 %v5434_v34 }
 0x496   :  { %v788_v14 = vpop.permute.xlu1 %787 }
 0x497   :  { %4592 = vtanh.f32 %v5437_v40  ;;  %v5444_v57 = vadd.f32 %v788_v14, %v731_v62 }
 0x498   :  { %v794_v1 = vpop.permute.xlu0 %793 }
 0x499   :  { %v5447_v35 = vadd.f32 %v794_v1, %v734_v42  ;;  %4594 = vtanh.f32 %v5444_v57 }
 0x49a   :  { %v796_v60 = vpop.permute.xlu1 %795 }
 0x49b   :  { %4596 = vtanh.f32 %v5447_v35  ;;  %v5454_v44 = vadd.f32 %v796_v60, %v735_v8 }
 0x49c   :  { %v798_v15 = vpop.permute.xlu0 %797 }
 0x49d   :  { %v5457_v12 = vadd.f32 %v798_v15, %v736_v61  ;;  %4598 = vtanh.f32 %v5454_v44 }
 0x49e   :  { %v800_v51 = vpop.permute.xlu1 %799 }
 0x49f   :  { %4600 = vtanh.f32 %v5457_v12  ;;  %v5463_v17 = vadd.f32 %v800_v51, %v737_v21 }
 0x4a0   :  { %v802_v58 = vpop.permute.xlu0 %801 }
 0x4a1   :  { %v5465_v22 = vadd.f32 %v802_v58, %v738_v16  ;;  %4602 = vtanh.f32 %v5463_v17 }
 0x4a2   :  { %v4591_v19 = vpop.eup %4590 }
 0x4a3   :  { %4604 = vtanh.f32 %v5465_v22  ;;  %837 = vrot.lane.b32.xlu1 %v4591_v19, %s5040_s0 }
 0x4a4   :  { %v4593_v27 = vpop.eup %4592 }
 0x4a5   :  { %839 = vrot.lane.b32.xlu0 %v4593_v27, %s5040_s0 }
 0x4a6   :  { %v4595_v20 = vpop.eup %4594 }
 0x4a7   :  { %835 = vrot.lane.b32.xlu1 %v4595_v20, %s5040_s0 }
 0x4a8   :  { %v4597_v23 = vpop.eup %4596 }
 0x4a9   :  { %841 = vrot.lane.b32.xlu0 %v4597_v23, %s5040_s0 }
 0x4aa   :  { %v4599_v24 = vpop.eup %4598 }
 0x4ab   :  { %843 = vrot.lane.b32.xlu1 %v4599_v24, %s5040_s0 }
 0x4ac   :  { %v4601_v25 = vpop.eup %4600 }
 0x4ad   :  { %845 = vrot.lane.b32.xlu0 %v4601_v25, %s5040_s0 }
 0x4ae   :  { %v4603_v30 = vpop.eup %4602 }
 0x4af   :  { %847 = vrot.lane.b32.xlu1 %v4603_v30, %s5040_s0 }
 0x4b0   :  { %v4605_v31 = vpop.eup %4604 }
 0x4b1   :  { %849 = vrot.lane.b32.xlu0 %v4605_v31, %s5040_s0 }
 0x515   :  { %v838_v33 = vpop.permute.xlu1 %837 }
 0x516   :  { %v5487_v1 = vmul.f32 %v5397_v46, %v838_v33 }
 0x517   :  { %v840_v36 = vpop.permute.xlu0 %839 }
 0x518   :  { %v5478_v39 = vmul.f32 %v5399_v56, %v840_v36 }
 0x519   :  { %v836_v62 = vpop.permute.xlu1 %835 }
 0x51a   :  { %v5481_v14 = vmul.f32 %v5404_v38, %v836_v62  ;;  %v910_v8 = vrot.slane %v5478_v39, 7 }
 0x51b   :  { %v842_v42 = vpop.permute.xlu0 %841 }
 0x51c   :  { %v5484_v54 = vmul.f32 %v5407_v43, %v842_v42  ;;  %v908_v28 = vrot.slane %v5481_v14, 1 }
 0x51d   :  { %v844_v61 = vpop.permute.xlu1 %843 }
 0x51e   :  { %v912_v60 = vrot.slane %v5484_v54, 6  ;;  %v909_v56 = vsel %vm533_vm2, %v5487_v1, %v908_v28  ;;  %v5495_v38 = vmul.f32 %v5412_v7, %v844_v61 }
 0x51f   :  { %v846_v0 = vpop.permute.xlu0 %845  ;;  %v911_v43 = vsel %vm536_vm3, %v910_v8, %v909_v56 }
 0x520   :  { %6905 = vst [vmem:[#allocation9_spill] sm:$0xff] %v5495_v38  ;;  %v5499_v15 = vmul.f32 %v5415_v11, %v846_v0  ;;  %v913_v46 = vsel %vm539_vm4, %v912_v60, %v911_v43  ;;  %v914_v9 = vrot.slane %v5495_v38, 5 }
 0x521   :  { %v848_v51 = vpop.permute.xlu1 %847 }
 0x522   :  { %6906 = vst [vmem:[#allocation10_spill] sm:$0xff] %v5499_v15  ;;  %v916_v21 = vrot.slane %v5499_v15, 4  ;;  %v915_v16 = vsel %vm542_vm5, %v914_v9, %v913_v46  ;;  %v5506_v58 = vmul.f32 %v5420_v52, %v848_v51 }
 0x523   :  { %v850_v7 = vpop.permute.xlu0 %849 }
 0x524   :  { %6907 = vst [vmem:[#allocation11_spill] sm:$0xff] %v5506_v58  ;;  %v5509_v19 = vmul.f32 %v5423_v18, %v850_v7  ;;  %v917_v27 = vsel %vm545_vm6, %v916_v21, %v915_v16  ;;  %v918_v11 = vrot.slane %v5506_v58, 3 }
 0x526   :  { %6908 = vst [vmem:[#allocation12_spill] sm:$0xff] %v5509_v19  ;;  %v920_v20 = vrot.slane %v5509_v19, 2  ;;  %v919_v23 = vsel %vm548_vm7, %v918_v11, %v917_v27 }
 0x528   :  { %v921_v24 = vsel %vm6901_vm8, %v920_v20, %v919_v23 }
 0x529   :  { %922 = vrot.lane.b32.xlu1 %v921_v24, %s5041_s3 }
 0x59b   :  { %v923_v25 = vpop.permute.xlu1 %922 }
 0x59c   :  { %4328 = vmatmul.mubr.msk.f32.vlgmr.msra.gmra.mxu1 %vm201_vm9, %v923_v25 }
 0x59d   :  { %4342 = vmatpush3.msra.mxu1 %v5124_v3  ;;  %4349 = vmatprep.mubr.msk.f32.mxu1 %vm5039_vm1, %v6875_v2 }
 0x59e   :  { %4343 = vmatprep.subr.mxu1 %v6875_v2 }
 0x59f   :  { %4344 = vmatpush3.msra.mxu1 %v5133_v5 }
 0x5a0   :  { %4345 = vmatprep.subr.mxu1 %v6875_v2 }
 0x5a1   :  { %4346 = vmatpush3.msra.mxu1 %v5139_v6 }
 0x5a2   :  { %4347 = vmatprep.subr.mxu1 %v6875_v2 }
 0x5a3   :  { %4348 = vmatpush3.msra.mxu1 %v5156_v10 }
 0x5a4   :  { %4363 = vmatprep.subr.mxu1 %v6875_v2 }
 0x65c   :  { %v992_v52 = vpop.f32.mrf.mxu1 }
 0x65d   :  { %v997_v18 = vrot.slane %v992_v52, 6  ;;  %v999_v31 = vrot.slane %v992_v52, 1  ;;  %v998_v33 = vrot.slane %v992_v52, 7  ;;  %v1014_v5 = vadd.f32 %v992_v52, %v5235_v37 }
 0x65e   :  { %v4329_v3 = vpop.f32.mrf.mxu1  ;;  %v1000_v36 = vrot.slane %v992_v52, 2  ;;  %v1001_v6 = vrot.slane %v992_v52, 3  ;;  %v1002_v10 = vrot.slane %v992_v52, 4  ;;  %v1003_v60 = vrot.slane %v992_v52, 5 }
 0x65f   :  { %v1012_v30 = vadd.f32 %v997_v18, %v5228_v29  ;;  %v1015_v62 = vadd.f32 %v999_v31, %v5231_v32  ;;  %v1013_v42 = vadd.f32 %v998_v33, %v5226_v26  ;;  %v4105_v11 = vmul.f32 -1.442695, %v1014_v5 }
 0x660   :  { %v1016_v28 = vadd.f32 %v1000_v36, %v5241_v45  ;;  %v1017_v61 = vadd.f32 %v1001_v6, %v5238_v41  ;;  %v1018_v56 = vadd.f32 %v1002_v10, %v5247_v53  ;;  %v1019_v0 = vadd.f32 %v1003_v60, %v5244_v49 }
 0x661   :  { %4606 = vtanh.f32 %v1012_v30  ;;  %v4103_v27 = vmul.f32 -1.442695, %v1012_v30  ;;  %v4106_v20 = vmul.f32 -1.442695, %v1015_v62  ;;  %v4104_v23 = vmul.f32 -1.442695, %v1013_v42 }
 0x662   :  { %4608 = vtanh.f32 %v1014_v5  ;;  %v4107_v24 = vmul.f32 -1.442695, %v1016_v28  ;;  %v4108_v52 = vmul.f32 -1.442695, %v1017_v61  ;;  %v4109_v18 = vmul.f32 -1.442695, %v1018_v56 }
 0x663   :  { %4610 = vtanh.f32 %v1015_v62  ;;  %v4110_v31 = vmul.f32 -1.442695, %v1019_v0 }
 0x664   :  { %4612 = vtanh.f32 %v1013_v42 }
 0x665   :  { %4614 = vtanh.f32 %v1016_v28 }
 0x666   :  { %4616 = vtanh.f32 %v1017_v61 }
 0x667   :  { %4618 = vtanh.f32 %v1018_v56 }
 0x668   :  { %4620 = vtanh.f32 %v1019_v0 }
 0x669   :  { %4622 = vpow2.f32 %v4103_v27 }
 0x66a   :  { %4624 = vpow2.f32 %v4105_v11 }
 0x66b   :  { %4626 = vpow2.f32 %v4106_v20 }
 0x66c   :  { %4628 = vpow2.f32 %v4104_v23 }
 0x66d   :  { %4630 = vpow2.f32 %v4107_v24 }
 0x66e   :  { %v4607_v8 = vpop.eup %4606  ;;  %4632 = vpow2.f32 %v4108_v52 }
 0x66f   :  { %1116 = vrot.lane.b32.xlu0 %v4607_v8, %s5040_s0  ;;  %v4609_v43 = vpop.eup %4608  ;;  %4634 = vpow2.f32 %v4109_v18 }
 0x670   :  { %v4611_v46 = vpop.eup %4610  ;;  %1120 = vrot.lane.b32.xlu1 %v4609_v43, %s5040_s0 }
 0x671   :  { %v4613_v9 = vpop.eup %4612 }
 0x672   :  { %v4615_v21 = vpop.eup %4614 }
 0x673   :  { %1122 = vrot.lane.b32.xlu0 %v4611_v46, %s5040_s0  ;;  %v4617_v51 = vpop.eup %4616 }
 0x674   :  { %1118 = vrot.lane.b32.xlu1 %v4613_v9, %s5040_s0  ;;  %v4619_v16 = vpop.eup %4618 }
 0x675   :  { %v4621_v7 = vpop.eup %4620 }
 0x676   :  { %v4623_v25 = vpop.eup %4622 }
 0x677   :  { %1124 = vrot.lane.b32.xlu0 %v4615_v21, %s5040_s0  ;;  %v1044_v3 = vadd.f32 1.0, %v4623_v25  ;;  %v4625_v33 = vpop.eup %4624 }
 0x678   :  { %1126 = vrot.lane.b32.xlu1 %v4617_v51, %s5040_s0  ;;  %v4627_v30 = vpop.eup %4626  ;;  %v1046_v36 = vadd.f32 1.0, %v4625_v33 }
 0x679   :  { %4636 = vrcp.f32 %v1044_v3  ;;  %v4629_v5 = vpop.eup %4628  ;;  %v1047_v62 = vadd.f32 1.0, %v4627_v30 }
 0x67a   :  { %4638 = vpow2.f32 %v4110_v31  ;;  %v4631_v6 = vpop.eup %4630  ;;  %v1045_v42 = vadd.f32 1.0, %v4629_v5 }
 0x67b   :  { %1128 = vrot.lane.b32.xlu0 %v4619_v16, %s5040_s0  ;;  %4640 = vrcp.f32 %v1046_v36  ;;  %v4633_v10 = vpop.eup %4632  ;;  %v1048_v28 = vadd.f32 1.0, %v4631_v6 }
 0x67c   :  { %1130 = vrot.lane.b32.xlu1 %v4621_v7, %s5040_s0  ;;  %4642 = vrcp.f32 %v1047_v62  ;;  %v4635_v8 = vpop.eup %4634  ;;  %v1049_v56 = vadd.f32 1.0, %v4633_v10  ;;  %v1084_v10 = vrot.slane %v5444_v57, 7 }
 0x67d   :  { %4644 = vrcp.f32 %v1045_v42  ;;  %v1050_v46 = vadd.f32 1.0, %v4635_v8 }
 0x67e   :  { %4646 = vrcp.f32 %v1048_v28 }
 0x67f   :  { %4648 = vrcp.f32 %v1049_v56  ;;  %v1086_v56 = vrot.slane %v5437_v40, 7 }
 0x680   :  { %4650 = vrcp.f32 %v1050_v46 }
 0x686   :  { %v5544_v60 = vpop.eup %4636 }
 0x687   :  { %v4639_v43 = vpop.eup %4638  ;;  %v1100_v28 = vmul.f32 %v5544_v60, %v1084_v10 }
 0x688   :  { %v1051_v9 = vadd.f32 1.0, %v4639_v43  ;;  %v5548_v21 = vpop.eup %4640 }
 0x689   :  { %v5550_v16 = vpop.eup %4642  ;;  %v1102_v43 = vmul.f32 %v5548_v21, %v1086_v56 }
 0x68a   :  { %4652 = vrcp.f32 %v1051_v9  ;;  %v5555_v20 = vpop.eup %4644 }
 0x68b   :  { %v5558_v24 = vpop.eup %4646 }
 0x68c   :  { %v5563_v3 = vpop.eup %4648 }
 0x68d   :  { %v5566_v33 = vpop.eup %4650 }
 0x697   :  { %v5571_v62 = vpop.eup %4652 }
 0x6e1   :  { %v1117_v61 = vpop.permute.xlu0 %1116 }
 0x6e2   :  { %v1140_v0 = vmul.f32 %v5544_v60, %v1117_v61  ;;  %v1121_v51 = vpop.permute.xlu1 %1120 }
 0x6e3   :  { %v1142_v7 = vmul.f32 %v5548_v21, %v1121_v51  ;;  %v1085_v51 = vrot.slane %v5434_v34, 7 }
 0x6e4   :  { %1156 = vrot.lane.b32.xlu0 %v1140_v0, %s5041_s3  ;;  %v1087_v0 = vrot.slane %v5447_v35, 7 }
 0x6e5   :  { %v1123_v27 = vpop.permute.xlu0 %1122  ;;  %1160 = vrot.lane.b32.xlu1 %v1142_v7, %s5041_s3  ;;  %v1101_v40 = vmul.f32 %v5555_v20, %v1085_v51 }
 0x6e6   :  { %v1143_v11 = vmul.f32 %v5550_v16, %v1123_v27  ;;  %v1119_v23 = vpop.permute.xlu1 %1118  ;;  %v1103_v9 = vmul.f32 %v5550_v16, %v1087_v0  ;;  %v1088_v27 = vrot.slane %v5454_v44, 7 }
 0x6e7   :  { %v1141_v25 = vmul.f32 %v5555_v20, %v1119_v23 }
 0x6e8   :  { %1162 = vrot.lane.b32.xlu0 %v1143_v11, %s5041_s3  ;;  %v1104_v35 = vmul.f32 %v5558_v24, %v1088_v27 }
 0x6e9   :  { %v1125_v52 = vpop.permute.xlu0 %1124  ;;  %1158 = vrot.lane.b32.xlu1 %v1141_v25, %s5041_s3  ;;  %v1089_v25 = vrot.slane %v5457_v12, 7  ;;  %v1091_v12 = vrot.slane %v5465_v22, 7 }
 0x6ea   :  { %v1144_v18 = vmul.f32 %v5558_v24, %v1125_v52  ;;  %v1127_v31 = vpop.permute.xlu1 %1126 }
 0x6eb   :  { %v1145_v30 = vmul.f32 %v5563_v3, %v1127_v31  ;;  %v1090_v31 = vrot.slane %v5463_v17, 7  ;;  %v1107_v17 = vmul.f32 %v5571_v62, %v1091_v12 }
 0x6ec   :  { %1164 = vrot.lane.b32.xlu0 %v1144_v18, %s5041_s3 }
 0x6ed   :  { %v1129_v36 = vpop.permute.xlu0 %1128  ;;  %1166 = vrot.lane.b32.xlu1 %v1145_v30, %s5041_s3  ;;  %v1105_v30 = vmul.f32 %v5563_v3, %v1089_v25 }
 0x6ee   :  { %v1146_v5 = vmul.f32 %v5566_v33, %v1129_v36  ;;  %v1131_v6 = vpop.permute.xlu1 %1130 }
 0x6ef   :  { %v1147_v42 = vmul.f32 %v5571_v62, %v1131_v6 }
 0x6f0   :  { %1168 = vrot.lane.b32.xlu0 %v1146_v5, %s5041_s3  ;;  %v1106_v5 = vmul.f32 %v5566_v33, %v1090_v31 }
 0x6f1   :  { %1170 = vrot.lane.b32.xlu1 %v1147_v42, %s5041_s3 }
 0x756   :  { %v1157_v8 = vpop.permute.xlu0 %1156 }
 0x757   :  { %v5578_v61 = vadd.f32 %v1157_v8, %v1100_v28  ;;  %v1161_v46 = vpop.permute.xlu1 %1160 }
 0x758   :  { %v5586_v7 = vadd.f32 %v1161_v46, %v1102_v43 }
 0x759   :  { %4654 = vtanh.f32 %v5578_v61 }
 0x75a   :  { %v1163_v57 = vpop.permute.xlu0 %1162  ;;  %4656 = vtanh.f32 %v5586_v7 }
 0x75b   :  { %v5589_v11 = vadd.f32 %v1163_v57, %v1103_v9  ;;  %v1159_v23 = vpop.permute.xlu1 %1158 }
 0x75c   :  { %v5596_v52 = vadd.f32 %v1159_v23, %v1101_v40 }
 0x75d   :  { %4658 = vtanh.f32 %v5589_v11 }
 0x75e   :  { %v1165_v34 = vpop.permute.xlu0 %1164  ;;  %4660 = vtanh.f32 %v5596_v52 }
 0x75f   :  { %v5599_v44 = vadd.f32 %v1165_v34, %v1104_v35  ;;  %v1167_v36 = vpop.permute.xlu1 %1166 }
 0x760   :  { %v5607_v6 = vadd.f32 %v1167_v36, %v1105_v30 }
 0x761   :  { %4662 = vtanh.f32 %v5599_v44 }
 0x762   :  { %v1169_v42 = vpop.permute.xlu0 %1168  ;;  %4664 = vtanh.f32 %v5607_v6 }
 0x763   :  { %v5609_v10 = vadd.f32 %v1169_v42, %v1106_v5  ;;  %v1171_v28 = vpop.permute.xlu1 %1170 }
 0x764   :  { %v5614_v8 = vadd.f32 %v1171_v28, %v1107_v17 }
 0x765   :  { %4666 = vtanh.f32 %v5609_v10 }
 0x766   :  { %v4655_v18 = vpop.eup %4654  ;;  %4668 = vtanh.f32 %v5614_v8 }
 0x767   :  { %1204 = vrot.lane.b32.xlu0 %v4655_v18, %s5040_s0  ;;  %v4657_v56 = vpop.eup %4656 }
 0x768   :  { %1208 = vrot.lane.b32.xlu1 %v4657_v56, %s5040_s0 }
 0x76a   :  { %v4659_v0 = vpop.eup %4658 }
 0x76b   :  { %1210 = vrot.lane.b32.xlu0 %v4659_v0, %s5040_s0  ;;  %v4661_v22 = vpop.eup %4660 }
 0x76c   :  { %1206 = vrot.lane.b32.xlu1 %v4661_v22, %s5040_s0 }
 0x76e   :  { %v4663_v43 = vpop.eup %4662 }
 0x76f   :  { %1212 = vrot.lane.b32.xlu0 %v4663_v43, %s5040_s0  ;;  %v4665_v46 = vpop.eup %4664 }
 0x770   :  { %1214 = vrot.lane.b32.xlu1 %v4665_v46, %s5040_s0 }
 0x772   :  { %v4667_v9 = vpop.eup %4666 }
 0x773   :  { %1216 = vrot.lane.b32.xlu0 %v4667_v9, %s5040_s0  ;;  %v4669_v51 = vpop.eup %4668 }
 0x774   :  { %1218 = vrot.lane.b32.xlu1 %v4669_v51, %s5040_s0 }
 0x7d9   :  { %v1205_v57 = vpop.permute.xlu0 %1204 }
 0x7da   :  { %v1209_v27 = vpop.permute.xlu1 %1208  ;;  %v5625_v23 = vmul.f32 %v5544_v60, %v1205_v57 }
 0x7db   :  { %v5640_v60 = vmul.f32 %v5548_v21, %v1209_v27  ;;  %v5668_v27 = vld [vmem:[%s6863_s2 + $0x18] sm:$0xff] }
 0x7dc   :  { %v1277_v30 = vrot.slane %v5625_v23, 2 }
 0x7dd   :  { %v1211_v40 = vpop.permute.xlu0 %1210 }
 0x7de   :  { %v5628_v35 = vmul.f32 %v5550_v16, %v1211_v40  ;;  %v1207_v25 = vpop.permute.xlu1 %1206  ;;  %v5684_v40 = vld [vmem:[%s6863_s2 + $0x8] sm:$0xff] }
 0x7df   :  { %v5631_v34 = vmul.f32 %v5555_v20, %v1207_v25  ;;  %v5691_v25 = vld [vmem:[%s6863_s2] sm:$0xff] }
 0x7e0   :  { %v1281_v5 = vrot.slane %v5628_v35, 7 }
 0x7e1   :  { %v1213_v18 = vpop.permute.xlu0 %1212  ;;  %v1278_v36 = vrot.slane %v5631_v34, 1 }
 0x7e2   :  { %v5634_v31 = vmul.f32 %v5558_v24, %v1213_v18  ;;  %v1215_v12 = vpop.permute.xlu1 %1214 }
 0x7e3   :  { %v1279_v42 = vsel %vm533_vm2, %v1278_v36, %v1277_v30  ;;  %v5645_v20 = vmul.f32 %v5563_v3, %v1215_v12 }
 0x7e4   :  { %6909 = vst [vmem:[#allocation13_spill] sm:$0xff] %v5634_v31  ;;  %v1283_v16 = vrot.slane %v5634_v31, 6  ;;  %v1280_v24 = vsel %vm536_vm3, %v5640_v60, %v1279_v42 }
 0x7e5   :  { %6910 = vst [vmem:[#allocation14_spill] sm:$0xff] %v5645_v20  ;;  %v1217_v17 = vpop.permute.xlu0 %1216  ;;  %v1282_v56 = vsel %vm539_vm4, %v1281_v5, %v1280_v24  ;;  %v1285_v21 = vrot.slane %v5645_v20, 5 }
 0x7e6   :  { %v5650_v28 = vmul.f32 %v5566_v33, %v1217_v17  ;;  %v1284_v0 = vsel %vm542_vm5, %v1283_v16, %v1282_v56  ;;  %v1219_v22 = vpop.permute.xlu1 %1218 }
 0x7e7   :  { %v5657_v46 = vmul.f32 %v5571_v62, %v1219_v22  ;;  %v1286_v3 = vsel %vm545_vm6, %v1285_v21, %v1284_v0  ;;  %v5677_v62 = vld [vmem:[%s6863_s2 + $0x10] sm:$0xff] }
 0x7e8   :  { %6911 = vst [vmem:[#allocation15_spill] sm:$0xff] %v5650_v28  ;;  %v1287_v43 = vrot.slane %v5650_v28, 4 }
 0x7e9   :  { %6912 = vst [vmem:[#allocation16_spill] sm:$0xff] %v5657_v46  ;;  %v1289_v51 = vrot.slane %v5657_v46, 3 }
 0x7ea   :  { %v1288_v9 = vsel %vm548_vm7, %v1287_v43, %v1286_v3 }
 0x7eb   :  { %v1290_v33 = vsel %vm6901_vm8, %v1289_v51, %v1288_v9 }
 0x7ec   :  { %1291 = vrot.lane.b32.xlu0 %v1290_v33, %s5041_s3 }
 0x85e   :  { %v1292_v57 = vpop.permute.xlu0 %1291 }
 0x85f   :  { %4339 = vmatmul.mubr.msk.f32.vlgmr.msra.gmra.mxu0 %vm201_vm9, %v1292_v57 }
 0x860   :  { %4353 = vmatpush3.msra.mxu0 %v5668_v27  ;;  %4360 = vmatprep.mubr.msk.f32.mxu0 %vm5039_vm1, %v6875_v2 }
 0x861   :  { %4354 = vmatprep.subr.mxu0 %v6875_v2 }
 0x862   :  { %4355 = vmatpush3.msra.mxu0 %v5677_v62 }
 0x863   :  { %4356 = vmatprep.subr.mxu0 %v6875_v2 }
 0x864   :  { %4357 = vmatpush3.msra.mxu0 %v5684_v40 }
 0x865   :  { %4358 = vmatprep.subr.mxu0 %v6875_v2 }
 0x866   :  { %4359 = vmatpush3.msra.mxu0 %v5691_v25 }
 0x867   :  { %4374 = vmatprep.subr.mxu0 %v6875_v2 }
 0x91f   :  { %v1361_v18 = vpop.f32.mrf.mxu0 }
 0x920   :  { %v1367_v36 = vrot.slane %v1361_v18, 6  ;;  %v1369_v5 = vrot.slane %v1361_v18, 1  ;;  %v1366_v16 = vrot.slane %v1361_v18, 5  ;;  %v1384_v42 = vadd.f32 %v1361_v18, %v5231_v32 }
 0x921   :  { %v4340_v30 = vpop.f32.mrf.mxu0  ;;  %v1370_v17 = vrot.slane %v1361_v18, 2  ;;  %v1368_v56 = vrot.slane %v1361_v18, 7  ;;  %v1372_v0 = vrot.slane %v1361_v18, 4  ;;  %v1371_v43 = vrot.slane %v1361_v18, 3 }
 0x922   :  { %v1382_v12 = vadd.f32 %v1367_v36, %v5226_v26  ;;  %v1385_v24 = vadd.f32 %v1369_v5, %v5241_v45  ;;  %v1381_v21 = vadd.f32 %v1366_v16, %v5228_v29 }
 0x923   :  { %v1386_v22 = vadd.f32 %v1370_v17, %v5238_v41  ;;  %v1383_v3 = vadd.f32 %v1368_v56, %v5235_v37  ;;  %v1388_v9 = vadd.f32 %v1372_v0, %v5244_v49  ;;  %v1387_v51 = vadd.f32 %v1371_v43, %v5247_v53 }
 0x924   :  { %4670 = vtanh.f32 %v1382_v12  ;;  %v4113_v56 = vmul.f32 -1.442695, %v1382_v12  ;;  %v4115_v0 = vmul.f32 -1.442695, %v1384_v42  ;;  %v4116_v43 = vmul.f32 -1.442695, %v1385_v24 }
 0x925   :  { %4672 = vtanh.f32 %v1384_v42 }
 0x926   :  { %4674 = vtanh.f32 %v1385_v24 }
 0x927   :  { %4676 = vtanh.f32 %v1381_v21 }
 0x928   :  { %4678 = vtanh.f32 %v1386_v22 }
 0x929   :  { %4680 = vtanh.f32 %v1383_v3 }
 0x92a   :  { %4682 = vtanh.f32 %v1388_v9 }
 0x92b   :  { %4684 = vtanh.f32 %v1387_v51 }
 0x92c   :  { %4686 = vpow2.f32 %v4113_v56 }
 0x92d   :  { %4688 = vpow2.f32 %v4115_v0 }
 0x92e   :  { %4690 = vpow2.f32 %v4116_v43 }
 0x931   :  { %v4671_v33 = vpop.eup %4670 }
 0x932   :  { %1487 = vrot.lane.b32.xlu0 %v4671_v33, %s5040_s0  ;;  %v4673_v57 = vpop.eup %4672  ;;  %v4112_v33 = vmul.f32 -1.442695, %v1381_v21 }
 0x933   :  { %1491 = vrot.lane.b32.xlu1 %v4673_v57, %s5040_s0  ;;  %v4675_v30 = vpop.eup %4674  ;;  %v4117_v57 = vmul.f32 -1.442695, %v1386_v22 }
 0x934   :  { %v4677_v18 = vpop.eup %4676  ;;  %4692 = vpow2.f32 %v4112_v33 }
 0x935   :  { %v4679_v36 = vpop.eup %4678  ;;  %4694 = vpow2.f32 %v4117_v57 }
 0x936   :  { %1493 = vrot.lane.b32.xlu0 %v4675_v30, %s5040_s0  ;;  %v4681_v5 = vpop.eup %4680  ;;  %v4114_v30 = vmul.f32 -1.442695, %v1383_v3 }
 0x937   :  { %1485 = vrot.lane.b32.xlu1 %v4677_v18, %s5040_s0  ;;  %v4683_v16 = vpop.eup %4682  ;;  %v4119_v18 = vmul.f32 -1.442695, %v1388_v9 }
 0x938   :  { %v4685_v17 = vpop.eup %4684  ;;  %4696 = vpow2.f32 %v4114_v30 }
 0x939   :  { %4698 = vpow2.f32 %v4119_v18 }
 0x93a   :  { %1495 = vrot.lane.b32.xlu0 %v4679_v36, %s5040_s0  ;;  %v4118_v36 = vmul.f32 -1.442695, %v1387_v51 }
 0x93b   :  { %1489 = vrot.lane.b32.xlu1 %v4681_v5, %s5040_s0  ;;  %v4687_v5 = vpop.eup %4686 }
 0x93c   :  { %4700 = vpow2.f32 %v4118_v36  ;;  %v1414_v2 = vadd.f32 1.0, %v4687_v5 }
 0x93e   :  { %1499 = vrot.lane.b32.xlu0 %v4683_v16, %s5040_s0  ;;  %v4689_v16 = vpop.eup %4688  ;;  %4702 = vrcp.f32 %v1414_v2 }
 0x93f   :  { %1497 = vrot.lane.b32.xlu1 %v4685_v17, %s5040_s0  ;;  %v4691_v17 = vpop.eup %4690  ;;  %v1416_v12 = vadd.f32 1.0, %v4689_v16 }
 0x940   :  { %v1417_v56 = vadd.f32 1.0, %v4691_v17 }
 0x941   :  { %v4693_v42 = vpop.eup %4692  ;;  %4704 = vrcp.f32 %v1416_v12 }
 0x942   :  { %v4695_v24 = vpop.eup %4694  ;;  %v1413_v21 = vadd.f32 1.0, %v4693_v42  ;;  %4706 = vrcp.f32 %v1417_v56 }
 0x943   :  { %v1418_v0 = vadd.f32 1.0, %v4695_v24 }
 0x944   :  { %4708 = vrcp.f32 %v1413_v21 }
 0x945   :  { %v4697_v22 = vpop.eup %4696  ;;  %4710 = vrcp.f32 %v1418_v0 }
 0x946   :  { %v4699_v3 = vpop.eup %4698  ;;  %v1415_v9 = vadd.f32 1.0, %v4697_v22 }
 0x947   :  { %v1420_v43 = vadd.f32 1.0, %v4699_v3 }
 0x948   :  { %4712 = vrcp.f32 %v1415_v9 }
 0x949   :  { %v4701_v51 = vpop.eup %4700  ;;  %4714 = vrcp.f32 %v1420_v43 }
 0x94a   :  { %v1419_v33 = vadd.f32 1.0, %v4701_v51 }
 0x94b   :  { %v5711_v57 = vpop.eup %4702 }
 0x94c   :  { %4716 = vrcp.f32 %v1419_v33 }
 0x94e   :  { %v5714_v18 = vpop.eup %4704 }
 0x94f   :  { %v5718_v16 = vpop.eup %4706 }
 0x951   :  { %v5722_v42 = vpop.eup %4708 }
 0x952   :  { %v5726_v21 = vpop.eup %4710 }
 0x955   :  { %v5730_v3 = vpop.eup %4712 }
 0x956   :  { %v5734_v43 = vpop.eup %4714 }
 0x9a4   :  { %v1488_v30 = vpop.permute.xlu0 %1487 }
 0x9a5   :  { %v1510_v2 = vmul.f32 %v5711_v57, %v1488_v30  ;;  %v1492_v36 = vpop.permute.xlu1 %1491 }
 0x9a6   :  { %v1512_v5 = vmul.f32 %v5714_v18, %v1492_v36 }
 0x9a7   :  { %1527 = vrot.lane.b32.xlu0 %v1510_v2, %s5041_s3  ;;  %v5738_v2 = vpop.eup %4716 }
 0x9a8   :  { %v1494_v17 = vpop.permute.xlu0 %1493  ;;  %1531 = vrot.lane.b32.xlu1 %v1512_v5, %s5041_s3 }
 0x9a9   :  { %v1513_v12 = vmul.f32 %v5718_v16, %v1494_v17  ;;  %v1486_v56 = vpop.permute.xlu1 %1485  ;;  %v1454_v17 = vrot.slane %v5596_v52, 7 }
 0x9aa   :  { %v1509_v24 = vmul.f32 %v5722_v42, %v1486_v56 }
 0x9ab   :  { %1533 = vrot.lane.b32.xlu0 %v1513_v12, %s5041_s3  ;;  %v1456_v12 = vrot.slane %v5589_v11, 7  ;;  %v1470_v56 = vmul.f32 %v5711_v57, %v1454_v17  ;;  %v1458_v11 = vrot.slane %v5607_v6, 7 }
 0x9ac   :  { %v1496_v22 = vpop.permute.xlu0 %1495  ;;  %1525 = vrot.lane.b32.xlu1 %v1509_v24, %s5041_s3 }
 0x9ad   :  { %v1514_v0 = vmul.f32 %v5726_v21, %v1496_v22  ;;  %v1490_v9 = vpop.permute.xlu1 %1489  ;;  %v1457_v22 = vrot.slane %v5599_v44, 7 }
 0x9ae   :  { %v1511_v51 = vmul.f32 %v5730_v3, %v1490_v9 }
 0x9af   :  { %1535 = vrot.lane.b32.xlu0 %v1514_v0, %s5041_s3  ;;  %v1472_v0 = vmul.f32 %v5714_v18, %v1456_v12  ;;  %v1473_v52 = vmul.f32 %v5718_v16, %v1457_v22  ;;  %v1455_v12 = vrot.slane %v5586_v7, 7  ;;  %v1460_v22 = vrot.slane %v5614_v8, 7 }
 0x9b0   :  { %v1500_v33 = vpop.permute.xlu0 %1499  ;;  %1529 = vrot.lane.b32.xlu1 %v1511_v51, %s5041_s3 }
 0x9b1   :  { %v1516_v30 = vmul.f32 %v5734_v43, %v1500_v33  ;;  %v1498_v36 = vpop.permute.xlu1 %1497  ;;  %v1453_v33 = vrot.slane %v5578_v61, 7  ;;  %v1474_v61 = vmul.f32 %v5726_v21, %v1458_v11  ;;  %v1471_v6 = vmul.f32 %v5730_v3, %v1455_v12 }
 0x9b2   :  { %v1515_v5 = vmul.f32 %v5738_v2, %v1498_v36  ;;  %v1476_v7 = vmul.f32 %v5734_v43, %v1460_v22 }
 0x9b3   :  { %1539 = vrot.lane.b32.xlu0 %v1516_v30, %s5041_s3  ;;  %v1469_v44 = vmul.f32 %v5722_v42, %v1453_v33  ;;  %v1459_v33 = vrot.slane %v5609_v10, 7 }
 0x9b4   :  { %1537 = vrot.lane.b32.xlu1 %v1515_v5, %s5041_s3 }
 0x9b5   :  { %v1475_v8 = vmul.f32 %v5738_v2, %v1459_v33 }
 0xa19   :  { %v1528_v24 = vpop.permute.xlu0 %1527 }
 0xa1a   :  { %v5748_v9 = vadd.f32 %v1528_v24, %v1470_v56  ;;  %v1532_v51 = vpop.permute.xlu1 %1531 }
 0xa1b   :  { %v5751_v36 = vadd.f32 %v1532_v51, %v1472_v0 }
 0xa1c   :  { %4718 = vtanh.f32 %v5748_v9 }
 0xa1d   :  { %v1534_v30 = vpop.permute.xlu0 %1533  ;;  %4720 = vtanh.f32 %v5751_v36 }
 0xa1e   :  { %v5758_v5 = vadd.f32 %v1534_v30, %v1473_v52  ;;  %v1526_v17 = vpop.permute.xlu1 %1525 }
 0xa1f   :  { %v5761_v56 = vadd.f32 %v1526_v17, %v1469_v44 }
 0xa20   :  { %4722 = vtanh.f32 %v5758_v5 }
 0xa21   :  { %v1536_v24 = vpop.permute.xlu0 %1535  ;;  %4724 = vtanh.f32 %v5761_v56 }
 0xa22   :  { %v5768_v0 = vadd.f32 %v1536_v24, %v1474_v61  ;;  %v1530_v51 = vpop.permute.xlu1 %1529 }
 0xa23   :  { %v5771_v52 = vadd.f32 %v1530_v51, %v1471_v6 }
 0xa24   :  { %4726 = vtanh.f32 %v5768_v0 }
 0xa25   :  { %v1540_v30 = vpop.permute.xlu0 %1539  ;;  %4728 = vtanh.f32 %v5771_v52 }
 0xa26   :  { %v5777_v11 = vadd.f32 %v1540_v30, %v1476_v7  ;;  %v1538_v44 = vpop.permute.xlu1 %1537 }
 0xa27   :  { %v5779_v17 = vadd.f32 %v1538_v44, %v1475_v8 }
 0xa28   :  { %4730 = vtanh.f32 %v5777_v11 }
 0xa29   :  { %v4719_v12 = vpop.eup %4718  ;;  %4732 = vtanh.f32 %v5779_v17 }
 0xa2a   :  { %1575 = vrot.lane.b32.xlu0 %v4719_v12, %s5040_s0  ;;  %v4721_v10 = vpop.eup %4720 }
 0xa2b   :  { %1579 = vrot.lane.b32.xlu1 %v4721_v10, %s5040_s0 }
 0xa2d   :  { %v4723_v61 = vpop.eup %4722 }
 0xa2e   :  { %1581 = vrot.lane.b32.xlu0 %v4723_v61, %s5040_s0  ;;  %v4725_v24 = vpop.eup %4724 }
 0xa2f   :  { %1573 = vrot.lane.b32.xlu1 %v4725_v24, %s5040_s0 }
 0xa31   :  { %v4727_v22 = vpop.eup %4726 }
 0xa32   :  { %1583 = vrot.lane.b32.xlu0 %v4727_v22, %s5040_s0  ;;  %v4729_v6 = vpop.eup %4728 }
 0xa33   :  { %1577 = vrot.lane.b32.xlu1 %v4729_v6, %s5040_s0 }
 0xa35   :  { %v4731_v51 = vpop.eup %4730 }
 0xa36   :  { %1587 = vrot.lane.b32.xlu0 %v4731_v51, %s5040_s0  ;;  %v4733_v33 = vpop.eup %4732 }
 0xa37   :  { %1585 = vrot.lane.b32.xlu1 %v4733_v33, %s5040_s0 }
 0xa9c   :  { %v1576_v7 = vpop.permute.xlu0 %1575 }
 0xa9d   :  { %v1580_v30 = vpop.permute.xlu1 %1579  ;;  %v5795_v10 = vmul.f32 %v5711_v57, %v1576_v7 }
 0xa9e   :  { %v5813_v7 = vmul.f32 %v5714_v18, %v1580_v30 }
 0xa9f   :  { %v1647_v46 = vrot.slane %v5795_v10, 2 }
 0xaa0   :  { %v1582_v8 = vpop.permute.xlu0 %1581 }
 0xaa1   :  { %v1574_v44 = vpop.permute.xlu1 %1573  ;;  %v5802_v51 = vmul.f32 %v5718_v16, %v1582_v8 }
 0xaa2   :  { %v5792_v12 = vmul.f32 %v5722_v42, %v1574_v44 }
 0xaa3   :  { %6914 = vst [vmem:[#allocation18_spill] sm:$0xff] %v5802_v51  ;;  %v1652_v8 = vrot.slane %v5802_v51, 7 }
 0xaa4   :  { %v1584_v61 = vpop.permute.xlu0 %1583  ;;  %v1646_v24 = vrot.slane %v5792_v12, 3 }
 0xaa5   :  { %v1578_v22 = vpop.permute.xlu1 %1577  ;;  %v5799_v6 = vmul.f32 %v5726_v21, %v1584_v61 }
 0xaa6   :  { %v5805_v33 = vmul.f32 %v5730_v3, %v1578_v22  ;;  %v1648_v21 = vsel %vm533_vm2, %v1647_v46, %v1646_v24 }
 0xaa7   :  { %6913 = vst [vmem:[#allocation17_spill] sm:$0xff] %v5799_v6  ;;  %v1654_v61 = vrot.slane %v5799_v6, 6 }
 0xaa8   :  { %v1588_v42 = vpop.permute.xlu0 %1587  ;;  %v1649_v44 = vrot.slane %v5805_v33, 1 }
 0xaa9   :  { %v5810_v57 = vmul.f32 %v5734_v43, %v1588_v42  ;;  %v1586_v16 = vpop.permute.xlu1 %1585 }
 0xaaa   :  { %v1650_v3 = vsel %vm536_vm3, %v1649_v44, %v1648_v21  ;;  %v5820_v22 = vmul.f32 %v5738_v2, %v1586_v16  ;;  %v6917_v2 = vmov 0.0  }
 0xaab   :  { %6915 = vst [vmem:[#allocation19_spill] sm:$0xff] %v5810_v57  ;;  %v1651_v19 = vsel %vm539_vm4, %v5813_v7, %v1650_v3  ;;  %v1658_v43 = vrot.slane %v5810_v57, 4 }
 0xaac   :  { %6916 = vst [vmem:[#allocation20_spill] sm:$0xff] %v5820_v22  ;;  %v1656_v18 = vrot.slane %v5820_v22, 5  ;;  %v1653_v30 = vsel %vm542_vm5, %v1652_v8, %v1651_v19 }
 0xaad   :  { %v1655_v46 = vsel %vm545_vm6, %v1654_v61, %v1653_v30 }
 0xaae   :  { %v1657_v24 = vsel %vm548_vm7, %v1656_v18, %v1655_v46 }
 0xaaf   :  { %v1659_v42 = vsel %vm6901_vm8, %v1658_v43, %v1657_v24 }
 0xab0   :  { %1660 = vrot.lane.b32.xlu1 %v1659_v42, %s5041_s3 }
 0xb22   :  { %v1661_v44 = vpop.permute.xlu1 %1660 }
 0xb23   :  { %4350 = vmatmul.mubr.msk.f32.vlgmr.msra.gmra.mxu1 %vm201_vm9, %v1661_v44 }
 0xb24   :  { %4364 = vmatpush3.msra.mxu1 %v5668_v27  ;;  %4371 = vmatprep.mubr.msk.f32.mxu1 %vm5039_vm1, %v6917_v2 }
 0xb25   :  { %4365 = vmatprep.subr.mxu1 %v6917_v2 }
 0xb26   :  { %4366 = vmatpush3.msra.mxu1 %v5677_v62 }
 0xb27   :  { %4367 = vmatprep.subr.mxu1 %v6917_v2 }
 0xb28   :  { %4368 = vmatpush3.msra.mxu1 %v5684_v40 }
 0xb29   :  { %4369 = vmatprep.subr.mxu1 %v6917_v2 }
 0xb2a   :  { %4370 = vmatpush3.msra.mxu1 %v5691_v25 }
 0xbe3   :  { %v1730_v19 = vpop.f32.mrf.mxu1 }
 0xbe4   :  { %v1735_v21 = vrot.slane %v1730_v19, 4  ;;  %v1737_v8 = vrot.slane %v1730_v19, 6  ;;  %v1739_v3 = vrot.slane %v1730_v19, 1  ;;  %v1736_v18 = vrot.slane %v1730_v19, 5 }
 0xbe5   :  { %v4351_v61 = vpop.f32.mrf.mxu1  ;;  %v1754_v30 = vadd.f32 %v1730_v19, %v5241_v45  ;;  %v1740_v46 = vrot.slane %v1730_v19, 2  ;;  %v1738_v42 = vrot.slane %v1730_v19, 7 }
 0xbe6   :  { %v1750_v16 = vadd.f32 %v1735_v21, %v5228_v29  ;;  %v1752_v43 = vadd.f32 %v1737_v8, %v5235_v37  ;;  %v1755_v24 = vadd.f32 %v1739_v3, %v5238_v41  ;;  %v1751_v44 = vadd.f32 %v1736_v18, %v5226_v26 }
 0xbe7   :  { %v1756_v61 = vadd.f32 %v1740_v46, %v5247_v53  ;;  %v1741_v21 = vrot.slane %v1730_v19, 3  ;;  %v1753_v8 = vadd.f32 %v1738_v42, %v5231_v32  ;;  %v4125_v58 = vmul.f32 -1.442695, %v1754_v30 }
 0xbe8   :  { %4734 = vtanh.f32 %v1750_v16  ;;  %v4122_v28 = vmul.f32 -1.442695, %v1751_v44 }
 0xbe9   :  { %4736 = vtanh.f32 %v1752_v43  ;;  %v1757_v13 = vadd.f32 %v1741_v21, %v5244_v49  ;;  %v4121_v21 = vmul.f32 -1.442695, %v1750_v16  ;;  %v4124_v4 = vmul.f32 -1.442695, %v1753_v8 }
 0xbea   :  { %4738 = vtanh.f32 %v1754_v30 }
 0xbeb   :  { %4740 = vtanh.f32 %v1755_v24 }
 0xbec   :  { %4742 = vtanh.f32 %v1751_v44 }
 0xbed   :  { %4744 = vtanh.f32 %v1756_v61 }
 0xbee   :  { %4746 = vtanh.f32 %v1753_v8 }
 0xbef   :  { %4748 = vtanh.f32 %v1757_v13 }
 0xbf0   :  { %4750 = vpow2.f32 %v4121_v21 }
 0xbf5   :  { %v4735_v57 = vpop.eup %4734 }
 0xbf6   :  { %1854 = vrot.lane.b32.xlu0 %v4735_v57, %s5040_s0  ;;  %v4737_v3 = vpop.eup %4736 }
 0xbf7   :  { %v4739_v18 = vpop.eup %4738 }
 0xbf8   :  { %1862 = vrot.lane.b32.xlu1 %v4739_v18, %s5040_s0  ;;  %v4741_v22 = vpop.eup %4740  ;;  %v4126_v18 = vmul.f32 -1.442695, %v1755_v24 }
 0xbf9   :  { %v4743_v46 = vpop.eup %4742 }
 0xbfa   :  { %1858 = vrot.lane.b32.xlu0 %v4737_v3, %s5040_s0  ;;  %v4745_v57 = vpop.eup %4744  ;;  %v4123_v3 = vmul.f32 -1.442695, %v1752_v43 }
 0xbfb   :  { %v4747_v19 = vpop.eup %4746 }
 0xbfc   :  { %1856 = vrot.lane.b32.xlu1 %v4743_v46, %s5040_s0  ;;  %v4749_v42 = vpop.eup %4748  ;;  %4752 = vpow2.f32 %v4123_v3  ;;  %v4127_v46 = vmul.f32 -1.442695, %v1756_v61 }
 0xbfd   :  { %4754 = vpow2.f32 %v4125_v58 }
 0xbfe   :  { %1864 = vrot.lane.b32.xlu0 %v4741_v22, %s5040_s0  ;;  %v4751_v22 = vpop.eup %4750  ;;  %4756 = vpow2.f32 %v4126_v18 }
 0xbff   :  { %4758 = vpow2.f32 %v4122_v28 }
 0xc00   :  { %1860 = vrot.lane.b32.xlu1 %v4747_v19, %s5040_s0  ;;  %4760 = vpow2.f32 %v4127_v46  ;;  %v4128_v19 = vmul.f32 -1.442695, %v1757_v13 }
 0xc01   :  { %4762 = vpow2.f32 %v4124_v4 }
 0xc02   :  { %1866 = vrot.lane.b32.xlu0 %v4745_v57, %s5040_s0  ;;  %v1782_v57 = vadd.f32 1.0, %v4751_v22 }
 0xc04   :  { %1868 = vrot.lane.b32.xlu1 %v4749_v42, %s5040_s0  ;;  %4764 = vrcp.f32 %v1782_v57 }
 0xc05   :  { %4766 = vpow2.f32 %v4128_v19 }
 0xc09   :  { %v4753_v6 = vpop.eup %4752 }
 0xc0a   :  { %v4755_v16 = vpop.eup %4754  ;;  %v1784_v42 = vadd.f32 1.0, %v4753_v6 }
 0xc0b   :  { %v4757_v43 = vpop.eup %4756  ;;  %v1786_v30 = vadd.f32 1.0, %v4755_v16 }
 0xc0c   :  { %v4759_v21 = vpop.eup %4758  ;;  %v1787_v24 = vadd.f32 1.0, %v4757_v43  ;;  %4768 = vrcp.f32 %v1784_v42 }
 0xc0d   :  { %v4761_v58 = vpop.eup %4760  ;;  %v1783_v3 = vadd.f32 1.0, %v4759_v21  ;;  %4770 = vrcp.f32 %v1786_v30 }
 0xc0e   :  { %v4763_v44 = vpop.eup %4762  ;;  %v1788_v8 = vadd.f32 1.0, %v4761_v58  ;;  %4772 = vrcp.f32 %v1787_v24 }
 0xc0f   :  { %v1785_v13 = vadd.f32 1.0, %v4763_v44  ;;  %4774 = vrcp.f32 %v1783_v3 }
 0xc10   :  { %4776 = vrcp.f32 %v1788_v8 }
 0xc11   :  { %v5857_v61 = vpop.eup %4764  ;;  %4778 = vrcp.f32 %v1785_v13 }
 0xc12   :  { %v4767_v6 = vpop.eup %4766 }
 0xc13   :  { %v1789_v18 = vadd.f32 1.0, %v4767_v6 }
 0xc15   :  { %4780 = vrcp.f32 %v1789_v18 }
 0xc19   :  { %v5861_v22 = vpop.eup %4768 }
 0xc1a   :  { %v5864_v19 = vpop.eup %4770 }
 0xc1b   :  { %v5868_v43 = vpop.eup %4772 }
 0xc1c   :  { %v5872_v24 = vpop.eup %4774 }
 0xc1d   :  { %v5876_v3 = vpop.eup %4776 }
 0xc68   :  { %v1855_v28 = vpop.permute.xlu0 %1854 }
 0xc69   :  { %v1878_v4 = vmul.f32 %v5857_v61, %v1855_v28 }
 0xc6a   :  { %v1863_v16 = vpop.permute.xlu1 %1862 }
 0xc6b   :  { %1894 = vrot.lane.b32.xlu0 %v1878_v4, %s5041_s3  ;;  %v1882_v42 = vmul.f32 %v5864_v19, %v1863_v16  ;;  %v5880_v4 = vpop.eup %4778  ;;  %v1822_v16 = vrot.slane %v5761_v56, 7 }
 0xc6c   :  { %v1859_v46 = vpop.permute.xlu0 %1858  ;;  %v5885_v18 = vpop.eup %4780 }
 0xc6d   :  { %v1880_v57 = vmul.f32 %v5861_v22, %v1859_v46  ;;  %1902 = vrot.lane.b32.xlu1 %v1882_v42, %s5041_s3  ;;  %v1838_v42 = vmul.f32 %v5857_v61, %v1822_v16 }
 0xc6e   :  { %v1857_v58 = vpop.permute.xlu1 %1856 }
 0xc6f   :  { %1898 = vrot.lane.b32.xlu0 %v1880_v57, %s5041_s3  ;;  %v1879_v44 = vmul.f32 %v5872_v24, %v1857_v58  ;;  %v1824_v58 = vrot.slane %v5771_v52, 7 }
 0xc70   :  { %v1865_v30 = vpop.permute.xlu0 %1864 }
 0xc71   :  { %v1883_v21 = vmul.f32 %v5868_v43, %v1865_v30  ;;  %1896 = vrot.lane.b32.xlu1 %v1879_v44, %s5041_s3  ;;  %v1826_v44 = vrot.slane %v5758_v5, 7  ;;  %v1828_v5 = vrot.slane %v5779_v17, 7 }
 0xc72   :  { %v1861_v13 = vpop.permute.xlu1 %1860 }
 0xc73   :  { %1904 = vrot.lane.b32.xlu0 %v1883_v21, %s5041_s3  ;;  %v1881_v6 = vmul.f32 %v5880_v4, %v1861_v13  ;;  %v1827_v13 = vrot.slane %v5768_v0, 7 }
 0xc74   :  { %v1867_v28 = vpop.permute.xlu0 %1866 }
 0xc75   :  { %v1884_v8 = vmul.f32 %v5876_v3, %v1867_v28  ;;  %1900 = vrot.lane.b32.xlu1 %v1881_v6, %s5041_s3  ;;  %v1840_v28 = vmul.f32 %v5861_v22, %v1824_v58  ;;  %v1842_v6 = vmul.f32 %v5864_v19, %v1826_v44  ;;  %v1843_v52 = vmul.f32 %v5868_v43, %v1827_v13 }
 0xc76   :  { %v1869_v46 = vpop.permute.xlu1 %1868 }
 0xc77   :  { %1906 = vrot.lane.b32.xlu0 %v1884_v8, %s5041_s3  ;;  %v1885_v57 = vmul.f32 %v5885_v18, %v1869_v46 }
 0xc79   :  { %1908 = vrot.lane.b32.xlu1 %v1885_v57, %s5041_s3  ;;  %v1823_v57 = vrot.slane %v5748_v9, 7 }
 0xc7b   :  { %v1839_v0 = vmul.f32 %v5872_v24, %v1823_v57  ;;  %v1829_v57 = vrot.slane %v5777_v11, 7 }
 0xcdd   :  { %v1895_v30 = vpop.permute.xlu0 %1894 }
 0xcde   :  { %v5891_v21 = vadd.f32 %v1895_v30, %v1838_v42 }
 0xcdf   :  { %v1903_v56 = vpop.permute.xlu1 %1902 }
 0xce0   :  { %4782 = vtanh.f32 %v5891_v21  ;;  %v5902_v16 = vadd.f32 %v1903_v56, %v1842_v6 }
 0xce1   :  { %v1899_v8 = vpop.permute.xlu0 %1898 }
 0xce2   :  { %v5899_v46 = vadd.f32 %v1899_v8, %v1840_v28  ;;  %v1825_v28 = vrot.slane %v5751_v36, 7  ;;  %v1844_v8 = vmul.f32 %v5876_v3, %v1828_v5  ;;  %v1845_v36 = vmul.f32 %v5885_v18, %v1829_v57 }
 0xce3   :  { %v1897_v44 = vpop.permute.xlu1 %1896 }
 0xce4   :  { %4784 = vtanh.f32 %v5899_v46  ;;  %v5912_v9 = vadd.f32 %v1897_v44, %v1839_v0  ;;  %v1841_v17 = vmul.f32 %v5880_v4, %v1825_v28 }
 0xce5   :  { %v1905_v42 = vpop.permute.xlu0 %1904  ;;  %4786 = vtanh.f32 %v5902_v16 }
 0xce6   :  { %v5909_v30 = vadd.f32 %v1905_v42, %v1843_v52 }
 0xce7   :  { %v1901_v56 = vpop.permute.xlu1 %1900 }
 0xce8   :  { %4788 = vtanh.f32 %v5909_v30  ;;  %v5922_v52 = vadd.f32 %v1901_v56, %v1841_v17 }
 0xce9   :  { %v1907_v13 = vpop.permute.xlu0 %1906  ;;  %4790 = vtanh.f32 %v5912_v9 }
 0xcea   :  { %v5919_v6 = vadd.f32 %v1907_v13, %v1844_v8 }
 0xceb   :  { %v1909_v42 = vpop.permute.xlu1 %1908 }
 0xcec   :  { %4792 = vtanh.f32 %v5919_v6  ;;  %v5927_v5 = vadd.f32 %v1909_v42, %v1845_v36 }
 0xced   :  { %v4783_v58 = vpop.eup %4782  ;;  %4794 = vtanh.f32 %v5922_v52 }
 0xcee   :  { %1942 = vrot.lane.b32.xlu0 %v4783_v58, %s5040_s0  ;;  %4796 = vtanh.f32 %v5927_v5 }
 0xcf1   :  { %v4785_v0 = vpop.eup %4784 }
 0xcf2   :  { %1946 = vrot.lane.b32.xlu0 %v4785_v0, %s5040_s0  ;;  %v4787_v58 = vpop.eup %4786 }
 0xcf3   :  { %1950 = vrot.lane.b32.xlu1 %v4787_v58, %s5040_s0 }
 0xcf5   :  { %v4789_v11 = vpop.eup %4788 }
 0xcf6   :  { %1952 = vrot.lane.b32.xlu0 %v4789_v11, %s5040_s0  ;;  %v4791_v44 = vpop.eup %4790 }
 0xcf7   :  { %1944 = vrot.lane.b32.xlu1 %v4791_v44, %s5040_s0 }
 0xcf9   :  { %v4793_v28 = vpop.eup %4792 }
 0xcfa   :  { %1954 = vrot.lane.b32.xlu0 %v4793_v28, %s5040_s0  ;;  %v4795_v8 = vpop.eup %4794 }
 0xcfb   :  { %1948 = vrot.lane.b32.xlu1 %v4795_v8, %s5040_s0  ;;  %v4797_v13 = vpop.eup %4796 }
 0xcff   :  { %1956 = vrot.lane.b32.xlu1 %v4797_v13, %s5040_s0 }
 0xd60   :  { %v1943_v17 = vpop.permute.xlu0 %1942 }
 0xd61   :  { %v5941_v0 = vmul.f32 %v5857_v61, %v1943_v17 }
 0xd63   :  { %v2015_v8 = vrot.slane %v5941_v0, 4 }
 0xd64   :  { %v1947_v56 = vpop.permute.xlu0 %1946 }
 0xd65   :  { %v1951_v57 = vpop.permute.xlu1 %1950  ;;  %v5938_v36 = vmul.f32 %v5861_v22, %v1947_v56 }
 0xd66   :  { %v5963_v51 = vmul.f32 %v5864_v19, %v1951_v57 }
 0xd67   :  { %v2018_v44 = vrot.slane %v5938_v36, 2 }
 0xd68   :  { %v1953_v42 = vpop.permute.xlu0 %1952  ;;  %6920 = vst [vmem:[#allocation23_spill] sm:$0xff] %v5963_v51 }
 0xd69   :  { %v1945_v58 = vpop.permute.xlu1 %1944  ;;  %v5950_v15 = vmul.f32 %v5868_v43, %v1953_v42 }
 0xd6a   :  { %v5944_v11 = vmul.f32 %v5872_v24, %v1945_v58 }
 0xd6b   :  { %6918 = vst [vmem:[#allocation21_spill] sm:$0xff] %v5950_v15  ;;  %v2023_v20 = vrot.slane %v5950_v15, 7 }
 0xd6c   :  { %v1955_v28 = vpop.permute.xlu0 %1954  ;;  %v2016_v13 = vrot.slane %v5944_v11, 3 }
 0xd6d   :  { %v1949_v22 = vpop.permute.xlu1 %1948  ;;  %v5953_v56 = vmul.f32 %v5876_v3, %v1955_v28 }
 0xd6e   :  { %v2017_v61 = vsel %vm533_vm2, %v2016_v13, %v2015_v8  ;;  %v5957_v17 = vmul.f32 %v5880_v4, %v1949_v22 }
 0xd6f   :  { %6919 = vst [vmem:[#allocation22_spill] sm:$0xff] %v5953_v56  ;;  %v2019_v24 = vsel %vm536_vm3, %v2018_v44, %v2017_v61  ;;  %v2025_v42 = vrot.slane %v5953_v56, 6 }
 0xd70   :  { %v2020_v58 = vrot.slane %v5957_v17, 1 }
 0xd71   :  { %v1957_v43 = vpop.permute.xlu1 %1956 }
 0xd72   :  { %v2021_v3 = vsel %vm539_vm4, %v2020_v58, %v2019_v24  ;;  %v5968_v28 = vmul.f32 %v5885_v18, %v1957_v43 }
 0xd73   :  { %v2022_v4 = vsel %vm542_vm5, %v5963_v51, %v2021_v3 }
 0xd74   :  { %6921 = vst [vmem:[#allocation24_spill] sm:$0xff] %v5968_v28  ;;  %v2027_v44 = vrot.slane %v5968_v28, 5  ;;  %v2024_v8 = vsel %vm545_vm6, %v2023_v20, %v2022_v4 }
 0xd75   :  { %v2026_v13 = vsel %vm548_vm7, %v2025_v42, %v2024_v8 }
 0xd76   :  { %v2028_v19 = vsel %vm6901_vm8, %v2027_v44, %v2026_v13 }
 0xd77   :  { %2029 = vrot.lane.b32.xlu0 %v2028_v19, %s5041_s3 }
 0xde9   :  { %v2030_v57 = vpop.permute.xlu0 %2029 }
 0xdea   :  { %4361 = vmatmul.mubr.msk.f32.vlgmr.msra.gmra.mxu0 %vm201_vm9, %v2030_v57 }
 0xdeb   :  { %4375 = vmatpush3.msra.mxu0 %v5668_v27  ;;  %4382 = vmatprep.mubr.msk.f32.mxu0 %vm5039_vm1, %v6917_v2 }
 0xdec   :  { %4376 = vmatprep.subr.mxu0 %v6917_v2 }
 0xded   :  { %4377 = vmatpush3.msra.mxu0 %v5677_v62 }
 0xdee   :  { %4378 = vmatprep.subr.mxu0 %v6917_v2 }
 0xdef   :  { %4379 = vmatpush3.msra.mxu0 %v5684_v40 }
 0xdf0   :  { %4380 = vmatprep.subr.mxu0 %v6917_v2 }
 0xdf1   :  { %4381 = vmatpush3.msra.mxu0 %v5691_v25 }
 0xdf2   :  { %4435 = vmatprep.subr.mxu0 %v6917_v2 }
 0xeaa   :  { %v2099_v20 = vpop.f32.mrf.mxu0 }
 0xeab   :  { %v2104_v18 = vrot.slane %v2099_v20, 3  ;;  %v2105_v61 = vrot.slane %v2099_v20, 4  ;;  %v2106_v24 = vrot.slane %v2099_v20, 5  ;;  %v2107_v58 = vrot.slane %v2099_v20, 6 }
 0xeac   :  { %v4362_v27 = vpop.f32.mrf.mxu0  ;;  %v2108_v43 = vrot.slane %v2099_v20, 7  ;;  %v2109_v42 = vrot.slane %v2099_v20, 1  ;;  %v2110_v44 = vrot.slane %v2099_v20, 2  ;;  %v2124_v13 = vadd.f32 %v2099_v20, %v5238_v41 }
 0xead   :  { %v2119_v22 = vadd.f32 %v2104_v18, %v5228_v29  ;;  %v2120_v62 = vadd.f32 %v2105_v61, %v5226_v26  ;;  %v2121_v40 = vadd.f32 %v2106_v24, %v5235_v37  ;;  %v2122_v3 = vadd.f32 %v2107_v58, %v5231_v32 }
 0xeae   :  { %v2123_v25 = vadd.f32 %v2108_v43, %v5241_v45  ;;  %v2125_v8 = vadd.f32 %v2109_v42, %v5247_v53  ;;  %v2126_v19 = vadd.f32 %v2110_v44, %v5244_v49 }
 0xeaf   :  { %4798 = vtanh.f32 %v2119_v22  ;;  %v4130_v43 = vmul.f32 -1.442695, %v2119_v22  ;;  %v4131_v42 = vmul.f32 -1.442695, %v2120_v62  ;;  %v4133_v44 = vmul.f32 -1.442695, %v2122_v3 }
 0xeb0   :  { %4800 = vtanh.f32 %v2120_v62 }
 0xeb1   :  { %4802 = vtanh.f32 %v2121_v40 }
 0xeb2   :  { %4804 = vtanh.f32 %v2122_v3 }
 0xeb3   :  { %4806 = vtanh.f32 %v2123_v25 }
 0xeb4   :  { %4808 = vtanh.f32 %v2125_v8 }
 0xeb5   :  { %4810 = vtanh.f32 %v2124_v13 }
 0xeb6   :  { %4812 = vtanh.f32 %v2126_v19 }
 0xeb7   :  { %4814 = vpow2.f32 %v4130_v43 }
 0xeb8   :  { %4816 = vpow2.f32 %v4131_v42 }
 0xebc   :  { %v4799_v4 = vpop.eup %4798 }
 0xebd   :  { %2223 = vrot.lane.b32.xlu1 %v4799_v4, %s5040_s0  ;;  %v4801_v57 = vpop.eup %4800  ;;  %v4132_v4 = vmul.f32 -1.442695, %v2121_v40 }
 0xebe   :  { %v4803_v18 = vpop.eup %4802  ;;  %2225 = vrot.lane.b32.xlu0 %v4801_v57, %s5040_s0  ;;  %v4134_v57 = vmul.f32 -1.442695, %v2123_v25 }
 0xebf   :  { %v4805_v27 = vpop.eup %4804  ;;  %4818 = vpow2.f32 %v4132_v4 }
 0xec0   :  { %v4807_v61 = vpop.eup %4806  ;;  %4820 = vpow2.f32 %v4133_v44 }
 0xec1   :  { %2227 = vrot.lane.b32.xlu1 %v4803_v18, %s5040_s0  ;;  %v4809_v20 = vpop.eup %4808  ;;  %4822 = vpow2.f32 %v4134_v57 }
 0xec2   :  { %2229 = vrot.lane.b32.xlu0 %v4805_v27, %s5040_s0  ;;  %v4811_v24 = vpop.eup %4810  ;;  %v4136_v27 = vmul.f32 -1.442695, %v2125_v8 }
 0xec3   :  { %v4813_v58 = vpop.eup %4812 }
 0xec4   :  { %v4815_v18 = vpop.eup %4814  ;;  %4824 = vpow2.f32 %v4136_v27 }
 0xec5   :  { %2231 = vrot.lane.b32.xlu1 %v4807_v61, %s5040_s0  ;;  %v4135_v61 = vmul.f32 -1.442695, %v2124_v13  ;;  %v2151_v28 = vadd.f32 1.0, %v4815_v18 }
 0xec6   :  { %2235 = vrot.lane.b32.xlu0 %v4809_v20, %s5040_s0  ;;  %v4137_v20 = vmul.f32 -1.442695, %v2126_v19 }
 0xec7   :  { %4826 = vpow2.f32 %v4135_v61 }
 0xec8   :  { %4828 = vrcp.f32 %v2151_v28 }
 0xec9   :  { %2233 = vrot.lane.b32.xlu1 %v4811_v24, %s5040_s0  ;;  %4830 = vpow2.f32 %v4137_v20  ;;  %v4817_v24 = vpop.eup %4816 }
 0xeca   :  { %2237 = vrot.lane.b32.xlu0 %v4813_v58, %s5040_s0  ;;  %v2152_v58 = vadd.f32 1.0, %v4817_v24 }
 0xecc   :  { %v4819_v22 = vpop.eup %4818  ;;  %4832 = vrcp.f32 %v2152_v58 }
 0xecd   :  { %v4821_v62 = vpop.eup %4820  ;;  %v2153_v40 = vadd.f32 1.0, %v4819_v22 }
 0xece   :  { %v4823_v43 = vpop.eup %4822  ;;  %v2154_v3 = vadd.f32 1.0, %v4821_v62 }
 0xecf   :  { %v2155_v42 = vadd.f32 1.0, %v4823_v43  ;;  %4834 = vrcp.f32 %v2153_v40 }
 0xed0   :  { %4836 = vrcp.f32 %v2154_v3 }
 0xed1   :  { %v4825_v25 = vpop.eup %4824  ;;  %4838 = vrcp.f32 %v2155_v42 }
 0xed2   :  { %v2157_v13 = vadd.f32 1.0, %v4825_v25 }
 0xed4   :  { %v4827_v8 = vpop.eup %4826  ;;  %4840 = vrcp.f32 %v2157_v13 }
 0xed5   :  { %v6004_v4 = vpop.eup %4828  ;;  %v2156_v28 = vadd.f32 1.0, %v4827_v8 }
 0xed6   :  { %v4831_v44 = vpop.eup %4830 }
 0xed7   :  { %v2158_v18 = vadd.f32 1.0, %v4831_v44  ;;  %4842 = vrcp.f32 %v2156_v28 }
 0xed9   :  { %4844 = vrcp.f32 %v2158_v18  ;;  %v6008_v27 = vpop.eup %4832 }
 0xedc   :  { %v6010_v20 = vpop.eup %4834 }
 0xedd   :  { %v6015_v62 = vpop.eup %4836 }
 0xede   :  { %v6018_v43 = vpop.eup %4838 }
 0xee1   :  { %v6023_v8 = vpop.eup %4840 }
 0xf2f   :  { %v2224_v19 = vpop.permute.xlu1 %2223 }
 0xf30   :  { %v2247_v57 = vmul.f32 %v6004_v4, %v2224_v19  ;;  %v2226_v61 = vpop.permute.xlu0 %2225  ;;  %v6026_v19 = vpop.eup %4842 }
 0xf31   :  { %v2248_v24 = vmul.f32 %v6008_v27, %v2226_v61  ;;  %v6031_v18 = vpop.eup %4844 }
 0xf32   :  { %2263 = vrot.lane.b32.xlu1 %v2247_v57, %s5041_s3 }
 0xf33   :  { %v2228_v22 = vpop.permute.xlu1 %2227  ;;  %2265 = vrot.lane.b32.xlu0 %v2248_v24, %s5041_s3 }
 0xf34   :  { %v2249_v58 = vmul.f32 %v6010_v20, %v2228_v22  ;;  %v2230_v40 = vpop.permute.xlu0 %2229  ;;  %v2191_v22 = vrot.slane %v5891_v21, 7 }
 0xf35   :  { %v2250_v3 = vmul.f32 %v6015_v62, %v2230_v40 }
 0xf36   :  { %2267 = vrot.lane.b32.xlu1 %v2249_v58, %s5041_s3  ;;  %v2207_v58 = vmul.f32 %v6004_v4, %v2191_v22 }
 0xf37   :  { %v2232_v25 = vpop.permute.xlu1 %2231  ;;  %2269 = vrot.lane.b32.xlu0 %v2250_v3, %s5041_s3 }
 0xf38   :  { %v2251_v42 = vmul.f32 %v6018_v43, %v2232_v25  ;;  %v2236_v13 = vpop.permute.xlu0 %2235  ;;  %v2192_v25 = vrot.slane %v5912_v9, 7 }
 0xf39   :  { %v2253_v44 = vmul.f32 %v6023_v8, %v2236_v13 }
 0xf3a   :  { %2271 = vrot.lane.b32.xlu1 %v2251_v42, %s5041_s3  ;;  %v2193_v42 = vrot.slane %v5899_v46, 7  ;;  %v2208_v13 = vmul.f32 %v6008_v27, %v2192_v25 }
 0xf3b   :  { %v2234_v28 = vpop.permute.xlu1 %2233  ;;  %2275 = vrot.lane.b32.xlu0 %v2253_v44, %s5041_s3 }
 0xf3c   :  { %v2252_v57 = vmul.f32 %v6026_v19, %v2234_v28  ;;  %v2238_v61 = vpop.permute.xlu0 %2237  ;;  %v2209_v28 = vmul.f32 %v6010_v20, %v2193_v42  ;;  %v2196_v42 = vrot.slane %v5909_v30, 7 }
 0xf3d   :  { %v2254_v24 = vmul.f32 %v6031_v18, %v2238_v61 }
 0xf3e   :  { %2273 = vrot.lane.b32.xlu1 %v2252_v57, %s5041_s3  ;;  %v2194_v57 = vrot.slane %v5922_v52, 7 }
 0xf3f   :  { %2277 = vrot.lane.b32.xlu0 %v2254_v24, %s5041_s3  ;;  %v2195_v24 = vrot.slane %v5902_v16, 7 }
 0xf40   :  { %v2210_v9 = vmul.f32 %v6015_v62, %v2194_v57  ;;  %v2212_v57 = vmul.f32 %v6026_v19, %v2196_v42 }
 0xf41   :  { %v2211_v46 = vmul.f32 %v6018_v43, %v2195_v24 }
 0xfa4   :  { %v2264_v40 = vpop.permute.xlu1 %2263 }
 0xfa5   :  { %v6038_v3 = vadd.f32 %v2264_v40, %v2207_v58  ;;  %v2266_v44 = vpop.permute.xlu0 %2265  ;;  %v2197_v40 = vrot.slane %v5919_v6, 7  ;;  %v2198_v6 = vrot.slane %v5927_v5, 7 }
 0xfa6   :  { %v6046_v61 = vadd.f32 %v2266_v44, %v2208_v13 }
 0xfa7   :  { %4846 = vtanh.f32 %v6038_v3  ;;  %v2213_v44 = vmul.f32 %v6023_v8, %v2197_v40 }
 0xfa8   :  { %v2268_v21 = vpop.permute.xlu1 %2267  ;;  %4848 = vtanh.f32 %v6046_v61 }
 0xfa9   :  { %v6049_v22 = vadd.f32 %v2268_v21, %v2209_v28  ;;  %v2270_v58 = vpop.permute.xlu0 %2269 }
 0xfaa   :  { %v6056_v25 = vadd.f32 %v2270_v58, %v2210_v9  ;;  %v2214_v9 = vmul.f32 %v6031_v18, %v2198_v6 }
 0xfab   :  { %4850 = vtanh.f32 %v6049_v22 }
 0xfac   :  { %v2272_v52 = vpop.permute.xlu1 %2271  ;;  %4852 = vtanh.f32 %v6056_v25 }
 0xfad   :  { %v6059_v13 = vadd.f32 %v2272_v52, %v2211_v46  ;;  %v2276_v28 = vpop.permute.xlu0 %2275 }
 0xfae   :  { %v6067_v21 = vadd.f32 %v2276_v28, %v2213_v44 }
 0xfaf   :  { %4854 = vtanh.f32 %v6059_v13 }
 0xfb0   :  { %v2274_v24 = vpop.permute.xlu1 %2273  ;;  %4856 = vtanh.f32 %v6067_v21 }
 0xfb1   :  { %v6069_v30 = vadd.f32 %v2274_v24, %v2212_v57  ;;  %v2278_v58 = vpop.permute.xlu0 %2277 }
 0xfb2   :  { %v6074_v46 = vadd.f32 %v2278_v58, %v2214_v9 }
 0xfb3   :  { %4858 = vtanh.f32 %v6069_v30 }
 0xfb4   :  { %v4847_v16 = vpop.eup %4846  ;;  %4860 = vtanh.f32 %v6074_v46 }
 0xfb5   :  { %2311 = vrot.lane.b32.xlu1 %v4847_v16, %s5040_s0  ;;  %v4849_v40 = vpop.eup %4848 }
 0xfb6   :  { %2313 = vrot.lane.b32.xlu0 %v4849_v40, %s5040_s0 }
 0xfb8   :  { %v4851_v52 = vpop.eup %4850 }
 0xfb9   :  { %2315 = vrot.lane.b32.xlu1 %v4851_v52, %s5040_s0  ;;  %v4853_v5 = vpop.eup %4852 }
 0xfba   :  { %2317 = vrot.lane.b32.xlu0 %v4853_v5, %s5040_s0 }
 0xfbc   :  { %v4855_v42 = vpop.eup %4854 }
 0xfbd   :  { %2319 = vrot.lane.b32.xlu1 %v4855_v42, %s5040_s0  ;;  %v4857_v16 = vpop.eup %4856 }
 0xfbe   :  { %2323 = vrot.lane.b32.xlu0 %v4857_v16, %s5040_s0 }
 0xfc0   :  { %v4859_v44 = vpop.eup %4858 }
 0xfc1   :  { %2321 = vrot.lane.b32.xlu1 %v4859_v44, %s5040_s0  ;;  %v4861_v28 = vpop.eup %4860 }
 0xfc2   :  { %2325 = vrot.lane.b32.xlu0 %v4861_v28, %s5040_s0 }
0x1027   :  { %v2312_v57 = vpop.permute.xlu1 %2311 }
0x1028   :  { %v6085_v6 = vmul.f32 %v6004_v4, %v2312_v57  ;;  %v2314_v24 = vpop.permute.xlu0 %2313 }
0x1029   :  { %v6088_v9 = vmul.f32 %v6008_v27, %v2314_v24 }
0x102a   :  { %v2384_v58 = vrot.slane %v6085_v6, 5 }
0x102b   :  { %v2316_v40 = vpop.permute.xlu1 %2315  ;;  %v2385_v5 = vrot.slane %v6088_v9, 4 }
0x102c   :  { %v6092_v52 = vmul.f32 %v6010_v20, %v2316_v40  ;;  %v2318_v42 = vpop.permute.xlu0 %2317 }
0x102d   :  { %v2386_v44 = vsel %vm533_vm2, %v2385_v5, %v2384_v58  ;;  %v6098_v4 = vmul.f32 %v6015_v62, %v2318_v42 }
0x102e   :  { %v2387_v16 = vrot.slane %v6092_v52, 3 }
0x102f   :  { %v2320_v28 = vpop.permute.xlu1 %2319  ;;  %v2389_v24 = vrot.slane %v6098_v4, 2 }
0x1030   :  { %v2388_v27 = vsel %vm536_vm3, %v2387_v16, %v2386_v44  ;;  %v6102_v57 = vmul.f32 %v6018_v43, %v2320_v28  ;;  %v2324_v20 = vpop.permute.xlu0 %2323 }
0x1031   :  { %v6107_v56 = vmul.f32 %v6023_v8, %v2324_v20  ;;  %v2390_v15 = vsel %vm539_vm4, %v2389_v24, %v2388_v27 }
0x1032   :  { %6922 = vst [vmem:[#allocation25_spill] sm:$0xff] %v6102_v57  ;;  %v2391_v40 = vrot.slane %v6102_v57, 1 }
0x1033   :  { %6923 = vst [vmem:[#allocation26_spill] sm:$0xff] %v6107_v56  ;;  %v2322_v58 = vpop.permute.xlu1 %2321  ;;  %v2394_v42 = vrot.slane %v6107_v56, 7 }
0x1034   :  { %v2392_v62 = vsel %vm542_vm5, %v2391_v40, %v2390_v15  ;;  %v6112_v5 = vmul.f32 %v6026_v19, %v2322_v58  ;;  %v2326_v43 = vpop.permute.xlu0 %2325 }
0x1035   :  { %v6118_v44 = vmul.f32 %v6031_v18, %v2326_v43 }
0x1036   :  { %6924 = vst [vmem:[#allocation27_spill] sm:$0xff] %v6112_v5  ;;  %v2393_v16 = vsel %vm545_vm6, %v6112_v5, %v2392_v62 }
0x1037   :  { %6925 = vst [vmem:[#allocation28_spill] sm:$0xff] %v6118_v44  ;;  %v2395_v8 = vsel %vm548_vm7, %v2394_v42, %v2393_v16  ;;  %v2396_v28 = vrot.slane %v6118_v44, 6 }
0x1039   :  { %v2397_v27 = vsel %vm6901_vm8, %v2396_v28, %v2395_v8 }
0x103a   :  { %2398 = vrot.lane.b32.xlu1 %v2397_v27, %s5041_s3 }
0x10ac   :  { %v2399_v15 = vpop.permute.xlu1 %2398 }
0x10ad   :  { %4372 = vmatmul.mubr.msk.f32.vlgmr.msra.gmra.mxu1 %vm201_vm9, %v2399_v15 }
0x116d   :  { %v2468_v19 = vpop.f32.mrf.mxu1 }
0x116e   :  { %v2473_v24 = vrot.slane %v2468_v19, 2  ;;  %v2474_v58 = vrot.slane %v2468_v19, 3  ;;  %v2475_v18 = vrot.slane %v2468_v19, 4  ;;  %v2476_v62 = vrot.slane %v2468_v19, 5 }
0x116f   :  { %v4373_v20 = vpop.f32.mrf.mxu1  ;;  %v2477_v43 = vrot.slane %v2468_v19, 6  ;;  %v2478_v8 = vrot.slane %v2468_v19, 7  ;;  %v2479_v27 = vrot.slane %v2468_v19, 1 }
0x1170   :  { %v2488_v40 = vadd.f32 %v2473_v24, %v5228_v29  ;;  %v2489_v42 = vadd.f32 %v2474_v58, %v5226_v26  ;;  %v2490_v16 = vadd.f32 %v2475_v18, %v5235_v37  ;;  %v2491_v28 = vadd.f32 %v2476_v62, %v5231_v32 }
0x1171   :  { %v2492_v15 = vadd.f32 %v2477_v43, %v5241_v45  ;;  %v2493_v24 = vadd.f32 %v2478_v8, %v5238_v41  ;;  %v2495_v44 = vadd.f32 %v2479_v27, %v5244_v49  ;;  %v2494_v58 = vadd.f32 %v2468_v19, %v5247_v53 }
0x1172   :  { %4862 = vtanh.f32 %v2488_v40  ;;  %v4141_v5 = vmul.f32 -1.442695, %v2490_v16 }
0x1173   :  { %4864 = vtanh.f32 %v2489_v42  ;;  %v4143_v57 = vmul.f32 -1.442695, %v2492_v15  ;;  %v4146_v63 = vmul.f32 -1.442695, %v2495_v44 }
0x1174   :  { %4866 = vtanh.f32 %v2490_v16 }
0x1175   :  { %4868 = vtanh.f32 %v2491_v28 }
0x1176   :  { %4870 = vtanh.f32 %v2492_v15 }
0x1177   :  { %4872 = vtanh.f32 %v2493_v24 }
0x1178   :  { %4874 = vtanh.f32 %v2495_v44 }
0x1179   :  { %4876 = vtanh.f32 %v2494_v58 }
0x117f   :  { %v4863_v20 = vpop.eup %4862 }
0x1180   :  { %2592 = vrot.lane.b32.xlu0 %v4863_v20, %s5040_s0  ;;  %v4865_v18 = vpop.eup %4864  ;;  %v4139_v20 = vmul.f32 -1.442695, %v2488_v40 }
0x1181   :  { %v4867_v62 = vpop.eup %4866  ;;  %2594 = vrot.lane.b32.xlu1 %v4865_v18, %s5040_s0  ;;  %v4140_v18 = vmul.f32 -1.442695, %v2489_v42 }
0x1182   :  { %v4869_v43 = vpop.eup %4868  ;;  %4878 = vpow2.f32 %v4139_v20 }
0x1183   :  { %v4871_v56 = vpop.eup %4870  ;;  %4880 = vpow2.f32 %v4140_v18 }
0x1184   :  { %2596 = vrot.lane.b32.xlu0 %v4867_v62, %s5040_s0  ;;  %v4873_v8 = vpop.eup %4872  ;;  %v4142_v62 = vmul.f32 -1.442695, %v2491_v28  ;;  %4882 = vpow2.f32 %v4141_v5 }
0x1185   :  { %2598 = vrot.lane.b32.xlu1 %v4869_v43, %s5040_s0  ;;  %v4875_v27 = vpop.eup %4874 }
0x1186   :  { %v4877_v19 = vpop.eup %4876  ;;  %4884 = vpow2.f32 %v4142_v62 }
0x1187   :  { %4886 = vpow2.f32 %v4143_v57 }
0x1188   :  { %2600 = vrot.lane.b32.xlu0 %v4871_v56, %s5040_s0  ;;  %v4144_v56 = vmul.f32 -1.442695, %v2493_v24 }
0x1189   :  { %2602 = vrot.lane.b32.xlu1 %v4873_v8, %s5040_s0  ;;  %v4145_v8 = vmul.f32 -1.442695, %v2494_v58 }
0x118a   :  { %4888 = vpow2.f32 %v4144_v56 }
0x118b   :  { %4890 = vpow2.f32 %v4146_v63 }
0x118c   :  { %2606 = vrot.lane.b32.xlu0 %v4875_v27, %s5040_s0 }
0x118d   :  { %2604 = vrot.lane.b32.xlu1 %v4877_v19, %s5040_s0 }
0x118f   :  { %v4879_v43 = vpop.eup %4878 }
0x1190   :  { %v2520_v38 = vadd.f32 1.0, %v4879_v43  ;;  %v4881_v27 = vpop.eup %4880 }
0x1191   :  { %v4883_v40 = vpop.eup %4882  ;;  %v2521_v19 = vadd.f32 1.0, %v4881_v27 }
0x1192   :  { %4892 = vrcp.f32 %v2520_v38  ;;  %v2522_v16 = vadd.f32 1.0, %v4883_v40 }
0x1193   :  { %4894 = vpow2.f32 %v4145_v8  ;;  %v4885_v42 = vpop.eup %4884 }
0x1194   :  { %v4887_v20 = vpop.eup %4886  ;;  %v2523_v28 = vadd.f32 1.0, %v4885_v42  ;;  %4896 = vrcp.f32 %v2521_v19 }
0x1195   :  { %v2524_v15 = vadd.f32 1.0, %v4887_v20  ;;  %4898 = vrcp.f32 %v2522_v16 }
0x1196   :  { %4900 = vrcp.f32 %v2523_v28 }
0x1197   :  { %v4889_v5 = vpop.eup %4888  ;;  %4902 = vrcp.f32 %v2524_v15 }
0x1198   :  { %v4891_v24 = vpop.eup %4890  ;;  %v2525_v44 = vadd.f32 1.0, %v4889_v5 }
0x1199   :  { %v2527_v38 = vadd.f32 1.0, %v4891_v24 }
0x119a   :  { %4904 = vrcp.f32 %v2525_v44 }
0x119b   :  { %4906 = vrcp.f32 %v2527_v38 }
0x119f   :  { %v6141_v57 = vpop.eup %4892 }
0x11a0   :  { %v4895_v63 = vpop.eup %4894 }
0x11a1   :  { %v2526_v62 = vadd.f32 1.0, %v4895_v63  ;;  %v6145_v43 = vpop.eup %4896 }
0x11a2   :  { %v6147_v8 = vpop.eup %4898 }
0x11a3   :  { %4908 = vrcp.f32 %v2526_v62  ;;  %v6152_v42 = vpop.eup %4900 }
0x11a4   :  { %v6155_v20 = vpop.eup %4902 }
0x11a7   :  { %v6160_v24 = vpop.eup %4904 }
0x11f2   :  { %v2593_v58 = vpop.permute.xlu0 %2592 }
0x11f3   :  { %v2616_v18 = vmul.f32 %v6141_v57, %v2593_v58  ;;  %v2595_v56 = vpop.permute.xlu1 %2594  ;;  %v6163_v58 = vpop.eup %4906 }
0x11f4   :  { %v2617_v27 = vmul.f32 %v6145_v43, %v2595_v56  ;;  %v6168_v62 = vpop.eup %4908 }
0x11f5   :  { %2632 = vrot.lane.b32.xlu0 %v2616_v18, %s5041_s3 }
0x11f6   :  { %v2597_v40 = vpop.permute.xlu0 %2596  ;;  %2634 = vrot.lane.b32.xlu1 %v2617_v27, %s5041_s3 }
0x11f7   :  { %v2618_v19 = vmul.f32 %v6147_v8, %v2597_v40  ;;  %v2599_v16 = vpop.permute.xlu1 %2598  ;;  %v2560_v40 = vrot.slane %v6038_v3, 7 }
0x11f8   :  { %v2619_v28 = vmul.f32 %v6152_v42, %v2599_v16 }
0x11f9   :  { %2636 = vrot.lane.b32.xlu0 %v2618_v19, %s5041_s3  ;;  %v2576_v19 = vmul.f32 %v6141_v57, %v2560_v40 }
0x11fa   :  { %v2601_v5 = vpop.permute.xlu0 %2600  ;;  %2638 = vrot.lane.b32.xlu1 %v2619_v28, %s5041_s3 }
0x11fb   :  { %v2620_v15 = vmul.f32 %v6155_v20, %v2601_v5  ;;  %v2603_v44 = vpop.permute.xlu1 %2602  ;;  %v2561_v5 = vrot.slane %v6046_v61, 7 }
0x11fc   :  { %v2621_v63 = vmul.f32 %v6160_v24, %v2603_v44 }
0x11fd   :  { %2640 = vrot.lane.b32.xlu0 %v2620_v15, %s5041_s3  ;;  %v2562_v15 = vrot.slane %v6049_v22, 7  ;;  %v2577_v44 = vmul.f32 %v6145_v43, %v2561_v5 }
0x11fe   :  { %v2607_v38 = vpop.permute.xlu0 %2606  ;;  %2642 = vrot.lane.b32.xlu1 %v2621_v63, %s5041_s3 }
0x11ff   :  { %v2623_v18 = vmul.f32 %v6163_v58, %v2607_v38  ;;  %v2605_v56 = vpop.permute.xlu1 %2604  ;;  %v2578_v38 = vmul.f32 %v6147_v8, %v2562_v15  ;;  %v2567_v15 = vrot.slane %v6074_v46, 7 }
0x1200   :  { %v2622_v27 = vmul.f32 %v6168_v62, %v2605_v56 }
0x1201   :  { %2646 = vrot.lane.b32.xlu0 %v2623_v18, %s5041_s3  ;;  %v2563_v18 = vrot.slane %v6056_v25, 7 }
0x1202   :  { %2644 = vrot.lane.b32.xlu1 %v2622_v27, %s5041_s3  ;;  %v2564_v27 = vrot.slane %v6059_v13, 7 }
0x1203   :  { %v2579_v61 = vmul.f32 %v6152_v42, %v2563_v18  ;;  %v2583_v18 = vmul.f32 %v6163_v58, %v2567_v15 }
0x1204   :  { %v2580_v22 = vmul.f32 %v6155_v20, %v2564_v27 }
0x1267   :  { %v2633_v16 = vpop.permute.xlu0 %2632 }
0x1268   :  { %v6175_v28 = vadd.f32 %v2633_v16, %v2576_v19  ;;  %v2635_v63 = vpop.permute.xlu1 %2634  ;;  %v2565_v16 = vrot.slane %v6069_v30, 7  ;;  %v2566_v30 = vrot.slane %v6067_v21, 7 }
0x1269   :  { %v6183_v56 = vadd.f32 %v2635_v63, %v2577_v44 }
0x126a   :  { %4910 = vtanh.f32 %v6175_v28  ;;  %v2581_v63 = vmul.f32 %v6160_v24, %v2565_v16 }
0x126b   :  { %v2637_v3 = vpop.permute.xlu0 %2636  ;;  %4912 = vtanh.f32 %v6183_v56 }
0x126c   :  { %v6186_v40 = vadd.f32 %v2637_v3, %v2578_v38  ;;  %v2639_v19 = vpop.permute.xlu1 %2638 }
0x126d   :  { %v6193_v5 = vadd.f32 %v2639_v19, %v2579_v61  ;;  %v2582_v61 = vmul.f32 %v6168_v62, %v2566_v30 }
0x126e   :  { %4914 = vtanh.f32 %v6186_v40 }
0x126f   :  { %v2641_v25 = vpop.permute.xlu0 %2640  ;;  %4916 = vtanh.f32 %v6193_v5 }
0x1270   :  { %v6196_v44 = vadd.f32 %v2641_v25, %v2580_v22  ;;  %v2643_v38 = vpop.permute.xlu1 %2642 }
0x1271   :  { %v6204_v3 = vadd.f32 %v2643_v38, %v2581_v63 }
0x1272   :  { %4918 = vtanh.f32 %v6196_v44 }
0x1273   :  { %v2647_v27 = vpop.permute.xlu0 %2646  ;;  %4920 = vtanh.f32 %v6204_v3 }
0x1274   :  { %v6206_v46 = vadd.f32 %v2647_v27, %v2583_v18  ;;  %v2645_v19 = vpop.permute.xlu1 %2644 }
0x1275   :  { %v6211_v22 = vadd.f32 %v2645_v19, %v2582_v61 }
0x1276   :  { %4922 = vtanh.f32 %v6206_v46 }
0x1277   :  { %v4911_v13 = vpop.eup %4910  ;;  %4924 = vtanh.f32 %v6211_v22 }
0x1278   :  { %2680 = vrot.lane.b32.xlu0 %v4911_v13, %s5040_s0  ;;  %v4913_v16 = vpop.eup %4912 }
0x1279   :  { %2682 = vrot.lane.b32.xlu1 %v4913_v16, %s5040_s0 }
0x127b   :  { %v4915_v25 = vpop.eup %4914 }
0x127c   :  { %2684 = vrot.lane.b32.xlu0 %v4915_v25, %s5040_s0  ;;  %v4917_v21 = vpop.eup %4916 }
0x127d   :  { %2686 = vrot.lane.b32.xlu1 %v4917_v21, %s5040_s0 }
0x127f   :  { %v4919_v15 = vpop.eup %4918 }
0x1280   :  { %2688 = vrot.lane.b32.xlu0 %v4919_v15, %s5040_s0  ;;  %v4921_v13 = vpop.eup %4920 }
0x1281   :  { %2690 = vrot.lane.b32.xlu1 %v4921_v13, %s5040_s0 }
0x1283   :  { %v4923_v63 = vpop.eup %4922 }
0x1284   :  { %2694 = vrot.lane.b32.xlu0 %v4923_v63, %s5040_s0  ;;  %v4925_v38 = vpop.eup %4924 }
0x1285   :  { %2692 = vrot.lane.b32.xlu1 %v4925_v38, %s5040_s0 }
0x12ea   :  { %v2681_v18 = vpop.permute.xlu0 %2680 }
0x12eb   :  { %v6222_v30 = vmul.f32 %v6141_v57, %v2681_v18  ;;  %v2683_v27 = vpop.permute.xlu1 %2682 }
0x12ec   :  { %v6225_v61 = vmul.f32 %v6145_v43, %v2683_v27 }
0x12ed   :  { %v2753_v19 = vrot.slane %v6222_v30, 6 }
0x12ee   :  { %v2685_v16 = vpop.permute.xlu0 %2684  ;;  %v2754_v21 = vrot.slane %v6225_v61, 5 }
0x12ef   :  { %v6229_v25 = vmul.f32 %v6147_v8, %v2685_v16  ;;  %v2687_v15 = vpop.permute.xlu1 %2686 }
0x12f0   :  { %v2755_v63 = vsel %vm533_vm2, %v2754_v21, %v2753_v19  ;;  %v6235_v57 = vmul.f32 %v6152_v42, %v2687_v15 }
0x12f1   :  { %v2756_v13 = vrot.slane %v6229_v25, 4 }
0x12f2   :  { %v2689_v38 = vpop.permute.xlu0 %2688  ;;  %v2758_v27 = vrot.slane %v6235_v57, 3 }
0x12f3   :  { %v2757_v43 = vsel %vm536_vm3, %v2756_v13, %v2755_v63  ;;  %v6239_v18 = vmul.f32 %v6155_v20, %v2689_v38  ;;  %v2691_v8 = vpop.permute.xlu1 %2690 }
0x12f4   :  { %v6244_v51 = vmul.f32 %v6160_v24, %v2691_v8  ;;  %v2759_v31 = vsel %vm539_vm4, %v2758_v27, %v2757_v43 }
0x12f5   :  { %v2760_v16 = vrot.slane %v6239_v18, 2 }
0x12f6   :  { %v2695_v19 = vpop.permute.xlu0 %2694  ;;  %v2762_v15 = vrot.slane %v6244_v51, 1 }
0x12f7   :  { %v2761_v42 = vsel %vm542_vm5, %v2760_v16, %v2759_v31  ;;  %v6249_v21 = vmul.f32 %v6163_v58, %v2695_v19  ;;  %v2693_v20 = vpop.permute.xlu1 %2692 }
0x12f8   :  { %v6254_v63 = vmul.f32 %v6168_v62, %v2693_v20  ;;  %v2763_v38 = vsel %vm545_vm6, %v2762_v15, %v2761_v42 }
0x12f9   :  { %v2765_v13 = vrot.slane %v6249_v21, 7 }
0x12fa   :  { %v2764_v24 = vsel %vm548_vm7, %v6254_v63, %v2763_v38 }
0x12fb   :  { %v2766_v43 = vsel %vm6901_vm8, %v2765_v13, %v2764_v24 }
0x12fc   :  { %2767 = vrot.lane.b32.xlu0 %v2766_v43, %s5041_s3 }
0x136e   :  { %v2768_v31 = vpop.permute.xlu0 %2767 }
0x136f   :  { %4383 = vmatmul.mubr.msk.f32.vlgmr.msra.gmra.mxu0 %vm201_vm9, %v2768_v31 }
0x1370   :  { %4467 = vmatprep.mubr.msk.f32.mxu0 %vm5039_vm1, %v6917_v2 }
0x142f   :  { %v2837_v58 = vpop.f32.mrf.mxu0 }
0x1430   :  { %v2842_v27 = vrot.slane %v2837_v58, 1  ;;  %v2843_v16 = vrot.slane %v2837_v58, 2  ;;  %v2844_v19 = vrot.slane %v2837_v58, 3  ;;  %v2845_v42 = vrot.slane %v2837_v58, 4 }
0x1431   :  { %v4384_v8 = vpop.f32.mrf.mxu0  ;;  %v2846_v20 = vrot.slane %v2837_v58, 5  ;;  %v2847_v38 = vrot.slane %v2837_v58, 6  ;;  %v2848_v43 = vrot.slane %v2837_v58, 7 }
0x1432   :  { %v2857_v62 = vadd.f32 %v2842_v27, %v5228_v29  ;;  %v2858_v15 = vadd.f32 %v2843_v16, %v5226_v26  ;;  %v2859_v13 = vadd.f32 %v2844_v19, %v5235_v37  ;;  %v2860_v24 = vadd.f32 %v2845_v42, %v5231_v32 }
0x1433   :  { %v2861_v31 = vadd.f32 %v2846_v20, %v5241_v45  ;;  %v2862_v29 = vadd.f32 %v2847_v38, %v5238_v41  ;;  %v2863_v27 = vadd.f32 %v2848_v43, %v5247_v53  ;;  %v2864_v26 = vadd.f32 %v2837_v58, %v5244_v49 }
0x1434   :  { %4926 = vtanh.f32 %v2857_v62  ;;  %v4148_v58 = vmul.f32 -1.442695, %v2857_v62  ;;  %v4150_v19 = vmul.f32 -1.442695, %v2859_v13 }
0x1435   :  { %4928 = vtanh.f32 %v2858_v15  ;;  %v4152_v42 = vmul.f32 -1.442695, %v2861_v31  ;;  %v4154_v38 = vmul.f32 -1.442695, %v2863_v27 }
0x1436   :  { %4930 = vtanh.f32 %v2859_v13 }
0x1437   :  { %4932 = vtanh.f32 %v2860_v24 }
0x1438   :  { %4934 = vtanh.f32 %v2861_v31 }
0x1439   :  { %4936 = vtanh.f32 %v2862_v29 }
0x143a   :  { %4938 = vtanh.f32 %v2863_v27 }
0x143b   :  { %4940 = vtanh.f32 %v2864_v26 }
0x143c   :  { %4942 = vpow2.f32 %v4148_v58 }
0x143d   :  { %4944 = vpow2.f32 %v4150_v19 }
0x143e   :  { %4946 = vpow2.f32 %v4152_v42 }
0x143f   :  { %4948 = vpow2.f32 %v4154_v38 }
0x1441   :  { %v4927_v8 = vpop.eup %4926 }
0x1442   :  { %2961 = vrot.lane.b32.xlu1 %v4927_v8, %s5040_s0  ;;  %v4929_v32 = vpop.eup %4928  ;;  %v4155_v8 = vmul.f32 -1.442695, %v2864_v26 }
0x1443   :  { %v4931_v37 = vpop.eup %4930  ;;  %2963 = vrot.lane.b32.xlu0 %v4929_v32, %s5040_s0  ;;  %v4149_v32 = vmul.f32 -1.442695, %v2858_v15 }
0x1444   :  { %v4933_v45 = vpop.eup %4932 }
0x1445   :  { %v4935_v16 = vpop.eup %4934 }
0x1446   :  { %2965 = vrot.lane.b32.xlu1 %v4931_v37, %s5040_s0  ;;  %v4937_v41 = vpop.eup %4936 }
0x1447   :  { %2967 = vrot.lane.b32.xlu0 %v4933_v45, %s5040_s0  ;;  %v4939_v53 = vpop.eup %4938 }
0x1448   :  { %v4941_v49 = vpop.eup %4940 }
0x1449   :  { %v4943_v20 = vpop.eup %4942 }
0x144a   :  { %2969 = vrot.lane.b32.xlu1 %v4935_v16, %s5040_s0  ;;  %v2889_v43 = vadd.f32 1.0, %v4943_v20 }
0x144b   :  { %2971 = vrot.lane.b32.xlu0 %v4937_v41, %s5040_s0 }
0x144c   :  { %4950 = vrcp.f32 %v2889_v43 }
0x144d   :  { %4952 = vpow2.f32 %v4155_v8 }
0x144e   :  { %2973 = vrot.lane.b32.xlu1 %v4939_v53, %s5040_s0  ;;  %4954 = vpow2.f32 %v4149_v32 }
0x144f   :  { %2975 = vrot.lane.b32.xlu0 %v4941_v49, %s5040_s0 }
0x1452   :  { %499 = vrot.lane.b32.xlu1 %v5334_v48, %s5041_s3  ;;  %v4945_v48 = vpop.eup %4944 }
0x1453   :  { %875 = vrot.lane.b32.xlu0 %v5481_v14, %s5041_s3  ;;  %v4151_v14 = vmul.f32 -1.442695, %v2860_v24  ;;  %v2891_v37 = vadd.f32 1.0, %v4945_v48  ;;  %v4947_v45 = vpop.eup %4946 }
0x1454   :  { %v2893_v62 = vadd.f32 1.0, %v4947_v45  ;;  %v4949_v13 = vpop.eup %4948 }
0x1455   :  { %4956 = vpow2.f32 %v4151_v14  ;;  %v2895_v26 = vadd.f32 1.0, %v4949_v13 }
0x1456   :  { %1244 = vrot.lane.b32.xlu1 %v5625_v23, %s5041_s3  ;;  %v4153_v23 = vmul.f32 -1.442695, %v2862_v29  ;;  %4958 = vrcp.f32 %v2891_v37 }
0x1458   :  { %4960 = vpow2.f32 %v4153_v23 }
0x1459   :  { %v6286_v31 = vpop.eup %4950  ;;  %4962 = vrcp.f32 %v2893_v62 }
0x145a   :  { %v4953_v16 = vpop.eup %4952  ;;  %4964 = vrcp.f32 %v2895_v26 }
0x145b   :  { %v2896_v41 = vadd.f32 1.0, %v4953_v16  ;;  %v4955_v24 = vpop.eup %4954 }
0x145c   :  { %v2890_v53 = vadd.f32 1.0, %v4955_v24 }
0x145d   :  { %4966 = vrcp.f32 %v2896_v41 }
0x145e   :  { %4968 = vrcp.f32 %v2890_v53 }
0x1462   :  { %v4957_v29 = vpop.eup %4956 }
0x1463   :  { %v6290_v58 = vpop.eup %4958  ;;  %v2892_v20 = vadd.f32 1.0, %v4957_v29 }
0x1465   :  { %v4961_v38 = vpop.eup %4960  ;;  %4970 = vrcp.f32 %v2892_v20 }
0x1466   :  { %v6294_v8 = vpop.eup %4962  ;;  %v2894_v14 = vadd.f32 1.0, %v4961_v38  ;;  %v2934_v38 = vrot.slane %v6204_v3, 7 }
0x1467   :  { %v6298_v45 = vpop.eup %4964 }
0x1468   :  { %4972 = vrcp.f32 %v2894_v14 }
0x146a   :  { %v6301_v13 = vpop.eup %4966 }
0x14b4   :  { %v2962_v27 = vpop.permute.xlu1 %2961 }
0x14b5   :  { %v2985_v15 = vmul.f32 %v6286_v31, %v2962_v27  ;;  %v2964_v49 = vpop.permute.xlu0 %2963 }
0x14b7   :  { %3001 = vrot.lane.b32.xlu1 %v2985_v15, %s5041_s3  ;;  %v6307_v15 = vpop.eup %4968 }
0x14b8   :  { %v2966_v19 = vpop.permute.xlu1 %2965  ;;  %v2986_v24 = vmul.f32 %v6307_v15, %v2964_v49  ;;  %v6315_v29 = vpop.eup %4970 }
0x14b9   :  { %v2987_v42 = vmul.f32 %v6290_v58, %v2966_v19  ;;  %v2968_v43 = vpop.permute.xlu0 %2967 }
0x14ba   :  { %v2988_v19 = vmul.f32 %v6315_v29, %v2968_v43 }
0x14bb   :  { %3005 = vrot.lane.b32.xlu1 %v2987_v42, %s5041_s3  ;;  %v6321_v42 = vpop.eup %4972 }
0x14bc   :  { %v2970_v32 = vpop.permute.xlu1 %2969 }
0x14bd   :  { %v2989_v48 = vmul.f32 %v6294_v8, %v2970_v32  ;;  %v2972_v37 = vpop.permute.xlu0 %2971 }
0x14bf   :  { %3009 = vrot.lane.b32.xlu1 %v2989_v48, %s5041_s3 }
0x14c0   :  { %v2974_v23 = vpop.permute.xlu1 %2973 }
0x14c1   :  { %v2991_v62 = vmul.f32 %v6298_v45, %v2974_v23  ;;  %v2976_v27 = vpop.permute.xlu0 %2975 }
0x14c2   :  { %v2992_v16 = vmul.f32 %v6301_v13, %v2976_v27 }
0x14c3   :  { %3013 = vrot.lane.b32.xlu1 %v2991_v62, %s5041_s3 }
0x14c4   :  { %v500_v26 = vpop.permute.xlu1 %499  ;;  %3015 = vrot.lane.b32.xlu0 %v2992_v16, %s5041_s3 }
0x14c5   :  { %524 = vst.msk [vmem:[#allocation2] sm:$0x1] %vm523_vm10, %v500_v26  ;;  %v876_v41 = vpop.permute.xlu0 %875 }
0x14c6   :  { %900 = vst.msk [vmem:[#allocation2] sm:$0x2] %vm899_vm11, %v876_v41 }
0x14c7   :  { %1982 = vrot.lane.b32.xlu1 %v5941_v0, %s5041_s3  ;;  %v2990_v0 = vmul.f32 %v6321_v42, %v2972_v37 }
0x14c8   :  { %v1245_v53 = vpop.permute.xlu1 %1244  ;;  %3003 = vrot.lane.b32.xlu0 %v2986_v24, %s5041_s3  ;;  %v6926_v24 = vld [vmem:[#allocation13_spill] sm:$0xff] }
0x14c9   :  { %1269 = vst.msk [vmem:[#allocation2] sm:$0x4] %vm1268_vm12, %v1245_v53 }
0x14cb   :  { %2720 = vrot.lane.b32.xlu1 %v6222_v30, %s5041_s3 }
0x14cc   :  { %3007 = vrot.lane.b32.xlu0 %v2988_v19, %s5041_s3 }
0x14cf   :  { %501 = vrot.lane.b32.xlu1 %v5331_v47, %s5041_s3  ;;  %v2929_v47 = vrot.slane %v6175_v28, 7  ;;  %v2930_v28 = vrot.slane %v6183_v56, 7 }
0x14d0   :  { %3011 = vrot.lane.b32.xlu0 %v2990_v0, %s5041_s3 }
0x14d3   :  { %1246 = vrot.lane.b32.xlu1 %v5631_v34, %s5041_s3  ;;  %v2933_v34 = vrot.slane %v6196_v44, 7 }
0x14d4   :  { %1613 = vrot.lane.b32.xlu0 %v5792_v12, %s5041_s3 }
0x14d5   :  { %v2949_v12 = vmul.f32 %v6294_v8, %v2933_v34 }
0x14d7   :  { %1984 = vrot.lane.b32.xlu1 %v5944_v11, %s5041_s3 }
0x14d8   :  { %2351 = vrot.lane.b32.xlu0 %v6085_v6, %s5041_s3 }
0x14db   :  { %2722 = vrot.lane.b32.xlu1 %v6225_v61, %s5041_s3 }
0x14dc   :  { %877 = vrot.lane.b32.xlu0 %v5487_v1, %s5041_s3 }
0x14df   :  { %503 = vrot.lane.b32.xlu1 %v5340_v55, %s5041_s3 }
0x14e0   :  { %1615 = vrot.lane.b32.xlu0 %v5795_v10, %s5041_s3 }
0x14e3   :  { %1248 = vrot.lane.b32.xlu1 %v5640_v60, %s5041_s3 }
0x14e4   :  { %2353 = vrot.lane.b32.xlu0 %v6088_v9, %s5041_s3 }
0x14e7   :  { %1986 = vrot.lane.b32.xlu1 %v5938_v36, %s5041_s3 }
0x14e8   :  { %879 = vrot.lane.b32.xlu0 %v5478_v39, %s5041_s3 }
0x14eb   :  { %2724 = vrot.lane.b32.xlu1 %v6229_v25, %s5041_s3 }
0x14ec   :  { %1617 = vrot.lane.b32.xlu0 %v5805_v33, %s5041_s3  ;;  %v2935_v33 = vrot.slane %v6211_v22, 7  ;;  %v2946_v22 = vmul.f32 %v6307_v15, %v2930_v28  ;;  %v6936_v28 = vld [vmem:[#allocation7_spill] sm:$0xff] }
0x14ee   :  { %v2951_v11 = vmul.f32 %v6298_v45, %v2935_v33  ;;  %v6932_v33 = vld [vmem:[#allocation25_spill] sm:$0xff] }
0x14ef   :  { %505 = vrot.lane.b32.xlu1 %v5337_v50, %s5041_s3  ;;  %v2945_v50 = vmul.f32 %v6286_v31, %v2929_v47 }
0x14f0   :  { %2355 = vrot.lane.b32.xlu0 %v6092_v52, %s5041_s3 }
0x14f3   :  { %1250 = vrot.lane.b32.xlu1 %v5628_v35, %s5041_s3 }
0x14f4   :  { %881 = vrot.lane.b32.xlu0 %v5484_v54, %s5041_s3  ;;  %v2931_v54 = vrot.slane %v6186_v40, 7 }
0x14f6   :  { %v2947_v1 = vmul.f32 %v6290_v58, %v2931_v54  ;;  %v6928_v54 = vld [vmem:[#allocation9_spill] sm:$0xff] }
0x14f7   :  { %1988 = vrot.lane.b32.xlu1 %v5957_v17, %s5041_s3  ;;  %v2936_v17 = vrot.slane %v6206_v46, 7  ;;  %v2932_v46 = vrot.slane %v6193_v5, 7  ;;  %v2950_v5 = vmul.f32 %v6321_v42, %v2934_v38  ;;  %v6946_v38 = vld [vmem:[#allocation19_spill] sm:$0xff] }
0x14f8   :  { %1619 = vrot.lane.b32.xlu0 %v5813_v7, %s5041_s3 }
0x14f9   :  { %v2952_v52 = vmul.f32 %v6301_v13, %v2936_v17  ;;  %v2948_v56 = vmul.f32 %v6315_v29, %v2932_v46  ;;  %v6934_v17 = vld [vmem:[#allocation10_spill] sm:$0xff] }
0x14fa   :  { %v6940_v46 = vld [vmem:[#allocation22_spill] sm:$0xff] }
0x14fb   :  { %2726 = vrot.lane.b32.xlu1 %v6235_v57, %s5041_s3 }
0x14fc   :  { %2357 = vrot.lane.b32.xlu0 %v6098_v4, %s5041_s3 }
0x1529   :  { %v3002_v55 = vpop.permute.xlu1 %3001 }
0x152a   :  { %v3025_v39 = vadd.f32 %v3002_v55, %v2945_v50 }
0x152c   :  { %4974 = vtanh.f32 %v3025_v39 }
0x152d   :  { %v3006_v35 = vpop.permute.xlu1 %3005 }
0x152e   :  { %v3027_v60 = vadd.f32 %v3006_v35, %v2947_v1  ;;  %v6929_v35 = vld [vmem:[#allocation6_spill] sm:$0xff] }
0x1530   :  { %4976 = vtanh.f32 %v3027_v60  ;;  %v6930_v60 = vld [vmem:[#allocation18_spill] sm:$0xff] }
0x1531   :  { %v3010_v10 = vpop.permute.xlu1 %3009 }
0x1532   :  { %v3029_v7 = vadd.f32 %v3010_v10, %v2949_v12 }
0x1534   :  { %4978 = vtanh.f32 %v3029_v7 }
0x1535   :  { %v3014_v6 = vpop.permute.xlu1 %3013 }
0x1536   :  { %v3031_v9 = vadd.f32 %v3014_v6, %v2951_v11  ;;  %v3016_v4 = vpop.permute.xlu0 %3015 }
0x1537   :  { %v3032_v40 = vadd.f32 %v3016_v4, %v2952_v52  ;;  %v6935_v52 = vld [vmem:[#allocation17_spill] sm:$0xff] }
0x1538   :  { %4980 = vtanh.f32 %v3031_v9 }
0x1539   :  { %v4975_v36 = vpop.eup %4974  ;;  %v1983_v44 = vpop.permute.xlu1 %1982  ;;  %4982 = vtanh.f32 %v3032_v40 }
0x153a   :  { %3049 = vrot.lane.b32.xlu1 %v4975_v36, %s5040_s0  ;;  %2007 = vst.msk [vmem:[#allocation2] sm:$0x10] %vm2006_vm13, %v1983_v44  ;;  %v3004_v30 = vpop.permute.xlu0 %3003  ;;  %v6933_v36 = vld [vmem:[#allocation21_spill] sm:$0xff]  ;;  %v6937_v44 = vld [vmem:[#allocation27_spill] sm:$0xff] }
0x153b   :  { %v3026_v25 = vadd.f32 %v3004_v30, %v2946_v22 }
0x153d   :  { %v4977_v61 = vpop.eup %4976  ;;  %v2721_v57 = vpop.permute.xlu1 %2720  ;;  %4984 = vtanh.f32 %v3026_v25  ;;  %v6941_v25 = vld [vmem:[#allocation20_spill] sm:$0xff] }
0x153e   :  { %2745 = vst.msk [vmem:[#allocation2] sm:$0x40] %vm2744_vm14, %v2721_v57  ;;  %3053 = vrot.lane.b32.xlu1 %v4977_v61, %s5040_s0  ;;  %v3008_v49 = vpop.permute.xlu0 %3007  ;;  %v6939_v61 = vld [vmem:[#allocation11_spill] sm:$0xff]  ;;  %v6942_v57 = vld [vmem:[#allocation26_spill] sm:$0xff] }
0x153f   :  { %v3028_v43 = vadd.f32 %v3008_v49, %v2948_v56  ;;  %v6943_v56 = vld [vmem:[#allocation8_spill] sm:$0xff] }
0x1540   :  { %v6944_v49 = vld [vmem:[#allocation12_spill] sm:$0xff] }
0x1541   :  { %v4979_v20 = vpop.eup %4978  ;;  %v502_v32 = vpop.permute.xlu1 %501  ;;  %4986 = vtanh.f32 %v3028_v43  ;;  %v6947_v43 = vld [vmem:[#allocation24_spill] sm:$0xff] }
0x1542   :  { %525 = vst.msk [vmem:[#allocation2 + $0x8] sm:$0x1] %vm523_vm10, %v502_v32  ;;  %3057 = vrot.lane.b32.xlu1 %v4979_v20, %s5040_s0  ;;  %v3012_v48 = vpop.permute.xlu0 %3011  ;;  %v6945_v20 = vld [vmem:[#allocation16_spill] sm:$0xff]  ;;  %v3270_v32 = vlaneseq }
0x1543   :  { %v3030_v37 = vadd.f32 %v3012_v48, %v2950_v5 }
0x1544   :  { %v6477_v5 = vshrl.u32 %v3270_v32, 7 }
0x1545   :  { %v4981_v14 = vpop.eup %4980  ;;  %v1247_v23 = vpop.permute.xlu1 %1246  ;;  %4988 = vtanh.f32 %v3030_v37 }
0x1546   :  { %1270 = vst.msk [vmem:[#allocation2 + $0x8] sm:$0x4] %vm1268_vm12, %v1247_v23  ;;  %3061 = vrot.lane.b32.xlu1 %v4981_v14, %s5040_s0  ;;  %v4983_v3 = vpop.eup %4982  ;;  %v1614_v62 = vpop.permute.xlu0 %1613  ;;  %v6480_v48 = vsub.s32 7, %v6477_v5 }
0x1547   :  { %1638 = vst.msk [vmem:[#allocation2] sm:$0x8] %vm1637_vm15, %v1614_v62  ;;  %3063 = vrot.lane.b32.xlu0 %v4983_v3, %s5040_s0 }
0x1549   :  { %v1985_v27 = vpop.permute.xlu1 %1984 }
0x154a   :  { %2008 = vst.msk [vmem:[#allocation2 + $0x8] sm:$0x10] %vm2006_vm13, %v1985_v27  ;;  %507 = vrot.lane.b32.xlu1 %v5344_v59, %s5041_s3  ;;  %v4985_v16 = vpop.eup %4984  ;;  %v2352_v26 = vpop.permute.xlu0 %2351  ;;  %v6927_v59 = vld [vmem:[#allocation23_spill] sm:$0xff] }
0x154b   :  { %2376 = vst.msk [vmem:[#allocation2] sm:$0x20] %vm2375_vm0, %v2352_v26  ;;  %3051 = vrot.lane.b32.xlu0 %v4985_v16, %s5040_s0  ;;  %v3132_v26 = vld [vmem:[%s6865_s4 + $0x10] sm:$0xff] }
0x154d   :  { %v2723_v41 = vpop.permute.xlu1 %2722 }
0x154e   :  { %2746 = vst.msk [vmem:[#allocation2 + $0x8] sm:$0x40] %vm2744_vm14, %v2723_v41  ;;  %1252 = vrot.lane.b32.xlu1 %v6926_v24, %s5041_s3  ;;  %v4987_v53 = vpop.eup %4986  ;;  %v878_v19 = vpop.permute.xlu0 %877 }
0x154f   :  { %901 = vst.msk [vmem:[#allocation2 + $0x8] sm:$0x2] %vm899_vm11, %v878_v19  ;;  %3055 = vrot.lane.b32.xlu0 %v4987_v53, %s5040_s0  ;;  %v3130_v53 = vld [vmem:[%s6865_s4] sm:$0xff] }
0x1551   :  { %v504_v0 = vpop.permute.xlu1 %503 }
0x1552   :  { %526 = vst.msk [vmem:[#allocation2 + $0x10] sm:$0x1] %vm523_vm10, %v504_v0  ;;  %1990 = vrot.lane.b32.xlu1 %v6927_v59, %s5041_s3  ;;  %v4989_v47 = vpop.eup %4988  ;;  %v1616_v50 = vpop.permute.xlu0 %1615 }
0x1553   :  { %1639 = vst.msk [vmem:[#allocation2 + $0x8] sm:$0x8] %vm1637_vm15, %v1616_v50  ;;  %3059 = vrot.lane.b32.xlu0 %v4989_v47, %s5040_s0 }
0x1555   :  { %v1249_v55 = vpop.permute.xlu1 %1248 }
0x1556   :  { %1271 = vst.msk [vmem:[#allocation2 + $0x10] sm:$0x4] %vm1268_vm12, %v1249_v55  ;;  %2728 = vrot.lane.b32.xlu1 %v6239_v18, %s5041_s3  ;;  %v2354_v39 = vpop.permute.xlu0 %2353  ;;  %v6931_v18 = vld [vmem:[#allocation14_spill] sm:$0xff] }
0x1557   :  { %2377 = vst.msk [vmem:[#allocation2 + $0x8] sm:$0x20] %vm2375_vm0, %v2354_v39  ;;  %883 = vrot.lane.b32.xlu0 %v6928_v54, %s5041_s3 }
0x1559   :  { %v1987_v1 = vpop.permute.xlu1 %1986 }
0x155a   :  { %2009 = vst.msk [vmem:[#allocation2 + $0x10] sm:$0x10] %vm2006_vm13, %v1987_v1  ;;  %509 = vrot.lane.b32.xlu1 %v6929_v35, %s5041_s3  ;;  %v880_v34 = vpop.permute.xlu0 %879 }
0x155b   :  { %902 = vst.msk [vmem:[#allocation2 + $0x10] sm:$0x2] %vm899_vm11, %v880_v34  ;;  %1621 = vrot.lane.b32.xlu0 %v6930_v60, %s5041_s3 }
0x155d   :  { %v2725_v12 = vpop.permute.xlu1 %2724 }
0x155e   :  { %2747 = vst.msk [vmem:[#allocation2 + $0x10] sm:$0x40] %vm2744_vm14, %v2725_v12  ;;  %1254 = vrot.lane.b32.xlu1 %v6931_v18, %s5041_s3  ;;  %v1618_v10 = vpop.permute.xlu0 %1617 }
0x155f   :  { %1640 = vst.msk [vmem:[#allocation2 + $0x10] sm:$0x8] %vm1637_vm15, %v1618_v10  ;;  %2359 = vrot.lane.b32.xlu0 %v6932_v33, %s5041_s3 }
0x1561   :  { %v506_v7 = vpop.permute.xlu1 %505 }
0x1562   :  { %527 = vst.msk [vmem:[#allocation2 + $0x18] sm:$0x1] %vm523_vm10, %v506_v7  ;;  %1992 = vrot.lane.b32.xlu1 %v6933_v36, %s5041_s3  ;;  %v2356_v11 = vpop.permute.xlu0 %2355 }
0x1563   :  { %2378 = vst.msk [vmem:[#allocation2 + $0x10] sm:$0x20] %vm2375_vm0, %v2356_v11  ;;  %885 = vrot.lane.b32.xlu0 %v6934_v17, %s5041_s3 }
0x1565   :  { %v1251_v6 = vpop.permute.xlu1 %1250 }
0x1566   :  { %1272 = vst.msk [vmem:[#allocation2 + $0x18] sm:$0x4] %vm1268_vm12, %v1251_v6  ;;  %2730 = vrot.lane.b32.xlu1 %v6244_v51, %s5041_s3  ;;  %v882_v9 = vpop.permute.xlu0 %881  ;;  %v6938_v51 = vld [vmem:[#allocation15_spill] sm:$0xff] }
0x1567   :  { %903 = vst.msk [vmem:[#allocation2 + $0x18] sm:$0x2] %vm899_vm11, %v882_v9  ;;  %1623 = vrot.lane.b32.xlu0 %v6935_v52, %s5041_s3 }
0x1569   :  { %v1989_v4 = vpop.permute.xlu1 %1988 }
0x156a   :  { %2010 = vst.msk [vmem:[#allocation2 + $0x18] sm:$0x10] %vm2006_vm13, %v1989_v4  ;;  %511 = vrot.lane.b32.xlu1 %v6936_v28, %s5041_s3  ;;  %v1620_v40 = vpop.permute.xlu0 %1619 }
0x156b   :  { %1641 = vst.msk [vmem:[#allocation2 + $0x18] sm:$0x8] %vm1637_vm15, %v1620_v40  ;;  %2361 = vrot.lane.b32.xlu0 %v6937_v44, %s5041_s3 }
0x156d   :  { %v2727_v22 = vpop.permute.xlu1 %2726 }
0x156e   :  { %2748 = vst.msk [vmem:[#allocation2 + $0x18] sm:$0x40] %vm2744_vm14, %v2727_v22  ;;  %1256 = vrot.lane.b32.xlu1 %v6938_v51, %s5041_s3  ;;  %v2358_v30 = vpop.permute.xlu0 %2357 }
0x156f   :  { %2379 = vst.msk [vmem:[#allocation2 + $0x18] sm:$0x20] %vm2375_vm0, %v2358_v30  ;;  %887 = vrot.lane.b32.xlu0 %v6939_v61, %s5041_s3 }
0x1572   :  { %1994 = vrot.lane.b32.xlu1 %v6940_v46, %s5041_s3 }
0x1573   :  { %1625 = vrot.lane.b32.xlu0 %v6941_v25, %s5041_s3 }
0x1576   :  { %2732 = vrot.lane.b32.xlu1 %v6254_v63, %s5041_s3  ;;  %v6948_v63 = vld [vmem:[#allocation28_spill] sm:$0xff] }
0x1577   :  { %2363 = vrot.lane.b32.xlu0 %v6942_v57, %s5041_s3 }
0x157a   :  { %513 = vrot.lane.b32.xlu1 %v6943_v56, %s5041_s3 }
0x157b   :  { %889 = vrot.lane.b32.xlu0 %v6944_v49, %s5041_s3 }
0x157e   :  { %1258 = vrot.lane.b32.xlu1 %v6945_v20, %s5041_s3 }
0x157f   :  { %1627 = vrot.lane.b32.xlu0 %v6946_v38, %s5041_s3 }
0x1582   :  { %1996 = vrot.lane.b32.xlu1 %v6947_v43, %s5041_s3 }
0x1583   :  { %2365 = vrot.lane.b32.xlu0 %v6948_v63, %s5041_s3 }
0x1586   :  { %2734 = vrot.lane.b32.xlu1 %v6249_v21, %s5041_s3 }
0x15ac   :  { %v3050_v14 = vpop.permute.xlu1 %3049 }
0x15ad   :  { %v3073_v37 = vmul.f32 %v6286_v31, %v3050_v14  ;;  %v3133_v31 = vld [vmem:[%s6865_s4 + $0x18] sm:$0xff] }
0x15ae   :  { %4385 = vmatprep.subr.mxu1 %v3133_v31 }
0x15af   :  { %v3273_v23 = vrot.slane %v3073_v37, %v6480_v48  ;;  %3089 = vrot.lane.b32.xlu0 %v3073_v37, %s5041_s3  ;;  %4386 = vmatpush3.msra.mxu1 %v3133_v31  ;;  %v3730_v55 = vrot.slane %v3073_v37, 7 }
0x15b0   :  { %v3054_v3 = vpop.permute.xlu1 %3053  ;;  %4387 = vmatprep.subr.mxu1 %v3132_v26 }
0x15b1   :  { %3310 = vrot.lane.b32.xlu1 %v3273_v23, %s5041_s3  ;;  %v3075_v62 = vmul.f32 %v6290_v58, %v3054_v3  ;;  %4388 = vmatpush3.msra.mxu1 %v3132_v26 }
0x15b3   :  { %v3281_v21 = vrot.slane %v3075_v62, %v6480_v48  ;;  %v3733_v54 = vrot.slane %v3075_v62, 5 }
0x15b4   :  { %v3058_v27 = vpop.permute.xlu1 %3057 }
0x15b5   :  { %v3077_v16 = vmul.f32 %v6294_v8, %v3058_v27  ;;  %3314 = vrot.lane.b32.xlu1 %v3281_v21, %s5041_s3  ;;  %v3131_v8 = vld [vmem:[%s6865_s4 + $0x8] sm:$0xff] }
0x15b6   :  { %4389 = vmatprep.subr.mxu1 %v3131_v8 }
0x15b7   :  { %v3289_v41 = vrot.slane %v3077_v16, %v6480_v48  ;;  %4390 = vmatpush3.msra.mxu1 %v3131_v8 }
0x15b8   :  { %v3062_v58 = vpop.permute.xlu1 %3061  ;;  %4391 = vmatprep.subr.mxu1 %v3130_v53 }
0x15b9   :  { %v3079_v24 = vmul.f32 %v6298_v45, %v3062_v58  ;;  %3318 = vrot.lane.b32.xlu1 %v3289_v41, %s5041_s3  ;;  %v3064_v19 = vpop.permute.xlu0 %3063  ;;  %4392 = vmatpush3.msra.mxu1 %v3130_v53 }
0x15ba   :  { %4405 = vmatprep.subr.mxu1 %v6917_v2  ;;  %v3080_v9 = vmul.f32 %v6301_v13, %v3064_v19 }
0x15bb   :  { %v3297_v0 = vrot.slane %v3079_v24, %v6480_v48  ;;  %v3741_v17 = vrot.slane %v3079_v24, 1 }
0x15bc   :  { %v508_v59 = vpop.permute.xlu1 %507  ;;  %v3301_v14 = vrot.slane %v3080_v9, %v6480_v48 }
0x15bd   :  { %528 = vst.msk [vmem:[#allocation2 + $0x20] sm:$0x1] %vm523_vm10, %v508_v59  ;;  %3322 = vrot.lane.b32.xlu1 %v3297_v0, %s5041_s3  ;;  %v3052_v45 = vpop.permute.xlu0 %3051 }
0x15be   :  { %v3074_v47 = vmul.f32 %v6307_v15, %v3052_v45  ;;  %v3737_v15 = vrot.slane %v3077_v16, 3 }
0x15c0   :  { %v1253_v50 = vpop.permute.xlu1 %1252  ;;  %v3731_v39 = vrot.slane %v3074_v47, 6  ;;  %3091 = vrot.lane.b32.xlu0 %v3074_v47, %s5041_s3  ;;  %v3277_v46 = vrot.slane %v3074_v47, %v6480_v48 }
0x15c1   :  { %1273 = vst.msk [vmem:[#allocation2 + $0x20] sm:$0x4] %vm1268_vm12, %v1253_v50  ;;  %v3056_v1 = vpop.permute.xlu0 %3055 }
0x15c2   :  { %v3732_v35 = vsel %vm533_vm2, %v3731_v39, %v3730_v55  ;;  %v3076_v34 = vmul.f32 %v6315_v29, %v3056_v1 }
0x15c3   :  { %v3734_v12 = vsel %vm536_vm3, %v3733_v54, %v3732_v35 }
0x15c4   :  { %v1991_v60 = vpop.permute.xlu1 %1990  ;;  %v3735_v18 = vrot.slane %v3076_v34, 4  ;;  %3093 = vrot.lane.b32.xlu0 %v3075_v62, %s5041_s3  ;;  %v3285_v56 = vrot.slane %v3076_v34, %v6480_v48 }
0x15c5   :  { %2011 = vst.msk [vmem:[#allocation2 + $0x20] sm:$0x10] %vm2006_vm13, %v1991_v60  ;;  %v3060_v10 = vpop.permute.xlu0 %3059 }
0x15c6   :  { %v3736_v33 = vsel %vm539_vm4, %v3735_v18, %v3734_v12  ;;  %v3078_v7 = vmul.f32 %v6321_v42, %v3060_v10 }
0x15c7   :  { %v3738_v11 = vsel %vm542_vm5, %v3737_v15, %v3736_v33 }
0x15c8   :  { %v2729_v36 = vpop.permute.xlu1 %2728  ;;  %v3739_v29 = vrot.slane %v3078_v7, 2  ;;  %3095 = vrot.lane.b32.xlu0 %v3076_v34, %s5041_s3  ;;  %v3293_v38 = vrot.slane %v3078_v7, %v6480_v48  ;;  %v4156_v34 = vld [vmem:[%s6866_s5] ss:$0 sm:$0xff] }
0x15c9   :  { %2749 = vst.msk [vmem:[#allocation2 + $0x20] sm:$0x40] %vm2744_vm14, %v2729_v36  ;;  %v884_v6 = vpop.permute.xlu0 %883 }
0x15ca   :  { %904 = vst.msk [vmem:[#allocation2 + $0x20] sm:$0x2] %vm899_vm11, %v884_v6  ;;  %v3740_v4 = vsel %vm545_vm6, %v3739_v29, %v3738_v11 }
0x15cb   :  { %v3742_v42 = vsel %vm548_vm7, %v3741_v17, %v3740_v4 }
0x15cc   :  { %v510_v52 = vpop.permute.xlu1 %509  ;;  %3097 = vrot.lane.b32.xlu0 %v3077_v16, %s5041_s3  ;;  %v6529_v28 = vsel %vm6901_vm8, %v3080_v9, %v3742_v42  ;;  %vm3113_vm8 = vcmask 261127  }
0x15cd   :  { %529 = vst.msk [vmem:[#allocation2 + $0x28] sm:$0x1] %vm523_vm10, %v510_v52  ;;  %v1622_v40 = vpop.permute.xlu0 %1621 }
0x15ce   :  { %1642 = vst.msk [vmem:[#allocation2 + $0x20] sm:$0x8] %vm1637_vm15, %v1622_v40 }
0x15d0   :  { %v1255_v44 = vpop.permute.xlu1 %1254  ;;  %3099 = vrot.lane.b32.xlu0 %v3078_v7, %s5041_s3 }
0x15d1   :  { %1274 = vst.msk [vmem:[#allocation2 + $0x28] sm:$0x4] %vm1268_vm12, %v1255_v44  ;;  %v2360_v13 = vpop.permute.xlu0 %2359 }
0x15d2   :  { %2380 = vst.msk [vmem:[#allocation2 + $0x20] sm:$0x20] %vm2375_vm0, %v2360_v13 }
0x15d4   :  { %v1993_v22 = vpop.permute.xlu1 %1992  ;;  %3101 = vrot.lane.b32.xlu0 %v3079_v24, %s5041_s3 }
0x15d5   :  { %2012 = vst.msk [vmem:[#allocation2 + $0x28] sm:$0x10] %vm2006_vm13, %v1993_v22  ;;  %v886_v51 = vpop.permute.xlu0 %885 }
0x15d6   :  { %905 = vst.msk [vmem:[#allocation2 + $0x28] sm:$0x2] %vm899_vm11, %v886_v51 }
0x15d8   :  { %v2731_v30 = vpop.permute.xlu1 %2730  ;;  %3103 = vrot.lane.b32.xlu0 %v3080_v9, %s5041_s3 }
0x15d9   :  { %2750 = vst.msk [vmem:[#allocation2 + $0x28] sm:$0x40] %vm2744_vm14, %v2731_v30  ;;  %v1624_v61 = vpop.permute.xlu0 %1623 }
0x15da   :  { %1643 = vst.msk [vmem:[#allocation2 + $0x28] sm:$0x8] %vm1637_vm15, %v1624_v61 }
0x15dc   :  { %v512_v25 = vpop.permute.xlu1 %511  ;;  %3312 = vrot.lane.b32.xlu0 %v3277_v46, %s5041_s3 }
0x15dd   :  { %530 = vst.msk [vmem:[#allocation2 + $0x30] sm:$0x1] %vm523_vm10, %v512_v25  ;;  %v2362_v57 = vpop.permute.xlu0 %2361 }
0x15de   :  { %2381 = vst.msk [vmem:[#allocation2 + $0x28] sm:$0x20] %vm2375_vm0, %v2362_v57 }
0x15e0   :  { %v1257_v49 = vpop.permute.xlu1 %1256  ;;  %3316 = vrot.lane.b32.xlu0 %v3285_v56, %s5041_s3 }
0x15e1   :  { %1275 = vst.msk [vmem:[#allocation2 + $0x30] sm:$0x4] %vm1268_vm12, %v1257_v49  ;;  %v888_v20 = vpop.permute.xlu0 %887 }
0x15e2   :  { %906 = vst.msk [vmem:[#allocation2 + $0x30] sm:$0x2] %vm899_vm11, %v888_v20 }
0x15e4   :  { %v1995_v43 = vpop.permute.xlu1 %1994  ;;  %3320 = vrot.lane.b32.xlu0 %v3293_v38, %s5041_s3 }
0x15e5   :  { %2013 = vst.msk [vmem:[#allocation2 + $0x30] sm:$0x10] %vm2006_vm13, %v1995_v43  ;;  %v1626_v63 = vpop.permute.xlu0 %1625 }
0x15e6   :  { %1644 = vst.msk [vmem:[#allocation2 + $0x30] sm:$0x8] %vm1637_vm15, %v1626_v63 }
0x15e8   :  { %v2733_v37 = vpop.permute.xlu1 %2732  ;;  %3324 = vrot.lane.b32.xlu0 %v3301_v14, %s5041_s3 }
0x15e9   :  { %2751 = vst.msk [vmem:[#allocation2 + $0x30] sm:$0x40] %vm2744_vm14, %v2733_v37  ;;  %v2364_v23 = vpop.permute.xlu0 %2363 }
0x15ea   :  { %2382 = vst.msk [vmem:[#allocation2 + $0x30] sm:$0x20] %vm2375_vm0, %v2364_v23 }
0x15ec   :  { %v514_v3 = vpop.permute.xlu1 %513 }
0x15ed   :  { %531 = vst.msk [vmem:[#allocation2 + $0x38] sm:$0x1] %vm523_vm10, %v514_v3  ;;  %v890_v62 = vpop.permute.xlu0 %889 }
0x15ee   :  { %907 = vst.msk [vmem:[#allocation2 + $0x38] sm:$0x2] %vm899_vm11, %v890_v62 }
0x15f0   :  { %v1259_v21 = vpop.permute.xlu1 %1258 }
0x15f1   :  { %1276 = vst.msk [vmem:[#allocation2 + $0x38] sm:$0x4] %vm1268_vm12, %v1259_v21  ;;  %v1628_v27 = vpop.permute.xlu0 %1627 }
0x15f2   :  { %1645 = vst.msk [vmem:[#allocation2 + $0x38] sm:$0x8] %vm1637_vm15, %v1628_v27 }
0x15f4   :  { %v1997_v16 = vpop.permute.xlu1 %1996 }
0x15f5   :  { %2014 = vst.msk [vmem:[#allocation2 + $0x38] sm:$0x10] %vm2006_vm13, %v1997_v16  ;;  %v2366_v31 = vpop.permute.xlu0 %2365 }
0x15f6   :  { %2383 = vst.msk [vmem:[#allocation2 + $0x38] sm:$0x20] %vm2375_vm0, %v2366_v31  ;;  %v3375_v31 = vand.u32 127, %v3270_v32  ;;  %vm3416_vm0 = vcmask 64512  }
0x15f8   :  { %v2735_v26 = vpop.permute.xlu1 %2734 }
0x15f9   :  { %2752 = vst.msk [vmem:[#allocation2 + $0x38] sm:$0x40] %vm2744_vm14, %v2735_v26 }
0x1621   :  { %v3090_v41 = vpop.permute.xlu0 %3089 }
0x1622   :  { %3114 = vst.msk [vmem:[#allocation2] sm:$0x80] %vm3113_vm8, %v3090_v41 }
0x1623   :  { %v3311_v7 = vpop.permute.xlu1 %3310 }
0x1627   :  { %v3315_v40 = vpop.permute.xlu1 %3314 }
0x1629   :  { %v6565_v58 = vld [vmem:[#allocation2] sm:$0xff] }
0x162a   :  { %4393 = vmatprep.mubr.msk.f32.mxu1 %vm201_vm9, %v6565_v58 }
0x162b   :  { %v3319_v56 = vpop.permute.xlu1 %3318 }
0x162f   :  { %v3323_v62 = vpop.permute.xlu1 %3322 }
0x1632   :  { %v3092_v24 = vpop.permute.xlu0 %3091 }
0x1633   :  { %3115 = vst.msk [vmem:[#allocation2 + $0x8] sm:$0x80] %vm3113_vm8, %v3092_v24  ;;  %v6619_v24 = vsub.s32 %v3375_v31, %v6477_v5 }
0x1636   :  { %v3094_v8 = vpop.permute.xlu0 %3093 }
0x1637   :  { %3116 = vst.msk [vmem:[#allocation2 + $0x10] sm:$0x80] %vm3113_vm8, %v3094_v8 }
0x163a   :  { %v3096_v53 = vpop.permute.xlu0 %3095  ;;  %v6571_v19 = vld [vmem:[#allocation2 + $0x8] sm:$0xff] }
0x163b   :  { %3117 = vst.msk [vmem:[#allocation2 + $0x18] sm:$0x80] %vm3113_vm8, %v3096_v53  ;;  %4394 = vmatmul.mubr.msk.f32.vlgmr.msra.gmra.mxu1 %vm201_vm9, %v6571_v19 }
0x163e   :  { %v3098_v0 = vpop.permute.xlu0 %3097  ;;  %v6576_v59 = vld [vmem:[#allocation2 + $0x10] sm:$0xff] }
0x163f   :  { %3118 = vst.msk [vmem:[#allocation2 + $0x20] sm:$0x80] %vm3113_vm8, %v3098_v0  ;;  %4396 = vmatprep.mubr.msk.f32.mxu1 %vm201_vm9, %v6576_v59 }
0x1642   :  { %v3100_v45 = vpop.permute.xlu0 %3099  ;;  %v6581_v47 = vld [vmem:[#allocation2 + $0x18] sm:$0xff] }
0x1643   :  { %3119 = vst.msk [vmem:[#allocation2 + $0x28] sm:$0x80] %vm3113_vm8, %v3100_v45  ;;  %4397 = vmatmul.mubr.msk.f32.gmra.mxu1 %vm201_vm9, %v6581_v47 }
0x1646   :  { %v3102_v50 = vpop.permute.xlu0 %3101  ;;  %v6586_v55 = vld [vmem:[#allocation2 + $0x20] sm:$0xff] }
0x1647   :  { %3120 = vst.msk [vmem:[#allocation2 + $0x30] sm:$0x80] %vm3113_vm8, %v3102_v50  ;;  %4399 = vmatprep.mubr.msk.f32.mxu1 %vm201_vm9, %v6586_v55 }
0x164a   :  { %v3104_v39 = vpop.permute.xlu0 %3103  ;;  %v6591_v54 = vld [vmem:[#allocation2 + $0x28] sm:$0xff] }
0x164b   :  { %3121 = vst.msk [vmem:[#allocation2 + $0x38] sm:$0x80] %vm3113_vm8, %v3104_v39  ;;  %4400 = vmatmul.mubr.msk.f32.gmra.mxu1 %vm201_vm9, %v6591_v54  ;;  %vm6949_vm8 = vcmask 1047559  }
0x164c   :  { %vm6950_vm10 = vmmov %vm6949_vm8 }
0x164d   :  { %vm6951_vm11 = vmmov %vm6949_vm8 }
0x164e   :  { %v6596_v1 = vld [vmem:[#allocation2 + $0x30] sm:$0xff]  ;;  %v3313_v18 = vpop.permute.xlu0 %3312  ;;  %vm6952_vm12 = vmmov %vm6949_vm8 }
0x164f   :  { %4402 = vmatprep.mubr.msk.f32.mxu1 %vm201_vm9, %v6596_v1 }
0x1652   :  { %v6600_v35 = vld [vmem:[#allocation2 + $0x38] sm:$0xff]  ;;  %v3317_v9 = vpop.permute.xlu0 %3316 }
0x1653   :  { %4403 = vmatmul.mubr.msk.f32.gmra.mxu1 %vm201_vm9, %v6600_v35 }
0x1654   :  { %4421 = vmatprep.mubr.msk.f32.mxu1 %vm5039_vm1, %v6917_v2 }
0x1656   :  { %v3321_v61 = vpop.permute.xlu0 %3320 }
0x165a   :  { %v3325_v14 = vpop.permute.xlu0 %3324 }
0x16fb   :  { %v4395_v60 = vpop.f32.mrf.mxu1 }
0x16fc   :  { %v3237_v12 = vadd.f32 %v4395_v60, %v4156_v34 }
0x16fd   :  { %v3231_v15 = vpop.f32.mrf.mxu1 }
0x16fe   :  { %v3335_v10 = vmul.f32 %v3313_v18, %v3237_v12  ;;  %v3232_v33 = vadd.f32 %v4156_v34, %v3231_v15 }
0x1700   :  { %v3334_v36 = vmul.f32 %v3311_v7, %v3232_v33  ;;  %v3345_v11 = vsel %vm201_vm9, %v3335_v10, 0.0 }
0x1701   :  { %3346 = vadd.xlane.f32.xlu0 %v3345_v11 }
0x1702   :  { %v3342_v29 = vsel %vm201_vm9, %v3334_v36, 0.0 }
0x1703   :  { %v4398_v17 = vpop.f32.mrf.mxu1  ;;  %3343 = vadd.xlane.f32.xlu1 %v3342_v29 }
0x1704   :  { %v3247_v6 = vadd.f32 %v4398_v17, %v4156_v34 }
0x1705   :  { %v3241_v52 = vpop.f32.mrf.mxu1 }
0x1706   :  { %v3337_v4 = vmul.f32 %v3317_v9, %v3247_v6  ;;  %v3242_v42 = vadd.f32 %v4156_v34, %v3241_v52 }
0x1708   :  { %v3336_v44 = vmul.f32 %v3315_v40, %v3242_v42  ;;  %v3351_v13 = vsel %vm201_vm9, %v3337_v4, 0.0  ;;  %v5042_v4 = vmov 0   ;;  %v3423_v42 = vsub.s32 0, %v6477_v5 }
0x1709   :  { %3352 = vadd.xlane.f32.xlu1 %v3351_v13  ;;  %4477 = vset.pattern.permute.xlu0 %v5042_v4  ;;  %v3427_v40 = vsub.s32 1, %v6477_v5  ;;  %v3435_v13 = vsub.s32 3, %v6477_v5 }
0x170a   :  { %v3348_v22 = vsel %vm201_vm9, %v3336_v44, 0.0  ;;  %4476 = vset.pattern.permute.xlu1 %v5042_v4  ;;  %v3431_v44 = vsub.s32 2, %v6477_v5 }
0x170b   :  { %v4401_v51 = vpop.f32.mrf.mxu1  ;;  %3349 = vadd.xlane.f32.xlu0 %v3348_v22 }
0x170c   :  { %v3257_v30 = vadd.f32 %v4401_v51, %v4156_v34 }
0x170d   :  { %v3251_v46 = vpop.f32.mrf.mxu1 }
0x170e   :  { %v3339_v25 = vmul.f32 %v3321_v61, %v3257_v30  ;;  %v3252_v57 = vadd.f32 %v4156_v34, %v3251_v46  ;;  %v3439_v46 = vsub.s32 4, %v6477_v5 }
0x1710   :  { %v3338_v49 = vmul.f32 %v3319_v56, %v3252_v57  ;;  %v3357_v20 = vsel %vm201_vm9, %v3339_v25, 0.0 }
0x1711   :  { %3358 = vadd.xlane.f32.xlu1 %v3357_v20 }
0x1712   :  { %v3354_v38 = vsel %vm201_vm9, %v3338_v49, 0.0 }
0x1713   :  { %v4404_v43 = vpop.f32.mrf.mxu1  ;;  %3355 = vadd.xlane.f32.xlu0 %v3354_v38 }
0x1714   :  { %v3267_v63 = vadd.f32 %v4404_v43, %v4156_v34  ;;  %v3443_v43 = vsub.s32 5, %v6477_v5 }
0x1715   :  { %v3261_v37 = vpop.f32.mrf.mxu1 }
0x1716   :  { %v3341_v23 = vmul.f32 %v3325_v14, %v3267_v63  ;;  %v3262_v3 = vadd.f32 %v4156_v34, %v3261_v37 }
0x1718   :  { %v3340_v21 = vmul.f32 %v3323_v62, %v3262_v3  ;;  %v3363_v27 = vsel %vm201_vm9, %v3341_v23, 0.0  ;;  %v3447_v23 = vsub.s32 6, %v6477_v5  ;;  %v3753_v5 = vld [vmem:[%s6867_s6 + $0x28] sm:$0xff] }
0x1719   :  { %3364 = vadd.xlane.f32.xlu1 %v3363_v27 }
0x171a   :  { %v3360_v16 = vsel %vm201_vm9, %v3340_v21, 0.0 }
0x171b   :  { %3361 = vadd.xlane.f32.xlu0 %v3360_v16 }
0x178a   :  { %v3347_v26 = vpop.xlane.xlu0 %3346 }
0x178b   :  { %v3383_v50 = vrot.slane %v3347_v26, %v6619_v24 }
0x178c   :  { %v3344_v41 = vpop.xlane.xlu1 %3343 }
0x178d   :  { %v3379_v53 = vrot.slane %v3344_v41, %v6619_v24 }
0x178f   :  { %v3408_v34 = vsel %vm533_vm2, %v3383_v50, %v3379_v53 }
0x1792   :  { %v3353_v0 = vpop.xlane.xlu1 %3352 }
0x1793   :  { %v3391_v18 = vrot.slane %v3353_v0, %v6619_v24 }
0x1794   :  { %v3350_v8 = vpop.xlane.xlu0 %3349 }
0x1795   :  { %v3387_v45 = vrot.slane %v3350_v8, %v6619_v24 }
0x1797   :  { %v3409_v60 = vsel %vm536_vm3, %v3387_v45, %v3408_v34 }
0x1798   :  { %v3410_v15 = vsel %vm539_vm4, %v3391_v18, %v3409_v60 }
0x179a   :  { %v3359_v12 = vpop.xlane.xlu1 %3358 }
0x179b   :  { %v3399_v7 = vrot.slane %v3359_v12, %v6619_v24 }
0x179c   :  { %v3356_v39 = vpop.xlane.xlu0 %3355 }
0x179d   :  { %v3395_v32 = vrot.slane %v3356_v39, %v6619_v24 }
0x179f   :  { %v3411_v10 = vsel %vm542_vm5, %v3395_v32, %v3410_v15 }
0x17a0   :  { %v3412_v17 = vsel %vm545_vm6, %v3399_v7, %v3411_v10 }
0x17a2   :  { %v3365_v33 = vpop.xlane.xlu1 %3364 }
0x17a3   :  { %v3407_v29 = vrot.slane %v3365_v33, %v6619_v24 }
0x17a4   :  { %v3362_v36 = vpop.xlane.xlu0 %3361 }
0x17a5   :  { %v3403_v11 = vrot.slane %v3362_v36, %v6619_v24 }
0x17a7   :  { %v3413_v6 = vsel %vm548_vm7, %v3403_v11, %v3412_v17 }
0x17a8   :  { %v3414_v9 = vsel %vm6949_vm8, %v3407_v29, %v3413_v6 }
0x17a9   :  { %v3417_v52 = vsel %vm3416_vm0, %v3414_v9, -inf }
0x17aa   :  { %3418 = vmax.xlane.f32.xlu0 %v3417_v52 }
0x1833   :  { %v3419_v22 = vpop.xlane.xlu0 %3418 }
0x1834   :  { %v3424_v51 = vrot.slane %v3419_v22, %v3423_v42  ;;  %v3428_v30 = vrot.slane %v3419_v22, %v3427_v40  ;;  %v3432_v61 = vrot.slane %v3419_v22, %v3431_v44  ;;  %v3436_v25 = vrot.slane %v3419_v22, %v3435_v13 }
0x1835   :  { %v3440_v63 = vrot.slane %v3419_v22, %v3439_v46  ;;  %v3444_v3 = vrot.slane %v3419_v22, %v3443_v43  ;;  %v3448_v27 = vrot.slane %v3419_v22, %v3447_v23 }
0x1836   :  { %v3461_v57 = vsub.f32 %v3344_v41, %v3424_v51  ;;  %v3462_v56 = vsub.f32 %v3347_v26, %v3428_v30  ;;  %v3463_v49 = vsub.f32 %v3350_v8, %v3432_v61  ;;  %v3464_v14 = vsub.f32 %v3353_v0, %v3436_v25 }
0x1837   :  { %v3465_v62 = vsub.f32 %v3356_v39, %v3440_v63  ;;  %v3466_v16 = vsub.f32 %v3359_v12, %v3444_v3  ;;  %v3452_v26 = vrot.slane %v3419_v22, %v6480_v48  ;;  %v3467_v41 = vsub.f32 %v3362_v36, %v3448_v27 }
0x1838   :  { %v3469_v20 = vmul.f32 1.442695, %v3461_v57  ;;  %v3471_v38 = vmul.f32 1.442695, %v3462_v56  ;;  %v3473_v37 = vmul.f32 1.442695, %v3463_v49 }
0x1839   :  { %v3475_v21 = vmul.f32 1.442695, %v3464_v14  ;;  %v3477_v31 = vmul.f32 1.442695, %v3465_v62  ;;  %v3479_v8 = vmul.f32 1.442695, %v3466_v16  ;;  %v3468_v45 = vsub.f32 %v3365_v33, %v3452_v26 }
0x183a   :  { %4990 = vpow2.f32 %v3469_v20  ;;  %v3481_v50 = vmul.f32 1.442695, %v3467_v41 }
0x183b   :  { %4992 = vpow2.f32 %v3471_v38  ;;  %v3483_v34 = vmul.f32 1.442695, %v3468_v45 }
0x183c   :  { %4994 = vpow2.f32 %v3473_v37 }
0x183d   :  { %4996 = vpow2.f32 %v3475_v21 }
0x183e   :  { %4998 = vpow2.f32 %v3477_v31 }
0x183f   :  { %5000 = vpow2.f32 %v3479_v8 }
0x1840   :  { %5002 = vpow2.f32 %v3481_v50 }
0x1841   :  { %5004 = vpow2.f32 %v3483_v34  ;;  %v3749_v34 = vld [vmem:[%s6867_s6 + $0x8] sm:$0xff] }
0x1847   :  { %v4991_v53 = vpop.eup %4990 }
0x1848   :  { %v4993_v0 = vpop.eup %4992  ;;  %3494 = vperm.xlu1 %4476, %v4991_v53  }
0x1849   :  { %3497 = vperm.xlu0 %4477, %v4993_v0   ;;  %v4995_v39 = vpop.eup %4994 }
0x184a   :  { %v4997_v60 = vpop.eup %4996 }
0x184b   :  { %v4999_v12 = vpop.eup %4998 }
0x184c   :  { %3500 = vperm.xlu1 %4476, %v4995_v39   ;;  %v5001_v32 = vpop.eup %5000 }
0x184d   :  { %v5003_v18 = vpop.eup %5002 }
0x184e   :  { %v5005_v15 = vpop.eup %5004 }
0x1850   :  { %3503 = vperm.xlu1 %4476, %v4997_v60  }
0x1854   :  { %3506 = vperm.xlu1 %4476, %v4999_v12  }
0x1858   :  { %3509 = vperm.xlu1 %4476, %v5001_v32  }
0x185c   :  { %3512 = vperm.xlu1 %4476, %v5003_v18  }
0x1860   :  { %3515 = vperm.xlu1 %4476, %v5005_v15  }
0x18c3   :  { %v3495_v10 = vpop.permute.xlu1 %3494 }
0x18c4   :  { %v3498_v11 = vpop.permute.xlu0 %3497  ;;  %v3520_v6 = vrot.slane %v3495_v10, %v6619_v24 }
0x18c5   :  { %v3524_v17 = vrot.slane %v3498_v11, %v6619_v24 }
0x18c7   :  { %v3501_v7 = vpop.permute.xlu1 %3500  ;;  %v3549_v51 = vsel %vm533_vm2, %v3524_v17, %v3520_v6 }
0x18c8   :  { %v3528_v9 = vrot.slane %v3501_v7, %v6619_v24 }
0x18ca   :  { %v3550_v61 = vsel %vm536_vm3, %v3528_v9, %v3549_v51 }
0x18cb   :  { %v3504_v33 = vpop.permute.xlu1 %3503 }
0x18cc   :  { %v3532_v52 = vrot.slane %v3504_v33, %v6619_v24 }
0x18ce   :  { %v3551_v57 = vsel %vm539_vm4, %v3532_v52, %v3550_v61 }
0x18cf   :  { %v3507_v36 = vpop.permute.xlu1 %3506 }
0x18d0   :  { %v3536_v4 = vrot.slane %v3507_v36, %v6619_v24 }
0x18d2   :  { %v3552_v56 = vsel %vm542_vm5, %v3536_v4, %v3551_v57 }
0x18d3   :  { %v3510_v29 = vpop.permute.xlu1 %3509 }
0x18d4   :  { %v3540_v30 = vrot.slane %v3510_v29, %v6619_v24 }
0x18d6   :  { %v3553_v20 = vsel %vm545_vm6, %v3540_v30, %v3552_v56 }
0x18d7   :  { %v3513_v22 = vpop.permute.xlu1 %3512 }
0x18d8   :  { %v3544_v25 = vrot.slane %v3513_v22, %v6619_v24 }
0x18da   :  { %v3554_v63 = vsel %vm548_vm7, %v3544_v25, %v3553_v20 }
0x18db   :  { %v3516_v49 = vpop.permute.xlu1 %3515 }
0x18dc   :  { %v3548_v38 = vrot.slane %v3516_v49, %v6619_v24 }
0x18de   :  { %v3555_v14 = vsel %vm6950_vm10, %v3548_v38, %v3554_v63 }
0x18df   :  { %v3557_v37 = vsel %vm3416_vm0, %v3555_v14, 0.0 }
0x18e0   :  { %3558 = vadd.xlane.f32.xlu1 %v3557_v37 }
0x18f1   :  { %3744 = vrot.lane.b32.xlu1 %v6529_v28, %s5040_s0 }
0x1969   :  { %v3559_v3 = vpop.xlane.xlu1 %3558 }
0x196a   :  { %5006 = vrcp.f32 %v3559_v3 }
0x1977   :  { %v5007_v62 = vpop.eup %5006 }
0x1978   :  { %v3565_v21 = vrot.slane %v5007_v62, %v3423_v42  ;;  %v3569_v16 = vrot.slane %v5007_v62, %v3427_v40  ;;  %v3573_v26 = vrot.slane %v5007_v62, %v3431_v44  ;;  %v3577_v28 = vrot.slane %v5007_v62, %v3435_v13 }
0x1979   :  { %v3581_v45 = vrot.slane %v5007_v62, %v3439_v46  ;;  %v3585_v40 = vrot.slane %v5007_v62, %v3443_v43  ;;  %v3589_v44 = vrot.slane %v5007_v62, %v3447_v23  ;;  %v3593_v50 = vrot.slane %v5007_v62, %v6480_v48  ;;  %v3755_v46 = vld [vmem:[%s6867_s6 + $0x38] sm:$0xff]  ;;  %v3754_v43 = vld [vmem:[%s6867_s6 + $0x30] sm:$0xff]  ;;  %v3752_v48 = vld [vmem:[%s6867_s6 + $0x20] sm:$0xff] }
0x197a   :  { %v3602_v27 = vmul.f32 %v4991_v53, %v3565_v21  ;;  %v3603_v31 = vmul.f32 %v4993_v0, %v3569_v16  ;;  %v3604_v41 = vmul.f32 %v4995_v39, %v3573_v26  ;;  %v3605_v8 = vmul.f32 %v4997_v60, %v3577_v28  ;;  %4406 = vmatpush3.msra.mxu1 %v3755_v46  ;;  %v3751_v23 = vld [vmem:[%s6867_s6 + $0x18] sm:$0xff]  ;;  %v3750_v39 = vld [vmem:[%s6867_s6 + $0x10] sm:$0xff]  ;;  %v3748_v60 = vld [vmem:[%s6867_s6] sm:$0xff] }
0x197b   :  { %v3606_v42 = vmul.f32 %v4999_v12, %v3581_v45  ;;  %v3607_v53 = vmul.f32 %v5001_v32, %v3585_v40  ;;  %v3608_v0 = vmul.f32 %v5003_v18, %v3589_v44  ;;  %v3609_v13 = vmul.f32 %v5005_v15, %v3593_v50  ;;  %4407 = vmatprep.subr.mxu1 %v6917_v2 }
0x197c   :  { %3612 = vperm.xlu0 %4477, %v3602_v27   ;;  %4408 = vmatpush3.msra.mxu1 %v3754_v43 }
0x197d   :  { %4409 = vmatprep.subr.mxu1 %v6917_v2 }
0x197e   :  { %4410 = vmatpush3.msra.mxu1 %v3753_v5 }
0x197f   :  { %4411 = vmatprep.subr.mxu1 %v6917_v2 }
0x1980   :  { %3617 = vperm.xlu0 %4477, %v3603_v31   ;;  %4412 = vmatpush3.msra.mxu1 %v3752_v48 }
0x1981   :  { %4413 = vmatprep.subr.mxu1 %v6917_v2 }
0x1982   :  { %4414 = vmatpush3.msra.mxu1 %v3751_v23 }
0x1983   :  { %4415 = vmatprep.subr.mxu1 %v6917_v2 }
0x1984   :  { %3622 = vperm.xlu0 %4477, %v3604_v41   ;;  %4416 = vmatpush3.msra.mxu1 %v3750_v39 }
0x1985   :  { %4417 = vmatprep.subr.mxu1 %v6917_v2 }
0x1986   :  { %4418 = vmatpush3.msra.mxu1 %v3749_v34 }
0x1987   :  { %4419 = vmatprep.subr.mxu1 %v6917_v2 }
0x1988   :  { %3627 = vperm.xlu0 %4477, %v3605_v8   ;;  %4420 = vmatpush3.msra.mxu1 %v3748_v60 }
0x1989   :  { %4424 = vmatprep.subr.mxu1 %v6917_v2 }
0x198c   :  { %3632 = vperm.xlu0 %4477, %v3606_v42  }
0x1990   :  { %3637 = vperm.xlu0 %4477, %v3607_v53  }
0x1994   :  { %3642 = vperm.xlu0 %4477, %v3608_v0  }
0x1998   :  { %3647 = vperm.xlu0 %4477, %v3609_v13  }
0x19f7   :  { %v3613_v12 = vpop.permute.xlu0 %3612 }
0x19f8   :  { %v3650_v15 = vmul.f32 %v3613_v12, %v6565_v58  ;;  %v4020_v20 = vrot.slane %v3613_v12, %v6619_v24 }
0x19fa   :  { %v3658_v36 = vsel %vm201_vm9, %v3650_v15, 0.0 }
0x19fb   :  { %v3618_v32 = vpop.permute.xlu0 %3617  ;;  %v3659_v9 = vrot.slane %v3658_v36, 4 }
0x19fc   :  { %v3651_v18 = vmul.f32 %v3618_v32, %v6571_v19  ;;  %v4024_v49 = vrot.slane %v3618_v32, %v6619_v24 }
0x19fe   :  { %v3665_v33 = vsel %vm201_vm9, %v3651_v18, 0.0  ;;  %v4049_v26 = vsel %vm533_vm2, %v4024_v49, %v4020_v20 }
0x19ff   :  { %v3623_v10 = vpop.permute.xlu0 %3622  ;;  %v3666_v6 = vrot.slane %v3665_v33, 4 }
0x1a00   :  { %v3652_v7 = vmul.f32 %v3623_v10, %v6576_v59  ;;  %v3660_v59 = vadd.f32 %v3659_v9, %v3658_v36  ;;  %v4028_v63 = vrot.slane %v3623_v10, %v6619_v24 }
0x1a01   :  { %v3667_v51 = vadd.f32 %v3666_v6, %v3665_v33 }
0x1a02   :  { %v3672_v11 = vsel %vm201_vm9, %v3652_v7, 0.0  ;;  %v3661_v37 = vrot.slane %v3660_v59, 2  ;;  %v4050_v45 = vsel %vm536_vm3, %v4028_v63, %v4049_v26  ;;  %v3935_v26 = vld [vmem:[%s6871_s10 + $0x68] sm:$0xff] }
0x1a03   :  { %v3628_v29 = vpop.permute.xlu0 %3627  ;;  %v3673_v52 = vrot.slane %v3672_v11, 4  ;;  %v3668_v38 = vrot.slane %v3667_v51, 2 }
0x1a04   :  { %v3653_v17 = vmul.f32 %v3628_v29, %v6581_v47  ;;  %v4032_v3 = vrot.slane %v3628_v29, %v6619_v24  ;;  %v3662_v53 = vadd.f32 %v3661_v37, %v3660_v59 }
0x1a05   :  { %v3674_v30 = vadd.f32 %v3673_v52, %v3672_v11  ;;  %v3669_v8 = vadd.f32 %v3668_v38, %v3667_v51 }
0x1a06   :  { %v3679_v4 = vsel %vm201_vm9, %v3653_v17, 0.0  ;;  %v4051_v0 = vsel %vm539_vm4, %v4032_v3, %v4050_v45  ;;  %v3663_v33 = vrot.slane %v3662_v53, 1  ;;  %v3840_v3 = vld [vmem:[%s6869_s8 + $0x18] sm:$0xff]  ;;  %v4165_v45 = vld [vmem:[%s6868_s7] ss:$0 sm:$0xff] }
0x1a07   :  { %v3680_v19 = vrot.slane %v3679_v4, 4  ;;  %v3633_v22 = vpop.permute.xlu0 %3632  ;;  %v3670_v60 = vrot.slane %v3669_v8, 1 }
0x1a08   :  { %v3654_v58 = vmul.f32 %v3633_v22, %v6586_v55  ;;  %v3675_v55 = vrot.slane %v3674_v30, 2  ;;  %v4036_v27 = vrot.slane %v3633_v22, %v6619_v24 }
0x1a09   :  { %v3681_v25 = vadd.f32 %v3680_v19, %v3679_v4  ;;  %v3664_v4 = vadd.f32 %v3663_v33, %v3662_v53 }
0x1a0a   :  { %v3686_v61 = vsel %vm201_vm9, %v3654_v58, 0.0  ;;  %v3676_v44 = vadd.f32 %v3675_v55, %v3674_v30  ;;  %v4052_v46 = vsel %vm542_vm5, %v4036_v27, %v4051_v0  ;;  %v3837_v27 = vld [vmem:[%s6869_s8] sm:$0xff] }
0x1a0b   :  { %v3687_v57 = vrot.slane %v3686_v61, 4  ;;  %v3638_v56 = vpop.permute.xlu0 %3637  ;;  %v3682_v21 = vrot.slane %v3681_v25, 2  ;;  %v3930_v0 = vld [vmem:[%s6871_s10 + $0x40] sm:$0xff] }
0x1a0c   :  { %v3655_v47 = vmul.f32 %v3638_v56, %v6591_v54  ;;  %v4040_v41 = vrot.slane %v3638_v56, %v6619_v24  ;;  %v3677_v15 = vrot.slane %v3676_v44, 1 }
0x1a0d   :  { %v3688_v14 = vadd.f32 %v3687_v57, %v3686_v61  ;;  %v3683_v13 = vadd.f32 %v3682_v21, %v3681_v25  ;;  %v3838_v21 = vld [vmem:[%s6869_s8 + $0x8] sm:$0xff] }
0x1a0e   :  { %v3693_v62 = vsel %vm201_vm9, %v3655_v47, 0.0  ;;  %v3678_v52 = vadd.f32 %v3677_v15, %v3676_v44 }
0x1a0f   :  { %v3694_v16 = vrot.slane %v3693_v62, 4  ;;  %v3643_v31 = vpop.permute.xlu0 %3642  ;;  %v3689_v54 = vrot.slane %v3688_v14, 2  ;;  %v3684_v36 = vrot.slane %v3683_v13, 1 }
0x1a10   :  { %v3656_v28 = vmul.f32 %v3643_v31, %v6596_v1  ;;  %v4044_v40 = vrot.slane %v3643_v31, %v6619_v24  ;;  %v4053_v1 = vsel %vm545_vm6, %v4040_v41, %v4052_v46  ;;  %v3936_v31 = vld [vmem:[%s6871_s10 + $0x70] sm:$0xff]  ;;  %v3933_v41 = vld [vmem:[%s6871_s10 + $0x58] sm:$0xff]  ;;  %v3927_v46 = vld [vmem:[%s6871_s10 + $0x28] sm:$0xff] }
0x1a11   :  { %v3695_v42 = vadd.f32 %v3694_v16, %v3693_v62  ;;  %v3690_v23 = vadd.f32 %v3689_v54, %v3688_v14  ;;  %v3685_v19 = vadd.f32 %v3684_v36, %v3683_v13  ;;  %v3745_v14 = vpop.permute.xlu1 %3744  ;;  %v3839_v62 = vld [vmem:[%s6869_s8 + $0x10] sm:$0xff]  ;;  %v3937_v16 = vld [vmem:[%s6871_s10 + $0x78] sm:$0xff]  ;;  %v3934_v54 = vld [vmem:[%s6871_s10 + $0x60] sm:$0xff] }
0x1a12   :  { %v3700_v50 = vsel %vm201_vm9, %v3656_v28, 0.0  ;;  %v4054_v18 = vsel %vm548_vm7, %v4044_v40, %v4053_v1  ;;  %4436 = vmatpush3.msra.mxu0 %v3937_v16  ;;  %v3932_v28 = vld [vmem:[%s6871_s10 + $0x50] sm:$0xff]  ;;  %v3922_v1 = vld [vmem:[%s6871_s10] sm:$0xff] }
0x1a13   :  { %v3696_v43 = vrot.slane %v3695_v42, 2  ;;  %v3701_v5 = vrot.slane %v3700_v50, 4  ;;  %v3648_v48 = vpop.permute.xlu0 %3647  ;;  %v3691_v17 = vrot.slane %v3690_v23, 1  ;;  %4437 = vmatprep.subr.mxu0 %v6917_v2  ;;  %v3928_v13 = vld [vmem:[%s6871_s10 + $0x30] sm:$0xff] }
0x1a14   :  { %v3657_v39 = vmul.f32 %v3648_v48, %v6600_v35  ;;  %v4048_v34 = vrot.slane %v3648_v48, %v6619_v24  ;;  %v3671_v35 = vadd.f32 %v3670_v60, %v3669_v8  ;;  %4438 = vmatpush3.msra.mxu0 %v3936_v31  ;;  %v3931_v8 = vld [vmem:[%s6871_s10 + $0x48] sm:$0xff]  ;;  %v3924_v48 = vld [vmem:[%s6871_s10 + $0x10] sm:$0xff] }
0x1a15   :  { %v3697_v12 = vadd.f32 %v3696_v43, %v3695_v42  ;;  %v3702_v32 = vadd.f32 %v3701_v5, %v3700_v50  ;;  %v3692_v51 = vadd.f32 %v3691_v17, %v3690_v23  ;;  %4439 = vmatprep.subr.mxu0 %v6917_v2  ;;  %v3929_v50 = vld [vmem:[%s6871_s10 + $0x38] sm:$0xff]  ;;  %v3926_v43 = vld [vmem:[%s6871_s10 + $0x20] sm:$0xff]  ;;  %v3923_v23 = vld [vmem:[%s6871_s10 + $0x8] sm:$0xff] }
0x1a16   :  { %v3707_v10 = vsel %vm201_vm9, %v3657_v39, 0.0  ;;  %v4055_v7 = vsel %vm6951_vm11, %v4048_v34, %v4054_v18  ;;  %v3722_v59 = vsel %vm533_vm2, %v3671_v35, %v3664_v4  ;;  %vm6953_vm2 = vcmask 523264   ;;  %4440 = vmatpush3.msra.mxu0 %v3935_v26  ;;  %v3925_v5 = vld [vmem:[%s6871_s10 + $0x18] sm:$0xff]  ;;  %v4167_v39 = vld [vmem:[%s6870_s9] ss:$0 sm:$0xff] }
0x1a17   :  { %v3703_v11 = vrot.slane %v3702_v32, 2  ;;  %v3708_v29 = vrot.slane %v3707_v10, 4  ;;  %4057 = vst.msk [vmem:[#allocation3] sm:$0xff] %vm3416_vm0, %v4055_v7  ;;  %v3698_v6 = vrot.slane %v3697_v12, 1  ;;  %v3723_v25 = vsel %vm536_vm3, %v3678_v52, %v3722_v59  ;;  %4441 = vmatprep.subr.mxu0 %v6917_v2 }
0x1a18   :  { %v3724_v56 = vsel %vm539_vm4, %v3685_v19, %v3723_v25  ;;  %4442 = vmatpush3.msra.mxu0 %v3934_v54 }
0x1a19   :  { %v3704_v24 = vadd.f32 %v3703_v11, %v3702_v32  ;;  %v3709_v9 = vadd.f32 %v3708_v29, %v3707_v10  ;;  %v3699_v30 = vadd.f32 %v3698_v6, %v3697_v12  ;;  %v3725_v47 = vsel %vm542_vm5, %v3692_v51, %v3724_v56  ;;  %4443 = vmatprep.subr.mxu0 %v6917_v2 }
0x1a1a   :  { %4444 = vmatpush3.msra.mxu0 %v3933_v41 }
0x1a1b   :  { %v3705_v22 = vrot.slane %v3704_v24, 1  ;;  %v3710_v58 = vrot.slane %v3709_v9, 2  ;;  %v3726_v20 = vsel %vm545_vm6, %v3699_v30, %v3725_v47  ;;  %4445 = vmatprep.subr.mxu0 %v6917_v2 }
0x1a1c   :  { %4446 = vmatpush3.msra.mxu0 %v3932_v28 }
0x1a1d   :  { %v3711_v61 = vadd.f32 %v3710_v58, %v3709_v9  ;;  %v3706_v57 = vadd.f32 %v3705_v22, %v3704_v24  ;;  %4447 = vmatprep.subr.mxu0 %v6917_v2 }
0x1a1e   :  { %4448 = vmatpush3.msra.mxu0 %v3931_v8 }
0x1a1f   :  { %v3712_v49 = vrot.slane %v3711_v61, 1  ;;  %v3727_v63 = vsel %vm548_vm7, %v3706_v57, %v3726_v20  ;;  %4449 = vmatprep.subr.mxu0 %v6917_v2 }
0x1a20   :  { %4450 = vmatpush3.msra.mxu0 %v3930_v0 }
0x1a21   :  { %v3713_v38 = vadd.f32 %v3712_v49, %v3711_v61  ;;  %4451 = vmatprep.subr.mxu0 %v6917_v2 }
0x1a22   :  { %4452 = vmatpush3.msra.mxu0 %v3929_v50 }
0x1a23   :  { %v3728_v37 = vsel %vm6952_vm12, %v3713_v38, %v3727_v63  ;;  %4453 = vmatprep.subr.mxu0 %v6917_v2 }
0x1a24   :  { %v3747_v55 = vsel %vm201_vm9, %v3728_v37, %v3745_v14  ;;  %4454 = vmatpush3.msra.mxu0 %v3928_v13 }
0x1a25   :  { %4422 = vmatmul.mubr.msk.f32.vlgmr.msra.gmra.mxu1 %vm6953_vm2, %v3747_v55  ;;  %4455 = vmatprep.subr.mxu0 %v6917_v2 }
0x1a26   :  { %4432 = vmatprep.mubr.msk.f32.mxu1 %vm5039_vm1, %v6917_v2  ;;  %4425 = vmatpush3.msra.mxu1 %v3840_v3 }
0x1a27   :  { %4426 = vmatprep.subr.mxu1 %v6917_v2  ;;  %4456 = vmatpush3.msra.mxu0 %v3927_v46 }
0x1a28   :  { %4427 = vmatpush3.msra.mxu1 %v3839_v62  ;;  %4457 = vmatprep.subr.mxu0 %v6917_v2 }
0x1a29   :  { %4428 = vmatprep.subr.mxu1 %v6917_v2  ;;  %4458 = vmatpush3.msra.mxu0 %v3926_v43 }
0x1a2a   :  { %4429 = vmatpush3.msra.mxu1 %v3838_v21  ;;  %4459 = vmatprep.subr.mxu0 %v6917_v2 }
0x1a2b   :  { %4430 = vmatprep.subr.mxu1 %v6917_v2  ;;  %4460 = vmatpush3.msra.mxu0 %v3925_v5 }
0x1a2c   :  { %4431 = vmatpush3.msra.mxu1 %v3837_v27  ;;  %4461 = vmatprep.subr.mxu0 %v6917_v2 }
0x1a2d   :  { %4462 = vmatpush3.msra.mxu0 %v3924_v48 }
0x1a2e   :  { %4463 = vmatprep.subr.mxu0 %v6917_v2 }
0x1a2f   :  { %4464 = vmatpush3.msra.mxu0 %v3923_v23 }
0x1a30   :  { %4465 = vmatprep.subr.mxu0 %v6917_v2 }
0x1a31   :  { %4466 = vmatpush3.msra.mxu0 %v3922_v1 }
0x1ae5   :  { %v3832_v42 = vpop.f32.mrf.mxu1 }
0x1ae6   :  { %v3833_v40 = vadd.f32 %v4165_v45, %v3832_v42 }
0x1ae7   :  { %v4423_v53 = vpop.f32.mrf.mxu1 }
0x1ae8   :  { %5008 = vtanh.f32 %v3833_v40 }
0x1af5   :  { %v5009_v44 = vpop.eup %5008 }
0x1af6   :  { %4433 = vmatmul.mubr.msk.f32.vlgmr.msra.gmra.mxu1 %vm201_vm9, %v5009_v44 }
0x1bb6   :  { %v3917_v34 = vpop.f32.mrf.mxu1 }
0x1bb7   :  { %v3918_v60 = vadd.f32 %v4167_v39, %v3917_v34 }
0x1bb8   :  { %v4434_v12 = vpop.f32.mrf.mxu1 }
0x1bb9   :  { %5010 = vtanh.f32 %v3918_v60 }
0x1bc6   :  { %v5011_v32 = vpop.eup %5010 }
0x1bc7   :  { %4468 = vmatmul.mubr.f32.vlgmr.msra.gmra.mxu0 %v5011_v32 }
0x1bc8   :  { %5027 = shalt.err (!%p5024_p4)
}
0x1bc9   :  { %4069 = dma.vmem_to_hbm [thread:$0]  %s4067_s20, 128, %s6874_s13, [#allocation4]   ;;  %v4169_v2 = vld [vmem:[%s6872_s11] ss:$0 sm:$0xff]  ;;  %vm4015_vm1 = vcmask 23552  }
0x1c87   :  { %v4011_v18 = vpop.f32.mrf.mxu0 }
0x1c88   :  { %v4012_v15 = vadd.f32 %v4169_v2, %v4011_v18 }
0x1c89   :  { %v4469_v10 = vpop.f32.mrf.mxu0 }
0x1c8a   :  { %4016 = vst.msk [vmem:[%s6873_s12] sm:$0xff] %vm4015_vm1, %v4012_v15 }
0x1c8b   :  { %5036 = dma.done.wait [#allocation4], 128  }
0x1c8c   :  { %5037 = vsyncadd [#allocation4], 4294967168 }
0x1c8d   :  { %4075 = vsyncpa [#allocation4], 1 }

</bundles_post_ra>
